<compile_context>
chip_gen: v6e
topology: v6e:2x2x1
jax: 0.10.0
libtpu: 0.0.40
codegen_flags: <defaults>
</compile_context>

<pallas_src>
import jax
import jax.numpy as jnp
from jax import lax
from jax.experimental import pallas as pl
from jax.experimental.pallas import tpu as pltpu


# ------------------------------ shared helper --------------------------------
def _layernorm(x, g_ref, b_ref, eps=1e-5):
    g = g_ref[...]          # (1, D)
    b = b_ref[...]          # (1, D)
    mu = jnp.mean(x, axis=-1, keepdims=True)
    var = jnp.mean((x - mu) ** 2, axis=-1, keepdims=True)
    return (x - mu) * lax.rsqrt(var + eps) * g + b


# ------------------------------ fused kernel ----------------------------------
def event_decoder_kernel(
    rep_ref, mask_ref, mem_ref, v_ref,
    n1g, n1b, n2g, n2b, n3g, n3b, n4g, n4b, n5g, n5b, nfg, nfb,
    sa_wt, sa_b, sa_owt, sa_ob,
    ca_wq, ca_bq, ca_wkv, ca_bkv, ca_owt, ca_ob,
    l1wt, l1b, l2wt, l2b,
    out_ref,
):
    Bt, S, D = mem_ref.shape
    bf16 = jnp.bfloat16
    scale = jnp.float32(1.0) / jnp.sqrt(jnp.float32(D))   # nhead=1 -> head_dim=D

    # ---- batch-invariant prefix (A rows, f32).  Recomputed every grid step:
    # ~5 tiny matmuls, far cheaper than a second launch + HBM roundtrip. ------
    tgt0 = _layernorm(v_ref[...], n1g, n1b)                         # norm1(V)
    qkv = jnp.dot(tgt0, sa_wt[...], preferred_element_type=jnp.float32) + sa_b[...]
    q_sa = qkv[:, 0:D]
    k_sa = qkv[:, D:2 * D]
    v_sa = qkv[:, 2 * D:3 * D]
    s0 = lax.dot_general(q_sa * scale, k_sa, (((1,), (1,)), ((), ())),
                         preferred_element_type=jnp.float32)
    s0 = s0 - jnp.max(s0, axis=-1, keepdims=True)
    p0 = jnp.exp(s0)
    p0 = p0 / jnp.sum(p0, axis=-1, keepdims=True)
    o0 = jnp.dot(p0, v_sa, preferred_element_type=jnp.float32)
    o0 = jnp.dot(o0, sa_owt[...], preferred_element_type=jnp.float32) + sa_ob[...]
    tgt0 = _layernorm(o0, n3g, n3b)                                 # norm3
    # cross-attn Q projection, 1/sqrt(D) pre-folded: (A, D)
    q0 = (jnp.dot(tgt0, ca_wq[...], preferred_element_type=jnp.float32)
          + ca_bq[...]) * scale

    # ---- per-batch-tile cross attention, packed sublane-dense ---------------
    mem = mem_ref[...].astype(jnp.float32).reshape(Bt * S, D)   # free (S % 8 == 0)
    memn = _layernorm(mem, n2g, n2b)                            # norm2(memory)
    kv = jnp.dot(memn.astype(bf16), ca_wkv[...],
                 preferred_element_type=jnp.float32) + ca_bkv[...]
    k = kv[:, 0:D].astype(bf16)
    v = kv[:, D:2 * D].astype(bf16)

    # scores with UNreplicated queries -> (A, Bt*S); expand to the packed
    # block-diagonal layout via exact 0/1 replication matmul + one mask add.
    s_small = lax.dot_general(q0.astype(bf16), k, (((1,), (1,)), ((), ())),
                              preferred_element_type=jnp.float32)
    rep = rep_ref[...]                                           # (Bt*A, A) 0/1
    s = jnp.dot(rep, s_small, preferred_element_type=jnp.float32) + mask_ref[...]
    s = s - jnp.max(s, axis=-1, keepdims=True)
    p = jnp.exp(s)
    p = p * pl.reciprocal(jnp.sum(p, axis=-1, keepdims=True), approx=True)

    o = jnp.dot(p.astype(bf16), v, preferred_element_type=jnp.float32)
    attn = jnp.dot(o.astype(bf16), ca_owt[...],
                   preferred_element_type=jnp.float32) + ca_ob[...]

    # residual with the replicated batch-invariant queries (exact replication)
    tgt = jnp.dot(rep, tgt0, preferred_element_type=jnp.float32) + attn
    tgt = _layernorm(tgt, n4g, n4b)                              # norm4
    h = jnp.maximum(jnp.dot(tgt.astype(bf16), l1wt[...],
                            preferred_element_type=jnp.float32) + l1b[...], 0.0)
    tgt2 = jnp.dot(h.astype(bf16), l2wt[...],
                   preferred_element_type=jnp.float32) + l2b[...]
    tgt = tgt + tgt2                                             # + dropout2(tgt2)
    tgt = _layernorm(tgt, n5g, n5b)                              # norm5
    tgt = _layernorm(tgt, nfg, nfb)                              # TransDecoder norm
    out_ref[0] = tgt.astype(out_ref.dtype)


# ------------------------------- wrapper --------------------------------------
def _rep_spec(shape, single_buffer):
    zeros = (0,) * len(shape)
    if single_buffer:
        # constant-index blocks: no need to double buffer (v7x VMEM = 64 MiB)
        return pl.BlockSpec(shape, lambda i, _z=zeros: _z,
                            pipeline_mode=pl.Buffered(1))
    return pl.BlockSpec(shape, lambda i, _z=zeros: _z)


def event_decoder_forward(features, params, block_batch=None):
    B, S, D = features.shape
    A, Dv = params["V"].shape
    # Event_decoder's V is (num_attris, dim_feedforward) but it is normed and
    # attended with d_model-sized weights: the module is only well defined when
    # dim_feedforward == d_model (true for its defaults, 512 / 512).
    assert Dv == D, "Event_decoder requires dim_feedforward == d_model"
    Dff = params["l1wt"].shape[1]

    # v7x (2 TCs): want >= 2 balanced tiles; v5e/v6e (1 TC): the largest Bt
    # that fits VMEM is best.  B is padded UP to a multiple of Bt.
    Bt = min(8, B) if block_batch is None else block_batch
    num_tiles = pl.cdiv(B, Bt)
    B_pad = num_tiles * Bt
    S_pad = pl.cdiv(S, 8) * 8            # keep (Bt,S,D)->(Bt*S,D) a free merge

    feats = features
    if B_pad != B or S_pad != S:
        feats = jnp.pad(feats, ((0, B_pad - B), (0, S_pad - S), (0, 0)))
    feats = feats.astype(jnp.bfloat16)   # only per-step streamed input (halves DMA)

    # grid-invariant constants: block-diagonal additive mask (also masks padded
    # keys) and the 0/1 row-replication matrix R (packed row b*A+a -> query a).
    BA, BS = Bt * A, Bt * S_pad
    row_b = jnp.arange(BA, dtype=jnp.int32) // A
    col_b = jnp.arange(BS, dtype=jnp.int32) // S_pad
    col_s = jnp.arange(BS, dtype=jnp.int32) % S_pad
    keep = (row_b[:, None] == col_b[None, :]) & (col_s[None, :] < S)
    mask = jnp.where(keep, 0.0, -1e30).astype(jnp.float32)
    rep = (jnp.arange(BA, dtype=jnp.int32)[:, None] % A
           == jnp.arange(A, dtype=jnp.int32)[None, :]).astype(jnp.float32)

    # bf16 weights on the per-batch path (f32 accumulation inside the kernel);
    # the tiny A-row prefix, LayerNorm params and biases stay f32.
    ca_wq = params["ca_wt"][:, 0:D]
    ca_bq = params["ca_b"][:, 0:D]
    ca_wkv = params["ca_wt"][:, D:3 * D].astype(jnp.bfloat16)
    ca_bkv = params["ca_b"][:, D:3 * D]
    ca_owt = params["ca_owt"].astype(jnp.bfloat16)
    l1wt = params["l1wt"].astype(jnp.bfloat16)
    l2wt = params["l2wt"].astype(jnp.bfloat16)

    args = (rep, mask, feats, params["V"],
            params["n1g"], params["n1b"], params["n2g"], params["n2b"],
            params["n3g"], params["n3b"], params["n4g"], params["n4b"],
            params["n5g"], params["n5b"], params["nfg"], params["nfb"],
            params["sa_wt"], params["sa_b"], params["sa_owt"], params["sa_ob"],
            ca_wq, ca_bq, ca_wkv, ca_bkv, ca_owt, params["ca_ob"],
            l1wt, params["l1b"], l2wt, params["l2b"])

    def make_call(single_buffer):
        r = lambda shape: _rep_spec(shape, single_buffer)
        in_specs = [
            r((BA, A)),                                          # rep matrix R
            r((BA, BS)),                                         # additive mask
            pl.BlockSpec((Bt, S_pad, D), lambda i: (i, 0, 0)),   # features tile
            r((A, D)),                                           # V
        ] + [r((1, D)) for _ in range(12)] + [                   # 6 LN (g,b) pairs
            r((D, 3 * D)), r((1, 3 * D)),                        # self-attn in-proj
            r((D, D)), r((1, D)),                                # self-attn out-proj
            r((D, D)), r((1, D)),                                # cross-attn Wq, bq
            r((D, 2 * D)), r((1, 2 * D)),                        # cross-attn Wkv, bkv
            r((D, D)), r((1, D)),                                # cross-attn out-proj
            r((D, Dff)), r((1, Dff)),                            # linear1
            r((Dff, D)), r((1, D)),                              # linear2
        ]
        # TODO(synk): for large Dff, stream l1wt/l2wt over an extra "arbitrary"
        # grid axis with an f32 accumulator and set vmem_limit_bytes (v7x 64 MiB).
        return pl.pallas_call(
            event_decoder_kernel,
            out_shape=jax.ShapeDtypeStruct((num_tiles, BA, D), jnp.float32),
            grid=(num_tiles,),
            in_specs=in_specs,
            out_specs=pl.BlockSpec((1, BA, D), lambda i: (i, 0, 0)),
            compiler_params=pltpu.CompilerParams(
                dimension_semantics=("parallel",)),
        )

    try:
        out = make_call(single_buffer=True)(*args)
    except Exception:
        # pl.Buffered(1) (single-buffered constant blocks) unsupported on this
        # jax build -- retry with the default double-buffered constant blocks.
        out = make_call(single_buffer=False)(*args)

    # dense (Bt*A, D) slabs -> (B, A, D), dropping padded batch rows
    return out.reshape(B_pad, A, D)[:B]


# --------------------------- pure-JAX reference -------------------------------
def reference_forward(features, p):
    B, S, D = features.shape
    A = p["V"].shape[0]
    eps = 1e-5

    def ln(x, g, b):
        mu = jnp.mean(x, axis=-1, keepdims=True)
        var = jnp.mean((x - mu) ** 2, axis=-1, keepdims=True)
        return (x - mu) / jnp.sqrt(var + eps) * g + b

    def mha(q_in, kv_in, wt, bb, owt, ob):
        q = q_in @ wt[:, :D] + bb[:, :D]
        k = kv_in @ wt[:, D:2 * D] + bb[:, D:2 * D]
        v = kv_in @ wt[:, 2 * D:] + bb[:, 2 * D:]
        s = jnp.einsum("bad,bsd->bas", q, k) / jnp.sqrt(jnp.float32(D))
        pr = jax.nn.softmax(s, axis=-1)
        o = jnp.einsum("bas,bsd->bad", pr, v)
        return o @ owt + ob

    tgt = jnp.broadcast_to(p["V"][None], (B, A, D))
    tgt = ln(tgt, p["n1g"], p["n1b"])
    mem = ln(features, p["n2g"], p["n2b"])
    tgt = mha(tgt, tgt, p["sa_wt"], p["sa_b"], p["sa_owt"], p["sa_ob"])
    tgt = ln(tgt, p["n3g"], p["n3b"])
    tgt = tgt + mha(tgt, mem, p["ca_wt"], p["ca_b"], p["ca_owt"], p["ca_ob"])
    tgt = ln(tgt, p["n4g"], p["n4b"])
    h = jnp.maximum(tgt @ p["l1wt"] + p["l1b"], 0.0)
    tgt = tgt + (h @ p["l2wt"] + p["l2b"])
    tgt = ln(tgt, p["n5g"], p["n5b"])
    tgt = ln(tgt, p["nfg"], p["nfb"])
    return tgt


# --------------------------- parameter init -----------------------------------
def init_params(key, num_attris, d_model, dim_feedforward):
    D, Dff = d_model, dim_feedforward
    ks = iter(jax.random.split(key, 40))
    nrm = lambda k, shape, s=0.05: s * jax.random.normal(k, shape, jnp.float32)

    p = {}
    # V: nn.Parameter (num_attris, dim_feedforward), xavier_uniform
    bound = jnp.sqrt(6.0 / (num_attris + Dff))
    p["V"] = jax.random.uniform(next(ks), (num_attris, Dff), jnp.float32, -bound, bound)
    # LayerNorm params (norm1..norm5 of Event_Layer + TransDecoder final norm)
    for name in ["n1", "n2", "n3", "n4", "n5", "nf"]:
        p[name + "g"] = 1.0 + nrm(next(ks), (1, D))
        p[name + "b"] = nrm(next(ks), (1, D))
    # MultiheadAttention (self + cross): stored pre-transposed (x @ W.T == x @ wt)
    for name in ["sa", "ca"]:
        p[name + "_wt"] = nrm(next(ks), (D, 3 * D))
        p[name + "_b"] = nrm(next(ks), (1, 3 * D))
        p[name + "_owt"] = nrm(next(ks), (D, D))
        p[name + "_ob"] = nrm(next(ks), (1, D))
    # FFN linear1 / linear2 (pre-transposed)
    p["l1wt"] = nrm(next(ks), (D, Dff))
    p["l1b"] = nrm(next(ks), (1, Dff))
    p["l2wt"] = nrm(next(ks), (Dff, D))
    p["l2b"] = nrm(next(ks), (1, D))
    return p


# ----------------------------------- main -------------------------------------
if __name__ == "__main__":
    B, S = 16, 8                # batch, number of feature tokens
    A = 3                       # num_attris (event queries)
    D = 128                     # dim_ftr == d_model == dim_feedforward
    HEADS = 1                   # module default

    key = jax.random.PRNGKey(0)
    k_feat, k_par = jax.random.split(key)
    features = jax.random.normal(k_feat, (B, S, D), jnp.float32)
    params = init_params(k_par, A, D, D)

    # TODO(synk): positional-encoding branch (pos_emb=True) and the unused
    # self_attn_vis sub-module are not exercised (module defaults skip both).

    out = jax.block_until_ready(event_decoder_forward(features, params))
    ref = reference_forward(features, params)
    assert out.shape == (B, A, D)
    max_err = float(jnp.max(jnp.abs(out - ref)))
    # bf16 features / weights inside the kernel (f32 accumulation) -> relaxed tol
    assert jnp.allclose(out, ref, atol=5e-2, rtol=5e-2), max_err

    print("KERNEL_OK")
</pallas_src>

<mosaic_0001>
module attributes {stable_mosaic.version = 11 : i64} {
  func.func @event_decoder_kernel(%arg0: i32, %arg1: memref<24x3xf32, #tpu.memory_space<vmem>>, %arg2: memref<24x64xf32, #tpu.memory_space<vmem>>, %arg3: memref<8x8x128xbf16, #tpu.memory_space<vmem>>, %arg4: memref<3x128xf32, #tpu.memory_space<vmem>>, %arg5: memref<1x128xf32, #tpu.memory_space<vmem>>, %arg6: memref<1x128xf32, #tpu.memory_space<vmem>>, %arg7: memref<1x128xf32, #tpu.memory_space<vmem>>, %arg8: memref<1x128xf32, #tpu.memory_space<vmem>>, %arg9: memref<1x128xf32, #tpu.memory_space<vmem>>, %arg10: memref<1x128xf32, #tpu.memory_space<vmem>>, %arg11: memref<1x128xf32, #tpu.memory_space<vmem>>, %arg12: memref<1x128xf32, #tpu.memory_space<vmem>>, %arg13: memref<1x128xf32, #tpu.memory_space<vmem>>, %arg14: memref<1x128xf32, #tpu.memory_space<vmem>>, %arg15: memref<1x128xf32, #tpu.memory_space<vmem>>, %arg16: memref<1x128xf32, #tpu.memory_space<vmem>>, %arg17: memref<128x384xf32, #tpu.memory_space<vmem>>, %arg18: memref<1x384xf32, #tpu.memory_space<vmem>>, %arg19: memref<128x128xf32, #tpu.memory_space<vmem>>, %arg20: memref<1x128xf32, #tpu.memory_space<vmem>>, %arg21: memref<128x128xf32, #tpu.memory_space<vmem>>, %arg22: memref<1x128xf32, #tpu.memory_space<vmem>>, %arg23: memref<128x256xbf16, #tpu.memory_space<vmem>>, %arg24: memref<1x256xf32, #tpu.memory_space<vmem>>, %arg25: memref<128x128xbf16, #tpu.memory_space<vmem>>, %arg26: memref<1x128xf32, #tpu.memory_space<vmem>>, %arg27: memref<128x128xbf16, #tpu.memory_space<vmem>>, %arg28: memref<1x128xf32, #tpu.memory_space<vmem>>, %arg29: memref<128x128xbf16, #tpu.memory_space<vmem>>, %arg30: memref<1x128xf32, #tpu.memory_space<vmem>>, %arg31: memref<1x24x128xf32, #tpu.memory_space<vmem>>) attributes {dimension_semantics = [#tpu.dimension_semantics<parallel>], iteration_bounds = array<i64: 2>, scalar_prefetch = 0 : i64, scratch_operands = 0 : i64, tpu.core_type = #tpu.core_type<tc>, window_params = [{pipeline_mode = #tpu.pipeline_mode<synchronous>, transform_indices = @transform_0, window_bounds = array<i64: 24, 3>}, {pipeline_mode = #tpu.pipeline_mode<synchronous>, transform_indices = @transform_1, window_bounds = array<i64: 24, 64>}, {transform_indices = @transform_2, window_bounds = array<i64: 8, 8, 128>}, {pipeline_mode = #tpu.pipeline_mode<synchronous>, transform_indices = @transform_3, window_bounds = array<i64: 3, 128>}, {pipeline_mode = #tpu.pipeline_mode<synchronous>, transform_indices = @transform_4, window_bounds = array<i64: 1, 128>}, {pipeline_mode = #tpu.pipeline_mode<synchronous>, transform_indices = @transform_5, window_bounds = array<i64: 1, 128>}, {pipeline_mode = #tpu.pipeline_mode<synchronous>, transform_indices = @transform_6, window_bounds = array<i64: 1, 128>}, {pipeline_mode = #tpu.pipeline_mode<synchronous>, transform_indices = @transform_7, window_bounds = array<i64: 1, 128>}, {pipeline_mode = #tpu.pipeline_mode<synchronous>, transform_indices = @transform_8, window_bounds = array<i64: 1, 128>}, {pipeline_mode = #tpu.pipeline_mode<synchronous>, transform_indices = @transform_9, window_bounds = array<i64: 1, 128>}, {pipeline_mode = #tpu.pipeline_mode<synchronous>, transform_indices = @transform_10, window_bounds = array<i64: 1, 128>}, {pipeline_mode = #tpu.pipeline_mode<synchronous>, transform_indices = @transform_11, window_bounds = array<i64: 1, 128>}, {pipeline_mode = #tpu.pipeline_mode<synchronous>, transform_indices = @transform_12, window_bounds = array<i64: 1, 128>}, {pipeline_mode = #tpu.pipeline_mode<synchronous>, transform_indices = @transform_13, window_bounds = array<i64: 1, 128>}, {pipeline_mode = #tpu.pipeline_mode<synchronous>, transform_indices = @transform_14, window_bounds = array<i64: 1, 128>}, {pipeline_mode = #tpu.pipeline_mode<synchronous>, transform_indices = @transform_15, window_bounds = array<i64: 1, 128>}, {pipeline_mode = #tpu.pipeline_mode<synchronous>, transform_indices = @transform_16, window_bounds = array<i64: 128, 384>}, {pipeline_mode = #tpu.pipeline_mode<synchronous>, transform_indices = @transform_17, window_bounds = array<i64: 1, 384>}, {pipeline_mode = #tpu.pipeline_mode<synchronous>, transform_indices = @transform_18, window_bounds = array<i64: 128, 128>}, {pipeline_mode = #tpu.pipeline_mode<synchronous>, transform_indices = @transform_19, window_bounds = array<i64: 1, 128>}, {pipeline_mode = #tpu.pipeline_mode<synchronous>, transform_indices = @transform_20, window_bounds = array<i64: 128, 128>}, {pipeline_mode = #tpu.pipeline_mode<synchronous>, transform_indices = @transform_21, window_bounds = array<i64: 1, 128>}, {pipeline_mode = #tpu.pipeline_mode<synchronous>, transform_indices = @transform_22, window_bounds = array<i64: 128, 256>}, {pipeline_mode = #tpu.pipeline_mode<synchronous>, transform_indices = @transform_23, window_bounds = array<i64: 1, 256>}, {pipeline_mode = #tpu.pipeline_mode<synchronous>, transform_indices = @transform_24, window_bounds = array<i64: 128, 128>}, {pipeline_mode = #tpu.pipeline_mode<synchronous>, transform_indices = @transform_25, window_bounds = array<i64: 1, 128>}, {pipeline_mode = #tpu.pipeline_mode<synchronous>, transform_indices = @transform_26, window_bounds = array<i64: 128, 128>}, {pipeline_mode = #tpu.pipeline_mode<synchronous>, transform_indices = @transform_27, window_bounds = array<i64: 1, 128>}, {pipeline_mode = #tpu.pipeline_mode<synchronous>, transform_indices = @transform_28, window_bounds = array<i64: 128, 128>}, {pipeline_mode = #tpu.pipeline_mode<synchronous>, transform_indices = @transform_29, window_bounds = array<i64: 1, 128>}, {transform_indices = @transform_30, window_bounds = array<i64: 1, 24, 128>}]} {
    %cst = arith.constant 1.280000e+02 : f32
    %0 = math.sqrt %cst : f32
    %cst_0 = arith.constant 1.000000e+00 : f32
    %1 = arith.divf %cst_0, %0 : f32
    %c0 = arith.constant 0 : index
    %c0_1 = arith.constant 0 : index
    %2 = vector.load %arg4[%c0, %c0_1] : memref<3x128xf32, #tpu.memory_space<vmem>>, vector<3x128xf32>
    %c0_2 = arith.constant 0 : index
    %c0_3 = arith.constant 0 : index
    %3 = vector.load %arg5[%c0_2, %c0_3] : memref<1x128xf32, #tpu.memory_space<vmem>>, vector<1x128xf32>
    %c0_4 = arith.constant 0 : index
    %c0_5 = arith.constant 0 : index
    %4 = vector.load %arg6[%c0_4, %c0_5] : memref<1x128xf32, #tpu.memory_space<vmem>>, vector<1x128xf32>
    %cst_6 = arith.constant dense<0.000000e+00> : vector<3xf32>
    %5 = vector.multi_reduction <add>, %2, %cst_6 [1] : vector<3x128xf32> to vector<3xf32>
    %6 = vector.shape_cast %5 : vector<3xf32> to vector<3x1xf32>
    %cst_7 = arith.constant 1.280000e+02 : f32
    %7 = vector.broadcast %cst_7 : f32 to vector<3x1xf32>
    %8 = arith.divf %6, %7 : vector<3x1xf32>
    %9 = vector.broadcast %8 : vector<3x1xf32> to vector<3x128xf32>
    %10 = arith.subf %2, %9 : vector<3x128xf32>
    %11 = arith.mulf %10, %10 : vector<3x128xf32>
    %cst_8 = arith.constant dense<0.000000e+00> : vector<3xf32>
    %12 = vector.multi_reduction <add>, %11, %cst_8 [1] : vector<3x128xf32> to vector<3xf32>
    %13 = vector.shape_cast %12 : vector<3xf32> to vector<3x1xf32>
    %cst_9 = arith.constant 1.280000e+02 : f32
    %14 = vector.broadcast %cst_9 : f32 to vector<3x1xf32>
    %15 = arith.divf %13, %14 : vector<3x1xf32>
    %16 = vector.broadcast %8 : vector<3x1xf32> to vector<3x128xf32>
    %17 = arith.subf %2, %16 : vector<3x128xf32>
    %cst_10 = arith.constant 9.99999974E-6 : f32
    %18 = vector.broadcast %cst_10 : f32 to vector<3x1xf32>
    %19 = arith.addf %15, %18 : vector<3x1xf32>
    %20 = math.rsqrt %19 : vector<3x1xf32>
    %21 = vector.broadcast %20 : vector<3x1xf32> to vector<3x128xf32>
    %22 = arith.mulf %17, %21 : vector<3x128xf32>
    %23 = vector.broadcast %3 : vector<1x128xf32> to vector<3x128xf32>
    %24 = arith.mulf %22, %23 : vector<3x128xf32>
    %25 = vector.broadcast %4 : vector<1x128xf32> to vector<3x128xf32>
    %26 = arith.addf %24, %25 : vector<3x128xf32>
    %c0_11 = arith.constant 0 : index
    %c0_12 = arith.constant 0 : index
    %27 = vector.load %arg17[%c0_11, %c0_12] : memref<128x384xf32, #tpu.memory_space<vmem>>, vector<128x384xf32>
    %cst_13 = arith.constant dense<0.000000e+00> : vector<3x384xf32>
    %28 = tpu.matmul %26, %27, %cst_13 {dimension_numbers = #tpu.dot_dimension_numbers<[1], [0], [0], [1], [0, 0, 1, 1], [], []>} : vector<3x128xf32>, vector<128x384xf32>, vector<3x384xf32> -> vector<3x384xf32>
    %c0_14 = arith.constant 0 : index
    %c0_15 = arith.constant 0 : index
    %29 = vector.load %arg18[%c0_14, %c0_15] : memref<1x384xf32, #tpu.memory_space<vmem>>, vector<1x384xf32>
    %30 = vector.broadcast %29 : vector<1x384xf32> to vector<3x384xf32>
    %31 = arith.addf %28, %30 : vector<3x384xf32>
    %32 = vector.extract_strided_slice %31 {offsets = [0, 0], sizes = [3, 128], strides = [1, 1]} : vector<3x384xf32> to vector<3x128xf32>
    %33 = vector.extract_strided_slice %31 {offsets = [0, 128], sizes = [3, 128], strides = [1, 1]} : vector<3x384xf32> to vector<3x128xf32>
    %34 = vector.extract_strided_slice %31 {offsets = [0, 256], sizes = [3, 128], strides = [1, 1]} : vector<3x384xf32> to vector<3x128xf32>
    %35 = vector.broadcast %1 : f32 to vector<3x128xf32>
    %36 = arith.mulf %32, %35 : vector<3x128xf32>
    %cst_16 = arith.constant dense<0.000000e+00> : vector<3x3xf32>
    %37 = tpu.matmul %36, %33, %cst_16 {dimension_numbers = #tpu.dot_dimension_numbers<[1], [1], [0], [0], [0, 0, 1, 0], [], []>} : vector<3x128xf32>, vector<3x128xf32>, vector<3x3xf32> -> vector<3x3xf32>
    %cst_17 = arith.constant dense<0xFF800000> : vector<3xf32>
    %38 = vector.multi_reduction <maximumf>, %37, %cst_17 [1] : vector<3x3xf32> to vector<3xf32>
    %39 = vector.shape_cast %38 : vector<3xf32> to vector<3x1xf32>
    %40 = vector.broadcast %39 : vector<3x1xf32> to vector<3x3xf32>
    %41 = arith.subf %37, %40 : vector<3x3xf32>
    %42 = math.exp %41 : vector<3x3xf32>
    %cst_18 = arith.constant dense<0.000000e+00> : vector<3xf32>
    %43 = vector.multi_reduction <add>, %42, %cst_18 [1] : vector<3x3xf32> to vector<3xf32>
    %44 = vector.shape_cast %43 : vector<3xf32> to vector<3x1xf32>
    %45 = vector.broadcast %44 : vector<3x1xf32> to vector<3x3xf32>
    %46 = arith.divf %42, %45 : vector<3x3xf32>
    %cst_19 = arith.constant dense<0.000000e+00> : vector<3x128xf32>
    %47 = tpu.matmul %46, %34, %cst_19 {dimension_numbers = #tpu.dot_dimension_numbers<[1], [0], [0], [1], [0, 0, 1, 1], [], []>} : vector<3x3xf32>, vector<3x128xf32>, vector<3x128xf32> -> vector<3x128xf32>
    %c0_20 = arith.constant 0 : index
    %c0_21 = arith.constant 0 : index
    %48 = vector.load %arg19[%c0_20, %c0_21] : memref<128x128xf32, #tpu.memory_space<vmem>>, vector<128x128xf32>
    %cst_22 = arith.constant dense<0.000000e+00> : vector<3x128xf32>
    %49 = tpu.matmul %47, %48, %cst_22 {dimension_numbers = #tpu.dot_dimension_numbers<[1], [0], [0], [1], [0, 0, 1, 1], [], []>} : vector<3x128xf32>, vector<128x128xf32>, vector<3x128xf32> -> vector<3x128xf32>
    %c0_23 = arith.constant 0 : index
    %c0_24 = arith.constant 0 : index
    %50 = vector.load %arg20[%c0_23, %c0_24] : memref<1x128xf32, #tpu.memory_space<vmem>>, vector<1x128xf32>
    %51 = vector.broadcast %50 : vector<1x128xf32> to vector<3x128xf32>
    %52 = arith.addf %49, %51 : vector<3x128xf32>
    %c0_25 = arith.constant 0 : index
    %c0_26 = arith.constant 0 : index
    %53 = vector.load %arg9[%c0_25, %c0_26] : memref<1x128xf32, #tpu.memory_space<vmem>>, vector<1x128xf32>
    %c0_27 = arith.constant 0 : index
    %c0_28 = arith.constant 0 : index
    %54 = vector.load %arg10[%c0_27, %c0_28] : memref<1x128xf32, #tpu.memory_space<vmem>>, vector<1x128xf32>
    %cst_29 = arith.constant dense<0.000000e+00> : vector<3xf32>
    %55 = vector.multi_reduction <add>, %52, %cst_29 [1] : vector<3x128xf32> to vector<3xf32>
    %56 = vector.shape_cast %55 : vector<3xf32> to vector<3x1xf32>
    %cst_30 = arith.constant 1.280000e+02 : f32
    %57 = vector.broadcast %cst_30 : f32 to vector<3x1xf32>
    %58 = arith.divf %56, %57 : vector<3x1xf32>
    %59 = vector.broadcast %58 : vector<3x1xf32> to vector<3x128xf32>
    %60 = arith.subf %52, %59 : vector<3x128xf32>
    %61 = arith.mulf %60, %60 : vector<3x128xf32>
    %cst_31 = arith.constant dense<0.000000e+00> : vector<3xf32>
    %62 = vector.multi_reduction <add>, %61, %cst_31 [1] : vector<3x128xf32> to vector<3xf32>
    %63 = vector.shape_cast %62 : vector<3xf32> to vector<3x1xf32>
    %cst_32 = arith.constant 1.280000e+02 : f32
    %64 = vector.broadcast %cst_32 : f32 to vector<3x1xf32>
    %65 = arith.divf %63, %64 : vector<3x1xf32>
    %66 = vector.broadcast %58 : vector<3x1xf32> to vector<3x128xf32>
    %67 = arith.subf %52, %66 : vector<3x128xf32>
    %cst_33 = arith.constant 9.99999974E-6 : f32
    %68 = vector.broadcast %cst_33 : f32 to vector<3x1xf32>
    %69 = arith.addf %65, %68 : vector<3x1xf32>
    %70 = math.rsqrt %69 : vector<3x1xf32>
    %71 = vector.broadcast %70 : vector<3x1xf32> to vector<3x128xf32>
    %72 = arith.mulf %67, %71 : vector<3x128xf32>
    %73 = vector.broadcast %53 : vector<1x128xf32> to vector<3x128xf32>
    %74 = arith.mulf %72, %73 : vector<3x128xf32>
    %75 = vector.broadcast %54 : vector<1x128xf32> to vector<3x128xf32>
    %76 = arith.addf %74, %75 : vector<3x128xf32>
    %c0_34 = arith.constant 0 : index
    %c0_35 = arith.constant 0 : index
    %77 = vector.load %arg21[%c0_34, %c0_35] : memref<128x128xf32, #tpu.memory_space<vmem>>, vector<128x128xf32>
    %cst_36 = arith.constant dense<0.000000e+00> : vector<3x128xf32>
    %78 = tpu.matmul %76, %77, %cst_36 {dimension_numbers = #tpu.dot_dimension_numbers<[1], [0], [0], [1], [0, 0, 1, 1], [], []>} : vector<3x128xf32>, vector<128x128xf32>, vector<3x128xf32> -> vector<3x128xf32>
    %c0_37 = arith.constant 0 : index
    %c0_38 = arith.constant 0 : index
    %79 = vector.load %arg22[%c0_37, %c0_38] : memref<1x128xf32, #tpu.memory_space<vmem>>, vector<1x128xf32>
    %80 = vector.broadcast %79 : vector<1x128xf32> to vector<3x128xf32>
    %81 = arith.addf %78, %80 : vector<3x128xf32>
    %82 = vector.broadcast %1 : f32 to vector<3x128xf32>
    %83 = arith.mulf %81, %82 : vector<3x128xf32>
    %c0_39 = arith.constant 0 : index
    %c0_40 = arith.constant 0 : index
    %c0_41 = arith.constant 0 : index
    %84 = vector.load %arg3[%c0_39, %c0_40, %c0_41] : memref<8x8x128xbf16, #tpu.memory_space<vmem>>, vector<8x8x128xbf16>
    %85 = arith.extf %84 : vector<8x8x128xbf16> to vector<8x8x128xf32>
    %86 = vector.shape_cast %85 : vector<8x8x128xf32> to vector<64x128xf32>
    %c0_42 = arith.constant 0 : index
    %c0_43 = arith.constant 0 : index
    %87 = vector.load %arg7[%c0_42, %c0_43] : memref<1x128xf32, #tpu.memory_space<vmem>>, vector<1x128xf32>
    %c0_44 = arith.constant 0 : index
    %c0_45 = arith.constant 0 : index
    %88 = vector.load %arg8[%c0_44, %c0_45] : memref<1x128xf32, #tpu.memory_space<vmem>>, vector<1x128xf32>
    %cst_46 = arith.constant dense<0.000000e+00> : vector<64xf32>
    %89 = vector.multi_reduction <add>, %86, %cst_46 [1] : vector<64x128xf32> to vector<64xf32>
    %90 = vector.shape_cast %89 : vector<64xf32> to vector<64x1xf32>
    %cst_47 = arith.constant 1.280000e+02 : f32
    %91 = vector.broadcast %cst_47 : f32 to vector<64x1xf32>
    %92 = arith.divf %90, %91 : vector<64x1xf32>
    %93 = vector.broadcast %92 : vector<64x1xf32> to vector<64x128xf32>
    %94 = arith.subf %86, %93 : vector<64x128xf32>
    %95 = arith.mulf %94, %94 : vector<64x128xf32>
    %cst_48 = arith.constant dense<0.000000e+00> : vector<64xf32>
    %96 = vector.multi_reduction <add>, %95, %cst_48 [1] : vector<64x128xf32> to vector<64xf32>
    %97 = vector.shape_cast %96 : vector<64xf32> to vector<64x1xf32>
    %cst_49 = arith.constant 1.280000e+02 : f32
    %98 = vector.broadcast %cst_49 : f32 to vector<64x1xf32>
    %99 = arith.divf %97, %98 : vector<64x1xf32>
    %100 = vector.broadcast %92 : vector<64x1xf32> to vector<64x128xf32>
    %101 = arith.subf %86, %100 : vector<64x128xf32>
    %cst_50 = arith.constant 9.99999974E-6 : f32
    %102 = vector.broadcast %cst_50 : f32 to vector<64x1xf32>
    %103 = arith.addf %99, %102 : vector<64x1xf32>
    %104 = math.rsqrt %103 : vector<64x1xf32>
    %105 = vector.broadcast %104 : vector<64x1xf32> to vector<64x128xf32>
    %106 = arith.mulf %101, %105 : vector<64x128xf32>
    %107 = vector.broadcast %87 : vector<1x128xf32> to vector<64x128xf32>
    %108 = arith.mulf %106, %107 : vector<64x128xf32>
    %109 = vector.broadcast %88 : vector<1x128xf32> to vector<64x128xf32>
    %110 = arith.addf %108, %109 : vector<64x128xf32>
    %111 = arith.truncf %110 : vector<64x128xf32> to vector<64x128xbf16>
    %c0_51 = arith.constant 0 : index
    %c0_52 = arith.constant 0 : index
    %112 = vector.load %arg23[%c0_51, %c0_52] : memref<128x256xbf16, #tpu.memory_space<vmem>>, vector<128x256xbf16>
    %cst_53 = arith.constant dense<0.000000e+00> : vector<64x256xf32>
    %113 = tpu.matmul %111, %112, %cst_53 {dimension_numbers = #tpu.dot_dimension_numbers<[1], [0], [0], [1], [0, 0, 1, 1], [], []>} : vector<64x128xbf16>, vector<128x256xbf16>, vector<64x256xf32> -> vector<64x256xf32>
    %c0_54 = arith.constant 0 : index
    %c0_55 = arith.constant 0 : index
    %114 = vector.load %arg24[%c0_54, %c0_55] : memref<1x256xf32, #tpu.memory_space<vmem>>, vector<1x256xf32>
    %115 = vector.broadcast %114 : vector<1x256xf32> to vector<64x256xf32>
    %116 = arith.addf %113, %115 : vector<64x256xf32>
    %117 = vector.extract_strided_slice %116 {offsets = [0, 0], sizes = [64, 128], strides = [1, 1]} : vector<64x256xf32> to vector<64x128xf32>
    %118 = arith.truncf %117 : vector<64x128xf32> to vector<64x128xbf16>
    %119 = vector.extract_strided_slice %116 {offsets = [0, 128], sizes = [64, 128], strides = [1, 1]} : vector<64x256xf32> to vector<64x128xf32>
    %120 = arith.truncf %119 : vector<64x128xf32> to vector<64x128xbf16>
    %121 = arith.truncf %83 : vector<3x128xf32> to vector<3x128xbf16>
    %cst_56 = arith.constant dense<0.000000e+00> : vector<3x64xf32>
    %122 = tpu.matmul %121, %118, %cst_56 {dimension_numbers = #tpu.dot_dimension_numbers<[1], [1], [0], [0], [0, 0, 1, 0], [], []>} : vector<3x128xbf16>, vector<64x128xbf16>, vector<3x64xf32> -> vector<3x64xf32>
    %c0_57 = arith.constant 0 : index
    %c0_58 = arith.constant 0 : index
    %123 = vector.load %arg1[%c0_57, %c0_58] : memref<24x3xf32, #tpu.memory_space<vmem>>, vector<24x3xf32>
    %cst_59 = arith.constant dense<0.000000e+00> : vector<24x64xf32>
    %124 = tpu.matmul %123, %122, %cst_59 {dimension_numbers = #tpu.dot_dimension_numbers<[1], [0], [0], [1], [0, 0, 1, 1], [], []>} : vector<24x3xf32>, vector<3x64xf32>, vector<24x64xf32> -> vector<24x64xf32>
    %c0_60 = arith.constant 0 : index
    %c0_61 = arith.constant 0 : index
    %125 = vector.load %arg2[%c0_60, %c0_61] : memref<24x64xf32, #tpu.memory_space<vmem>>, vector<24x64xf32>
    %126 = arith.addf %124, %125 : vector<24x64xf32>
    %cst_62 = arith.constant dense<0xFF800000> : vector<24xf32>
    %127 = vector.multi_reduction <maximumf>, %126, %cst_62 [1] : vector<24x64xf32> to vector<24xf32>
    %128 = vector.shape_cast %127 : vector<24xf32> to vector<24x1xf32>
    %129 = vector.broadcast %128 : vector<24x1xf32> to vector<24x64xf32>
    %130 = arith.subf %126, %129 : vector<24x64xf32>
    %131 = math.exp %130 : vector<24x64xf32>
    %cst_63 = arith.constant dense<0.000000e+00> : vector<24xf32>
    %132 = vector.multi_reduction <add>, %131, %cst_63 [1] : vector<24x64xf32> to vector<24xf32>
    %133 = vector.shape_cast %132 : vector<24xf32> to vector<24x1xf32>
    %134 = tpu.reciprocal %133 {approx = true} : vector<24x1xf32> -> vector<24x1xf32>
    %135 = vector.broadcast %134 : vector<24x1xf32> to vector<24x64xf32>
    %136 = arith.mulf %131, %135 : vector<24x64xf32>
    %137 = arith.truncf %136 : vector<24x64xf32> to vector<24x64xbf16>
    %cst_64 = arith.constant dense<0.000000e+00> : vector<24x128xf32>
    %138 = tpu.matmul %137, %120, %cst_64 {dimension_numbers = #tpu.dot_dimension_numbers<[1], [0], [0], [1], [0, 0, 1, 1], [], []>} : vector<24x64xbf16>, vector<64x128xbf16>, vector<24x128xf32> -> vector<24x128xf32>
    %139 = arith.truncf %138 : vector<24x128xf32> to vector<24x128xbf16>
    %c0_65 = arith.constant 0 : index
    %c0_66 = arith.constant 0 : index
    %140 = vector.load %arg25[%c0_65, %c0_66] : memref<128x128xbf16, #tpu.memory_space<vmem>>, vector<128x128xbf16>
    %cst_67 = arith.constant dense<0.000000e+00> : vector<24x128xf32>
    %141 = tpu.matmul %139, %140, %cst_67 {dimension_numbers = #tpu.dot_dimension_numbers<[1], [0], [0], [1], [0, 0, 1, 1], [], []>} : vector<24x128xbf16>, vector<128x128xbf16>, vector<24x128xf32> -> vector<24x128xf32>
    %c0_68 = arith.constant 0 : index
    %c0_69 = arith.constant 0 : index
    %142 = vector.load %arg26[%c0_68, %c0_69] : memref<1x128xf32, #tpu.memory_space<vmem>>, vector<1x128xf32>
    %143 = vector.broadcast %142 : vector<1x128xf32> to vector<24x128xf32>
    %144 = arith.addf %141, %143 : vector<24x128xf32>
    %cst_70 = arith.constant dense<0.000000e+00> : vector<24x128xf32>
    %145 = tpu.matmul %123, %76, %cst_70 {dimension_numbers = #tpu.dot_dimension_numbers<[1], [0], [0], [1], [0, 0, 1, 1], [], []>} : vector<24x3xf32>, vector<3x128xf32>, vector<24x128xf32> -> vector<24x128xf32>
    %146 = arith.addf %145, %144 : vector<24x128xf32>
    %c0_71 = arith.constant 0 : index
    %c0_72 = arith.constant 0 : index
    %147 = vector.load %arg11[%c0_71, %c0_72] : memref<1x128xf32, #tpu.memory_space<vmem>>, vector<1x128xf32>
    %c0_73 = arith.constant 0 : index
    %c0_74 = arith.constant 0 : index
    %148 = vector.load %arg12[%c0_73, %c0_74] : memref<1x128xf32, #tpu.memory_space<vmem>>, vector<1x128xf32>
    %cst_75 = arith.constant dense<0.000000e+00> : vector<24xf32>
    %149 = vector.multi_reduction <add>, %146, %cst_75 [1] : vector<24x128xf32> to vector<24xf32>
    %150 = vector.shape_cast %149 : vector<24xf32> to vector<24x1xf32>
    %cst_76 = arith.constant 1.280000e+02 : f32
    %151 = vector.broadcast %cst_76 : f32 to vector<24x1xf32>
    %152 = arith.divf %150, %151 : vector<24x1xf32>
    %153 = vector.broadcast %152 : vector<24x1xf32> to vector<24x128xf32>
    %154 = arith.subf %146, %153 : vector<24x128xf32>
    %155 = arith.mulf %154, %154 : vector<24x128xf32>
    %cst_77 = arith.constant dense<0.000000e+00> : vector<24xf32>
    %156 = vector.multi_reduction <add>, %155, %cst_77 [1] : vector<24x128xf32> to vector<24xf32>
    %157 = vector.shape_cast %156 : vector<24xf32> to vector<24x1xf32>
    %cst_78 = arith.constant 1.280000e+02 : f32
    %158 = vector.broadcast %cst_78 : f32 to vector<24x1xf32>
    %159 = arith.divf %157, %158 : vector<24x1xf32>
    %160 = vector.broadcast %152 : vector<24x1xf32> to vector<24x128xf32>
    %161 = arith.subf %146, %160 : vector<24x128xf32>
    %cst_79 = arith.constant 9.99999974E-6 : f32
    %162 = vector.broadcast %cst_79 : f32 to vector<24x1xf32>
    %163 = arith.addf %159, %162 : vector<24x1xf32>
    %164 = math.rsqrt %163 : vector<24x1xf32>
    %165 = vector.broadcast %164 : vector<24x1xf32> to vector<24x128xf32>
    %166 = arith.mulf %161, %165 : vector<24x128xf32>
    %167 = vector.broadcast %147 : vector<1x128xf32> to vector<24x128xf32>
    %168 = arith.mulf %166, %167 : vector<24x128xf32>
    %169 = vector.broadcast %148 : vector<1x128xf32> to vector<24x128xf32>
    %170 = arith.addf %168, %169 : vector<24x128xf32>
    %171 = arith.truncf %170 : vector<24x128xf32> to vector<24x128xbf16>
    %c0_80 = arith.constant 0 : index
    %c0_81 = arith.constant 0 : index
    %172 = vector.load %arg27[%c0_80, %c0_81] : memref<128x128xbf16, #tpu.memory_space<vmem>>, vector<128x128xbf16>
    %cst_82 = arith.constant dense<0.000000e+00> : vector<24x128xf32>
    %173 = tpu.matmul %171, %172, %cst_82 {dimension_numbers = #tpu.dot_dimension_numbers<[1], [0], [0], [1], [0, 0, 1, 1], [], []>} : vector<24x128xbf16>, vector<128x128xbf16>, vector<24x128xf32> -> vector<24x128xf32>
    %c0_83 = arith.constant 0 : index
    %c0_84 = arith.constant 0 : index
    %174 = vector.load %arg28[%c0_83, %c0_84] : memref<1x128xf32, #tpu.memory_space<vmem>>, vector<1x128xf32>
    %175 = vector.broadcast %174 : vector<1x128xf32> to vector<24x128xf32>
    %176 = arith.addf %173, %175 : vector<24x128xf32>
    %cst_85 = arith.constant 0.000000e+00 : f32
    %177 = vector.broadcast %cst_85 : f32 to vector<24x128xf32>
    %178 = arith.maximumf %176, %177 : vector<24x128xf32>
    %179 = arith.truncf %178 : vector<24x128xf32> to vector<24x128xbf16>
    %c0_86 = arith.constant 0 : index
    %c0_87 = arith.constant 0 : index
    %180 = vector.load %arg29[%c0_86, %c0_87] : memref<128x128xbf16, #tpu.memory_space<vmem>>, vector<128x128xbf16>
    %cst_88 = arith.constant dense<0.000000e+00> : vector<24x128xf32>
    %181 = tpu.matmul %179, %180, %cst_88 {dimension_numbers = #tpu.dot_dimension_numbers<[1], [0], [0], [1], [0, 0, 1, 1], [], []>} : vector<24x128xbf16>, vector<128x128xbf16>, vector<24x128xf32> -> vector<24x128xf32>
    %c0_89 = arith.constant 0 : index
    %c0_90 = arith.constant 0 : index
    %182 = vector.load %arg30[%c0_89, %c0_90] : memref<1x128xf32, #tpu.memory_space<vmem>>, vector<1x128xf32>
    %183 = vector.broadcast %182 : vector<1x128xf32> to vector<24x128xf32>
    %184 = arith.addf %181, %183 : vector<24x128xf32>
    %185 = arith.addf %170, %184 : vector<24x128xf32>
    %c0_91 = arith.constant 0 : index
    %c0_92 = arith.constant 0 : index
    %186 = vector.load %arg13[%c0_91, %c0_92] : memref<1x128xf32, #tpu.memory_space<vmem>>, vector<1x128xf32>
    %c0_93 = arith.constant 0 : index
    %c0_94 = arith.constant 0 : index
    %187 = vector.load %arg14[%c0_93, %c0_94] : memref<1x128xf32, #tpu.memory_space<vmem>>, vector<1x128xf32>
    %cst_95 = arith.constant dense<0.000000e+00> : vector<24xf32>
    %188 = vector.multi_reduction <add>, %185, %cst_95 [1] : vector<24x128xf32> to vector<24xf32>
    %189 = vector.shape_cast %188 : vector<24xf32> to vector<24x1xf32>
    %cst_96 = arith.constant 1.280000e+02 : f32
    %190 = vector.broadcast %cst_96 : f32 to vector<24x1xf32>
    %191 = arith.divf %189, %190 : vector<24x1xf32>
    %192 = vector.broadcast %191 : vector<24x1xf32> to vector<24x128xf32>
    %193 = arith.subf %185, %192 : vector<24x128xf32>
    %194 = arith.mulf %193, %193 : vector<24x128xf32>
    %cst_97 = arith.constant dense<0.000000e+00> : vector<24xf32>
    %195 = vector.multi_reduction <add>, %194, %cst_97 [1] : vector<24x128xf32> to vector<24xf32>
    %196 = vector.shape_cast %195 : vector<24xf32> to vector<24x1xf32>
    %cst_98 = arith.constant 1.280000e+02 : f32
    %197 = vector.broadcast %cst_98 : f32 to vector<24x1xf32>
    %198 = arith.divf %196, %197 : vector<24x1xf32>
    %199 = vector.broadcast %191 : vector<24x1xf32> to vector<24x128xf32>
    %200 = arith.subf %185, %199 : vector<24x128xf32>
    %cst_99 = arith.constant 9.99999974E-6 : f32
    %201 = vector.broadcast %cst_99 : f32 to vector<24x1xf32>
    %202 = arith.addf %198, %201 : vector<24x1xf32>
    %203 = math.rsqrt %202 : vector<24x1xf32>
    %204 = vector.broadcast %203 : vector<24x1xf32> to vector<24x128xf32>
    %205 = arith.mulf %200, %204 : vector<24x128xf32>
    %206 = vector.broadcast %186 : vector<1x128xf32> to vector<24x128xf32>
    %207 = arith.mulf %205, %206 : vector<24x128xf32>
    %208 = vector.broadcast %187 : vector<1x128xf32> to vector<24x128xf32>
    %209 = arith.addf %207, %208 : vector<24x128xf32>
    %c0_100 = arith.constant 0 : index
    %c0_101 = arith.constant 0 : index
    %210 = vector.load %arg15[%c0_100, %c0_101] : memref<1x128xf32, #tpu.memory_space<vmem>>, vector<1x128xf32>
    %c0_102 = arith.constant 0 : index
    %c0_103 = arith.constant 0 : index
    %211 = vector.load %arg16[%c0_102, %c0_103] : memref<1x128xf32, #tpu.memory_space<vmem>>, vector<1x128xf32>
    %cst_104 = arith.constant dense<0.000000e+00> : vector<24xf32>
    %212 = vector.multi_reduction <add>, %209, %cst_104 [1] : vector<24x128xf32> to vector<24xf32>
    %213 = vector.shape_cast %212 : vector<24xf32> to vector<24x1xf32>
    %cst_105 = arith.constant 1.280000e+02 : f32
    %214 = vector.broadcast %cst_105 : f32 to vector<24x1xf32>
    %215 = arith.divf %213, %214 : vector<24x1xf32>
    %216 = vector.broadcast %215 : vector<24x1xf32> to vector<24x128xf32>
    %217 = arith.subf %209, %216 : vector<24x128xf32>
    %218 = arith.mulf %217, %217 : vector<24x128xf32>
    %cst_106 = arith.constant dense<0.000000e+00> : vector<24xf32>
    %219 = vector.multi_reduction <add>, %218, %cst_106 [1] : vector<24x128xf32> to vector<24xf32>
    %220 = vector.shape_cast %219 : vector<24xf32> to vector<24x1xf32>
    %cst_107 = arith.constant 1.280000e+02 : f32
    %221 = vector.broadcast %cst_107 : f32 to vector<24x1xf32>
    %222 = arith.divf %220, %221 : vector<24x1xf32>
    %223 = vector.broadcast %215 : vector<24x1xf32> to vector<24x128xf32>
    %224 = arith.subf %209, %223 : vector<24x128xf32>
    %cst_108 = arith.constant 9.99999974E-6 : f32
    %225 = vector.broadcast %cst_108 : f32 to vector<24x1xf32>
    %226 = arith.addf %222, %225 : vector<24x1xf32>
    %227 = math.rsqrt %226 : vector<24x1xf32>
    %228 = vector.broadcast %227 : vector<24x1xf32> to vector<24x128xf32>
    %229 = arith.mulf %224, %228 : vector<24x128xf32>
    %230 = vector.broadcast %210 : vector<1x128xf32> to vector<24x128xf32>
    %231 = arith.mulf %229, %230 : vector<24x128xf32>
    %232 = vector.broadcast %211 : vector<1x128xf32> to vector<24x128xf32>
    %233 = arith.addf %231, %232 : vector<24x128xf32>
    %c0_109 = arith.constant 0 : index
    %c0_110 = arith.constant 0 : index
    %c0_111 = arith.constant 0 : index
    %234 = vector.load %arg31[%c0_109, %c0_110, %c0_111] : memref<1x24x128xf32, #tpu.memory_space<vmem>>, vector<1x24x128xf32>
    %235 = vector.shape_cast %234 : vector<1x24x128xf32> to vector<24x128xf32>
    %236 = vector.shape_cast %233 : vector<24x128xf32> to vector<1x24x128xf32>
    tpu.vector_store %arg31[%c0_109, %c0_110, %c0_111], %236 {strides = array<i32>} : memref<1x24x128xf32, #tpu.memory_space<vmem>>, vector<1x24x128xf32>,
    return
  }
  func.func @transform_0(%arg0: i32) -> (i32, i32) {
    %c0_i32 = arith.constant 0 : i32
    %c0_i32_0 = arith.constant 0 : i32
    %c0_i32_1 = arith.constant 0 : i32
    return %c0_i32, %c0_i32_0 : i32, i32
  }
  func.func @transform_1(%arg0: i32) -> (i32, i32) {
    %c0_i32 = arith.constant 0 : i32
    %c0_i32_0 = arith.constant 0 : i32
    %c0_i32_1 = arith.constant 0 : i32
    return %c0_i32, %c0_i32_0 : i32, i32
  }
  func.func @transform_2(%arg0: i32) -> (i32, i32, i32) {
    %c0_i32 = arith.constant 0 : i32
    %c0_i32_0 = arith.constant 0 : i32
    %c0_i32_1 = arith.constant 0 : i32
    return %arg0, %c0_i32, %c0_i32_0 : i32, i32, i32
  }
  func.func @transform_3(%arg0: i32) -> (i32, i32) {
    %c0_i32 = arith.constant 0 : i32
    %c0_i32_0 = arith.constant 0 : i32
    %c0_i32_1 = arith.constant 0 : i32
    return %c0_i32, %c0_i32_0 : i32, i32
  }
  func.func @transform_4(%arg0: i32) -> (i32, i32) {
    %c0_i32 = arith.constant 0 : i32
    %c0_i32_0 = arith.constant 0 : i32
    %c0_i32_1 = arith.constant 0 : i32
    return %c0_i32, %c0_i32_0 : i32, i32
  }
  func.func @transform_5(%arg0: i32) -> (i32, i32) {
    %c0_i32 = arith.constant 0 : i32
    %c0_i32_0 = arith.constant 0 : i32
    %c0_i32_1 = arith.constant 0 : i32
    return %c0_i32, %c0_i32_0 : i32, i32
  }
  func.func @transform_6(%arg0: i32) -> (i32, i32) {
    %c0_i32 = arith.constant 0 : i32
    %c0_i32_0 = arith.constant 0 : i32
    %c0_i32_1 = arith.constant 0 : i32
    return %c0_i32, %c0_i32_0 : i32, i32
  }
  func.func @transform_7(%arg0: i32) -> (i32, i32) {
    %c0_i32 = arith.constant 0 : i32
    %c0_i32_0 = arith.constant 0 : i32
    %c0_i32_1 = arith.constant 0 : i32
    return %c0_i32, %c0_i32_0 : i32, i32
  }
  func.func @transform_8(%arg0: i32) -> (i32, i32) {
    %c0_i32 = arith.constant 0 : i32
    %c0_i32_0 = arith.constant 0 : i32
    %c0_i32_1 = arith.constant 0 : i32
    return %c0_i32, %c0_i32_0 : i32, i32
  }
  func.func @transform_9(%arg0: i32) -> (i32, i32) {
    %c0_i32 = arith.constant 0 : i32
    %c0_i32_0 = arith.constant 0 : i32
    %c0_i32_1 = arith.constant 0 : i32
    return %c0_i32, %c0_i32_0 : i32, i32
  }
  func.func @transform_10(%arg0: i32) -> (i32, i32) {
    %c0_i32 = arith.constant 0 : i32
    %c0_i32_0 = arith.constant 0 : i32
    %c0_i32_1 = arith.constant 0 : i32
    return %c0_i32, %c0_i32_0 : i32, i32
  }
  func.func @transform_11(%arg0: i32) -> (i32, i32) {
    %c0_i32 = arith.constant 0 : i32
    %c0_i32_0 = arith.constant 0 : i32
    %c0_i32_1 = arith.constant 0 : i32
    return %c0_i32, %c0_i32_0 : i32, i32
  }
  func.func @transform_12(%arg0: i32) -> (i32, i32) {
    %c0_i32 = arith.constant 0 : i32
    %c0_i32_0 = arith.constant 0 : i32
    %c0_i32_1 = arith.constant 0 : i32
    return %c0_i32, %c0_i32_0 : i32, i32
  }
  func.func @transform_13(%arg0: i32) -> (i32, i32) {
    %c0_i32 = arith.constant 0 : i32
    %c0_i32_0 = arith.constant 0 : i32
    %c0_i32_1 = arith.constant 0 : i32
    return %c0_i32, %c0_i32_0 : i32, i32
  }
  func.func @transform_14(%arg0: i32) -> (i32, i32) {
    %c0_i32 = arith.constant 0 : i32
    %c0_i32_0 = arith.constant 0 : i32
    %c0_i32_1 = arith.constant 0 : i32
    return %c0_i32, %c0_i32_0 : i32, i32
  }
  func.func @transform_15(%arg0: i32) -> (i32, i32) {
    %c0_i32 = arith.constant 0 : i32
    %c0_i32_0 = arith.constant 0 : i32
    %c0_i32_1 = arith.constant 0 : i32
    return %c0_i32, %c0_i32_0 : i32, i32
  }
  func.func @transform_16(%arg0: i32) -> (i32, i32) {
    %c0_i32 = arith.constant 0 : i32
    %c0_i32_0 = arith.constant 0 : i32
    %c0_i32_1 = arith.constant 0 : i32
    return %c0_i32, %c0_i32_0 : i32, i32
  }
  func.func @transform_17(%arg0: i32) -> (i32, i32) {
    %c0_i32 = arith.constant 0 : i32
    %c0_i32_0 = arith.constant 0 : i32
    %c0_i32_1 = arith.constant 0 : i32
    return %c0_i32, %c0_i32_0 : i32, i32
  }
  func.func @transform_18(%arg0: i32) -> (i32, i32) {
    %c0_i32 = arith.constant 0 : i32
    %c0_i32_0 = arith.constant 0 : i32
    %c0_i32_1 = arith.constant 0 : i32
    return %c0_i32, %c0_i32_0 : i32, i32
  }
  func.func @transform_19(%arg0: i32) -> (i32, i32) {
    %c0_i32 = arith.constant 0 : i32
    %c0_i32_0 = arith.constant 0 : i32
    %c0_i32_1 = arith.constant 0 : i32
    return %c0_i32, %c0_i32_0 : i32, i32
  }
  func.func @transform_20(%arg0: i32) -> (i32, i32) {
    %c0_i32 = arith.constant 0 : i32
    %c0_i32_0 = arith.constant 0 : i32
    %c0_i32_1 = arith.constant 0 : i32
    return %c0_i32, %c0_i32_0 : i32, i32
  }
  func.func @transform_21(%arg0: i32) -> (i32, i32) {
    %c0_i32 = arith.constant 0 : i32
    %c0_i32_0 = arith.constant 0 : i32
    %c0_i32_1 = arith.constant 0 : i32
    return %c0_i32, %c0_i32_0 : i32, i32
  }
  func.func @transform_22(%arg0: i32) -> (i32, i32) {
    %c0_i32 = arith.constant 0 : i32
    %c0_i32_0 = arith.constant 0 : i32
    %c0_i32_1 = arith.constant 0 : i32
    return %c0_i32, %c0_i32_0 : i32, i32
  }
  func.func @transform_23(%arg0: i32) -> (i32, i32) {
    %c0_i32 = arith.constant 0 : i32
    %c0_i32_0 = arith.constant 0 : i32
    %c0_i32_1 = arith.constant 0 : i32
    return %c0_i32, %c0_i32_0 : i32, i32
  }
  func.func @transform_24(%arg0: i32) -> (i32, i32) {
    %c0_i32 = arith.constant 0 : i32
    %c0_i32_0 = arith.constant 0 : i32
    %c0_i32_1 = arith.constant 0 : i32
    return %c0_i32, %c0_i32_0 : i32, i32
  }
  func.func @transform_25(%arg0: i32) -> (i32, i32) {
    %c0_i32 = arith.constant 0 : i32
    %c0_i32_0 = arith.constant 0 : i32
    %c0_i32_1 = arith.constant 0 : i32
    return %c0_i32, %c0_i32_0 : i32, i32
  }
  func.func @transform_26(%arg0: i32) -> (i32, i32) {
    %c0_i32 = arith.constant 0 : i32
    %c0_i32_0 = arith.constant 0 : i32
    %c0_i32_1 = arith.constant 0 : i32
    return %c0_i32, %c0_i32_0 : i32, i32
  }
  func.func @transform_27(%arg0: i32) -> (i32, i32) {
    %c0_i32 = arith.constant 0 : i32
    %c0_i32_0 = arith.constant 0 : i32
    %c0_i32_1 = arith.constant 0 : i32
    return %c0_i32, %c0_i32_0 : i32, i32
  }
  func.func @transform_28(%arg0: i32) -> (i32, i32) {
    %c0_i32 = arith.constant 0 : i32
    %c0_i32_0 = arith.constant 0 : i32
    %c0_i32_1 = arith.constant 0 : i32
    return %c0_i32, %c0_i32_0 : i32, i32
  }
  func.func @transform_29(%arg0: i32) -> (i32, i32) {
    %c0_i32 = arith.constant 0 : i32
    %c0_i32_0 = arith.constant 0 : i32
    %c0_i32_1 = arith.constant 0 : i32
    return %c0_i32, %c0_i32_0 : i32, i32
  }
  func.func @transform_30(%arg0: i32) -> (i32, i32, i32) {
    %c0_i32 = arith.constant 0 : i32
    %c0_i32_0 = arith.constant 0 : i32
    %c0_i32_1 = arith.constant 0 : i32
    return %arg0, %c0_i32, %c0_i32_0 : i32, i32, i32
  }
}

module attributes {stable_mosaic.version = 11 : i64} {
  func.func @event_decoder_kernel(%arg0: i32, %arg1: memref<24x3xf32, #tpu.memory_space<vmem>>, %arg2: memref<24x64xf32, #tpu.memory_space<vmem>>, %arg3: memref<8x8x128xbf16, #tpu.memory_space<vmem>>, %arg4: memref<3x128xf32, #tpu.memory_space<vmem>>, %arg5: memref<1x128xf32, #tpu.memory_space<vmem>>, %arg6: memref<1x128xf32, #tpu.memory_space<vmem>>, %arg7: memref<1x128xf32, #tpu.memory_space<vmem>>, %arg8: memref<1x128xf32, #tpu.memory_space<vmem>>, %arg9: memref<1x128xf32, #tpu.memory_space<vmem>>, %arg10: memref<1x128xf32, #tpu.memory_space<vmem>>, %arg11: memref<1x128xf32, #tpu.memory_space<vmem>>, %arg12: memref<1x128xf32, #tpu.memory_space<vmem>>, %arg13: memref<1x128xf32, #tpu.memory_space<vmem>>, %arg14: memref<1x128xf32, #tpu.memory_space<vmem>>, %arg15: memref<1x128xf32, #tpu.memory_space<vmem>>, %arg16: memref<1x128xf32, #tpu.memory_space<vmem>>, %arg17: memref<128x384xf32, #tpu.memory_space<vmem>>, %arg18: memref<1x384xf32, #tpu.memory_space<vmem>>, %arg19: memref<128x128xf32, #tpu.memory_space<vmem>>, %arg20: memref<1x128xf32, #tpu.memory_space<vmem>>, %arg21: memref<128x128xf32, #tpu.memory_space<vmem>>, %arg22: memref<1x128xf32, #tpu.memory_space<vmem>>, %arg23: memref<128x256xbf16, #tpu.memory_space<vmem>>, %arg24: memref<1x256xf32, #tpu.memory_space<vmem>>, %arg25: memref<128x128xbf16, #tpu.memory_space<vmem>>, %arg26: memref<1x128xf32, #tpu.memory_space<vmem>>, %arg27: memref<128x128xbf16, #tpu.memory_space<vmem>>, %arg28: memref<1x128xf32, #tpu.memory_space<vmem>>, %arg29: memref<128x128xbf16, #tpu.memory_space<vmem>>, %arg30: memref<1x128xf32, #tpu.memory_space<vmem>>, %arg31: memref<1x24x128xf32, #tpu.memory_space<vmem>>) attributes {dimension_semantics = [#tpu.dimension_semantics<parallel>], iteration_bounds = array<i64: 2>, scalar_prefetch = 0 : i64, scratch_operands = 0 : i64, tpu.core_type = #tpu.core_type<tc>, window_params = [{pipeline_mode = #tpu.pipeline_mode<synchronous>, transform_indices = @transform_0, window_bounds = array<i64: 24, 3>}, {pipeline_mode = #tpu.pipeline_mode<synchronous>, transform_indices = @transform_1, window_bounds = array<i64: 24, 64>}, {transform_indices = @transform_2, window_bounds = array<i64: 8, 8, 128>}, {pipeline_mode = #tpu.pipeline_mode<synchronous>, transform_indices = @transform_3, window_bounds = array<i64: 3, 128>}, {pipeline_mode = #tpu.pipeline_mode<synchronous>, transform_indices = @transform_4, window_bounds = array<i64: 1, 128>}, {pipeline_mode = #tpu.pipeline_mode<synchronous>, transform_indices = @transform_5, window_bounds = array<i64: 1, 128>}, {pipeline_mode = #tpu.pipeline_mode<synchronous>, transform_indices = @transform_6, window_bounds = array<i64: 1, 128>}, {pipeline_mode = #tpu.pipeline_mode<synchronous>, transform_indices = @transform_7, window_bounds = array<i64: 1, 128>}, {pipeline_mode = #tpu.pipeline_mode<synchronous>, transform_indices = @transform_8, window_bounds = array<i64: 1, 128>}, {pipeline_mode = #tpu.pipeline_mode<synchronous>, transform_indices = @transform_9, window_bounds = array<i64: 1, 128>}, {pipeline_mode = #tpu.pipeline_mode<synchronous>, transform_indices = @transform_10, window_bounds = array<i64: 1, 128>}, {pipeline_mode = #tpu.pipeline_mode<synchronous>, transform_indices = @transform_11, window_bounds = array<i64: 1, 128>}, {pipeline_mode = #tpu.pipeline_mode<synchronous>, transform_indices = @transform_12, window_bounds = array<i64: 1, 128>}, {pipeline_mode = #tpu.pipeline_mode<synchronous>, transform_indices = @transform_13, window_bounds = array<i64: 1, 128>}, {pipeline_mode = #tpu.pipeline_mode<synchronous>, transform_indices = @transform_14, window_bounds = array<i64: 1, 128>}, {pipeline_mode = #tpu.pipeline_mode<synchronous>, transform_indices = @transform_15, window_bounds = array<i64: 1, 128>}, {pipeline_mode = #tpu.pipeline_mode<synchronous>, transform_indices = @transform_16, window_bounds = array<i64: 128, 384>}, {pipeline_mode = #tpu.pipeline_mode<synchronous>, transform_indices = @transform_17, window_bounds = array<i64: 1, 384>}, {pipeline_mode = #tpu.pipeline_mode<synchronous>, transform_indices = @transform_18, window_bounds = array<i64: 128, 128>}, {pipeline_mode = #tpu.pipeline_mode<synchronous>, transform_indices = @transform_19, window_bounds = array<i64: 1, 128>}, {pipeline_mode = #tpu.pipeline_mode<synchronous>, transform_indices = @transform_20, window_bounds = array<i64: 128, 128>}, {pipeline_mode = #tpu.pipeline_mode<synchronous>, transform_indices = @transform_21, window_bounds = array<i64: 1, 128>}, {pipeline_mode = #tpu.pipeline_mode<synchronous>, transform_indices = @transform_22, window_bounds = array<i64: 128, 256>}, {pipeline_mode = #tpu.pipeline_mode<synchronous>, transform_indices = @transform_23, window_bounds = array<i64: 1, 256>}, {pipeline_mode = #tpu.pipeline_mode<synchronous>, transform_indices = @transform_24, window_bounds = array<i64: 128, 128>}, {pipeline_mode = #tpu.pipeline_mode<synchronous>, transform_indices = @transform_25, window_bounds = array<i64: 1, 128>}, {pipeline_mode = #tpu.pipeline_mode<synchronous>, transform_indices = @transform_26, window_bounds = array<i64: 128, 128>}, {pipeline_mode = #tpu.pipeline_mode<synchronous>, transform_indices = @transform_27, window_bounds = array<i64: 1, 128>}, {pipeline_mode = #tpu.pipeline_mode<synchronous>, transform_indices = @transform_28, window_bounds = array<i64: 128, 128>}, {pipeline_mode = #tpu.pipeline_mode<synchronous>, transform_indices = @transform_29, window_bounds = array<i64: 1, 128>}, {transform_indices = @transform_30, window_bounds = array<i64: 1, 24, 128>}]} {
    %cst = arith.constant 1.280000e+02 : f32
    %0 = math.sqrt %cst : f32
    %cst_0 = arith.constant 1.000000e+00 : f32
    %1 = arith.divf %cst_0, %0 : f32
    %c0 = arith.constant 0 : index
    %c0_1 = arith.constant 0 : index
    %2 = vector.load %arg4[%c0, %c0_1] : memref<3x128xf32, #tpu.memory_space<vmem>>, vector<3x128xf32>
    %c0_2 = arith.constant 0 : index
    %c0_3 = arith.constant 0 : index
    %3 = vector.load %arg5[%c0_2, %c0_3] : memref<1x128xf32, #tpu.memory_space<vmem>>, vector<1x128xf32>
    %c0_4 = arith.constant 0 : index
    %c0_5 = arith.constant 0 : index
    %4 = vector.load %arg6[%c0_4, %c0_5] : memref<1x128xf32, #tpu.memory_space<vmem>>, vector<1x128xf32>
    %cst_6 = arith.constant dense<0.000000e+00> : vector<3xf32>
    %5 = vector.multi_reduction <add>, %2, %cst_6 [1] : vector<3x128xf32> to vector<3xf32>
    %6 = vector.shape_cast %5 : vector<3xf32> to vector<3x1xf32>
    %cst_7 = arith.constant 1.280000e+02 : f32
    %7 = vector.broadcast %cst_7 : f32 to vector<3x1xf32>
    %8 = arith.divf %6, %7 : vector<3x1xf32>
    %9 = vector.broadcast %8 : vector<3x1xf32> to vector<3x128xf32>
    %10 = arith.subf %2, %9 : vector<3x128xf32>
    %11 = arith.mulf %10, %10 : vector<3x128xf32>
    %cst_8 = arith.constant dense<0.000000e+00> : vector<3xf32>
    %12 = vector.multi_reduction <add>, %11, %cst_8 [1] : vector<3x128xf32> to vector<3xf32>
    %13 = vector.shape_cast %12 : vector<3xf32> to vector<3x1xf32>
    %cst_9 = arith.constant 1.280000e+02 : f32
    %14 = vector.broadcast %cst_9 : f32 to vector<3x1xf32>
    %15 = arith.divf %13, %14 : vector<3x1xf32>
    %16 = vector.broadcast %8 : vector<3x1xf32> to vector<3x128xf32>
    %17 = arith.subf %2, %16 : vector<3x128xf32>
    %cst_10 = arith.constant 9.99999974E-6 : f32
    %18 = vector.broadcast %cst_10 : f32 to vector<3x1xf32>
    %19 = arith.addf %15, %18 : vector<3x1xf32>
    %20 = math.rsqrt %19 : vector<3x1xf32>
    %21 = vector.broadcast %20 : vector<3x1xf32> to vector<3x128xf32>
    %22 = arith.mulf %17, %21 : vector<3x128xf32>
    %23 = vector.broadcast %3 : vector<1x128xf32> to vector<3x128xf32>
    %24 = arith.mulf %22, %23 : vector<3x128xf32>
    %25 = vector.broadcast %4 : vector<1x128xf32> to vector<3x128xf32>
    %26 = arith.addf %24, %25 : vector<3x128xf32>
    %c0_11 = arith.constant 0 : index
    %c0_12 = arith.constant 0 : index
    %27 = vector.load %arg17[%c0_11, %c0_12] : memref<128x384xf32, #tpu.memory_space<vmem>>, vector<128x384xf32>
    %cst_13 = arith.constant dense<0.000000e+00> : vector<3x384xf32>
    %28 = tpu.matmul %26, %27, %cst_13 {dimension_numbers = #tpu.dot_dimension_numbers<[1], [0], [0], [1], [0, 0, 1, 1], [], []>} : vector<3x128xf32>, vector<128x384xf32>, vector<3x384xf32> -> vector<3x384xf32>
    %c0_14 = arith.constant 0 : index
    %c0_15 = arith.constant 0 : index
    %29 = vector.load %arg18[%c0_14, %c0_15] : memref<1x384xf32, #tpu.memory_space<vmem>>, vector<1x384xf32>
    %30 = vector.broadcast %29 : vector<1x384xf32> to vector<3x384xf32>
    %31 = arith.addf %28, %30 : vector<3x384xf32>
    %32 = vector.extract_strided_slice %31 {offsets = [0, 0], sizes = [3, 128], strides = [1, 1]} : vector<3x384xf32> to vector<3x128xf32>
    %33 = vector.extract_strided_slice %31 {offsets = [0, 128], sizes = [3, 128], strides = [1, 1]} : vector<3x384xf32> to vector<3x128xf32>
    %34 = vector.extract_strided_slice %31 {offsets = [0, 256], sizes = [3, 128], strides = [1, 1]} : vector<3x384xf32> to vector<3x128xf32>
    %35 = vector.broadcast %1 : f32 to vector<3x128xf32>
    %36 = arith.mulf %32, %35 : vector<3x128xf32>
    %cst_16 = arith.constant dense<0.000000e+00> : vector<3x3xf32>
    %37 = tpu.matmul %36, %33, %cst_16 {dimension_numbers = #tpu.dot_dimension_numbers<[1], [1], [0], [0], [0, 0, 1, 0], [], []>} : vector<3x128xf32>, vector<3x128xf32>, vector<3x3xf32> -> vector<3x3xf32>
    %cst_17 = arith.constant dense<0xFF800000> : vector<3xf32>
    %38 = vector.multi_reduction <maximumf>, %37, %cst_17 [1] : vector<3x3xf32> to vector<3xf32>
    %39 = vector.shape_cast %38 : vector<3xf32> to vector<3x1xf32>
    %40 = vector.broadcast %39 : vector<3x1xf32> to vector<3x3xf32>
    %41 = arith.subf %37, %40 : vector<3x3xf32>
    %42 = math.exp %41 : vector<3x3xf32>
    %cst_18 = arith.constant dense<0.000000e+00> : vector<3xf32>
    %43 = vector.multi_reduction <add>, %42, %cst_18 [1] : vector<3x3xf32> to vector<3xf32>
    %44 = vector.shape_cast %43 : vector<3xf32> to vector<3x1xf32>
    %45 = vector.broadcast %44 : vector<3x1xf32> to vector<3x3xf32>
    %46 = arith.divf %42, %45 : vector<3x3xf32>
    %cst_19 = arith.constant dense<0.000000e+00> : vector<3x128xf32>
    %47 = tpu.matmul %46, %34, %cst_19 {dimension_numbers = #tpu.dot_dimension_numbers<[1], [0], [0], [1], [0, 0, 1, 1], [], []>} : vector<3x3xf32>, vector<3x128xf32>, vector<3x128xf32> -> vector<3x128xf32>
    %c0_20 = arith.constant 0 : index
    %c0_21 = arith.constant 0 : index
    %48 = vector.load %arg19[%c0_20, %c0_21] : memref<128x128xf32, #tpu.memory_space<vmem>>, vector<128x128xf32>
    %cst_22 = arith.constant dense<0.000000e+00> : vector<3x128xf32>
    %49 = tpu.matmul %47, %48, %cst_22 {dimension_numbers = #tpu.dot_dimension_numbers<[1], [0], [0], [1], [0, 0, 1, 1], [], []>} : vector<3x128xf32>, vector<128x128xf32>, vector<3x128xf32> -> vector<3x128xf32>
    %c0_23 = arith.constant 0 : index
    %c0_24 = arith.constant 0 : index
    %50 = vector.load %arg20[%c0_23, %c0_24] : memref<1x128xf32, #tpu.memory_space<vmem>>, vector<1x128xf32>
    %51 = vector.broadcast %50 : vector<1x128xf32> to vector<3x128xf32>
    %52 = arith.addf %49, %51 : vector<3x128xf32>
    %c0_25 = arith.constant 0 : index
    %c0_26 = arith.constant 0 : index
    %53 = vector.load %arg9[%c0_25, %c0_26] : memref<1x128xf32, #tpu.memory_space<vmem>>, vector<1x128xf32>
    %c0_27 = arith.constant 0 : index
    %c0_28 = arith.constant 0 : index
    %54 = vector.load %arg10[%c0_27, %c0_28] : memref<1x128xf32, #tpu.memory_space<vmem>>, vector<1x128xf32>
    %cst_29 = arith.constant dense<0.000000e+00> : vector<3xf32>
    %55 = vector.multi_reduction <add>, %52, %cst_29 [1] : vector<3x128xf32> to vector<3xf32>
    %56 = vector.shape_cast %55 : vector<3xf32> to vector<3x1xf32>
    %cst_30 = arith.constant 1.280000e+02 : f32
    %57 = vector.broadcast %cst_30 : f32 to vector<3x1xf32>
    %58 = arith.divf %56, %57 : vector<3x1xf32>
    %59 = vector.broadcast %58 : vector<3x1xf32> to vector<3x128xf32>
    %60 = arith.subf %52, %59 : vector<3x128xf32>
    %61 = arith.mulf %60, %60 : vector<3x128xf32>
    %cst_31 = arith.constant dense<0.000000e+00> : vector<3xf32>
    %62 = vector.multi_reduction <add>, %61, %cst_31 [1] : vector<3x128xf32> to vector<3xf32>
    %63 = vector.shape_cast %62 : vector<3xf32> to vector<3x1xf32>
    %cst_32 = arith.constant 1.280000e+02 : f32
    %64 = vector.broadcast %cst_32 : f32 to vector<3x1xf32>
    %65 = arith.divf %63, %64 : vector<3x1xf32>
    %66 = vector.broadcast %58 : vector<3x1xf32> to vector<3x128xf32>
    %67 = arith.subf %52, %66 : vector<3x128xf32>
    %cst_33 = arith.constant 9.99999974E-6 : f32
    %68 = vector.broadcast %cst_33 : f32 to vector<3x1xf32>
    %69 = arith.addf %65, %68 : vector<3x1xf32>
    %70 = math.rsqrt %69 : vector<3x1xf32>
    %71 = vector.broadcast %70 : vector<3x1xf32> to vector<3x128xf32>
    %72 = arith.mulf %67, %71 : vector<3x128xf32>
    %73 = vector.broadcast %53 : vector<1x128xf32> to vector<3x128xf32>
    %74 = arith.mulf %72, %73 : vector<3x128xf32>
    %75 = vector.broadcast %54 : vector<1x128xf32> to vector<3x128xf32>
    %76 = arith.addf %74, %75 : vector<3x128xf32>
    %c0_34 = arith.constant 0 : index
    %c0_35 = arith.constant 0 : index
    %77 = vector.load %arg21[%c0_34, %c0_35] : memref<128x128xf32, #tpu.memory_space<vmem>>, vector<128x128xf32>
    %cst_36 = arith.constant dense<0.000000e+00> : vector<3x128xf32>
    %78 = tpu.matmul %76, %77, %cst_36 {dimension_numbers = #tpu.dot_dimension_numbers<[1], [0], [0], [1], [0, 0, 1, 1], [], []>} : vector<3x128xf32>, vector<128x128xf32>, vector<3x128xf32> -> vector<3x128xf32>
    %c0_37 = arith.constant 0 : index
    %c0_38 = arith.constant 0 : index
    %79 = vector.load %arg22[%c0_37, %c0_38] : memref<1x128xf32, #tpu.memory_space<vmem>>, vector<1x128xf32>
    %80 = vector.broadcast %79 : vector<1x128xf32> to vector<3x128xf32>
    %81 = arith.addf %78, %80 : vector<3x128xf32>
    %82 = vector.broadcast %1 : f32 to vector<3x128xf32>
    %83 = arith.mulf %81, %82 : vector<3x128xf32>
    %c0_39 = arith.constant 0 : index
    %c0_40 = arith.constant 0 : index
    %c0_41 = arith.constant 0 : index
    %84 = vector.load %arg3[%c0_39, %c0_40, %c0_41] : memref<8x8x128xbf16, #tpu.memory_space<vmem>>, vector<8x8x128xbf16>
    %85 = arith.extf %84 : vector<8x8x128xbf16> to vector<8x8x128xf32>
    %86 = vector.shape_cast %85 : vector<8x8x128xf32> to vector<64x128xf32>
    %c0_42 = arith.constant 0 : index
    %c0_43 = arith.constant 0 : index
    %87 = vector.load %arg7[%c0_42, %c0_43] : memref<1x128xf32, #tpu.memory_space<vmem>>, vector<1x128xf32>
    %c0_44 = arith.constant 0 : index
    %c0_45 = arith.constant 0 : index
    %88 = vector.load %arg8[%c0_44, %c0_45] : memref<1x128xf32, #tpu.memory_space<vmem>>, vector<1x128xf32>
    %cst_46 = arith.constant dense<0.000000e+00> : vector<64xf32>
    %89 = vector.multi_reduction <add>, %86, %cst_46 [1] : vector<64x128xf32> to vector<64xf32>
    %90 = vector.shape_cast %89 : vector<64xf32> to vector<64x1xf32>
    %cst_47 = arith.constant 1.280000e+02 : f32
    %91 = vector.broadcast %cst_47 : f32 to vector<64x1xf32>
    %92 = arith.divf %90, %91 : vector<64x1xf32>
    %93 = vector.broadcast %92 : vector<64x1xf32> to vector<64x128xf32>
    %94 = arith.subf %86, %93 : vector<64x128xf32>
    %95 = arith.mulf %94, %94 : vector<64x128xf32>
    %cst_48 = arith.constant dense<0.000000e+00> : vector<64xf32>
    %96 = vector.multi_reduction <add>, %95, %cst_48 [1] : vector<64x128xf32> to vector<64xf32>
    %97 = vector.shape_cast %96 : vector<64xf32> to vector<64x1xf32>
    %cst_49 = arith.constant 1.280000e+02 : f32
    %98 = vector.broadcast %cst_49 : f32 to vector<64x1xf32>
    %99 = arith.divf %97, %98 : vector<64x1xf32>
    %100 = vector.broadcast %92 : vector<64x1xf32> to vector<64x128xf32>
    %101 = arith.subf %86, %100 : vector<64x128xf32>
    %cst_50 = arith.constant 9.99999974E-6 : f32
    %102 = vector.broadcast %cst_50 : f32 to vector<64x1xf32>
    %103 = arith.addf %99, %102 : vector<64x1xf32>
    %104 = math.rsqrt %103 : vector<64x1xf32>
    %105 = vector.broadcast %104 : vector<64x1xf32> to vector<64x128xf32>
    %106 = arith.mulf %101, %105 : vector<64x128xf32>
    %107 = vector.broadcast %87 : vector<1x128xf32> to vector<64x128xf32>
    %108 = arith.mulf %106, %107 : vector<64x128xf32>
    %109 = vector.broadcast %88 : vector<1x128xf32> to vector<64x128xf32>
    %110 = arith.addf %108, %109 : vector<64x128xf32>
    %111 = arith.truncf %110 : vector<64x128xf32> to vector<64x128xbf16>
    %c0_51 = arith.constant 0 : index
    %c0_52 = arith.constant 0 : index
    %112 = vector.load %arg23[%c0_51, %c0_52] : memref<128x256xbf16, #tpu.memory_space<vmem>>, vector<128x256xbf16>
    %cst_53 = arith.constant dense<0.000000e+00> : vector<64x256xf32>
    %113 = tpu.matmul %111, %112, %cst_53 {dimension_numbers = #tpu.dot_dimension_numbers<[1], [0], [0], [1], [0, 0, 1, 1], [], []>} : vector<64x128xbf16>, vector<128x256xbf16>, vector<64x256xf32> -> vector<64x256xf32>
    %c0_54 = arith.constant 0 : index
    %c0_55 = arith.constant 0 : index
    %114 = vector.load %arg24[%c0_54, %c0_55] : memref<1x256xf32, #tpu.memory_space<vmem>>, vector<1x256xf32>
    %115 = vector.broadcast %114 : vector<1x256xf32> to vector<64x256xf32>
    %116 = arith.addf %113, %115 : vector<64x256xf32>
    %117 = vector.extract_strided_slice %116 {offsets = [0, 0], sizes = [64, 128], strides = [1, 1]} : vector<64x256xf32> to vector<64x128xf32>
    %118 = arith.truncf %117 : vector<64x128xf32> to vector<64x128xbf16>
    %119 = vector.extract_strided_slice %116 {offsets = [0, 128], sizes = [64, 128], strides = [1, 1]} : vector<64x256xf32> to vector<64x128xf32>
    %120 = arith.truncf %119 : vector<64x128xf32> to vector<64x128xbf16>
    %121 = arith.truncf %83 : vector<3x128xf32> to vector<3x128xbf16>
    %cst_56 = arith.constant dense<0.000000e+00> : vector<3x64xf32>
    %122 = tpu.matmul %121, %118, %cst_56 {dimension_numbers = #tpu.dot_dimension_numbers<[1], [1], [0], [0], [0, 0, 1, 0], [], []>} : vector<3x128xbf16>, vector<64x128xbf16>, vector<3x64xf32> -> vector<3x64xf32>
    %c0_57 = arith.constant 0 : index
    %c0_58 = arith.constant 0 : index
    %123 = vector.load %arg1[%c0_57, %c0_58] : memref<24x3xf32, #tpu.memory_space<vmem>>, vector<24x3xf32>
    %cst_59 = arith.constant dense<0.000000e+00> : vector<24x64xf32>
    %124 = tpu.matmul %123, %122, %cst_59 {dimension_numbers = #tpu.dot_dimension_numbers<[1], [0], [0], [1], [0, 0, 1, 1], [], []>} : vector<24x3xf32>, vector<3x64xf32>, vector<24x64xf32> -> vector<24x64xf32>
    %c0_60 = arith.constant 0 : index
    %c0_61 = arith.constant 0 : index
    %125 = vector.load %arg2[%c0_60, %c0_61] : memref<24x64xf32, #tpu.memory_space<vmem>>, vector<24x64xf32>
    %126 = arith.addf %124, %125 : vector<24x64xf32>
    %cst_62 = arith.constant dense<0xFF800000> : vector<24xf32>
    %127 = vector.multi_reduction <maximumf>, %126, %cst_62 [1] : vector<24x64xf32> to vector<24xf32>
    %128 = vector.shape_cast %127 : vector<24xf32> to vector<24x1xf32>
    %129 = vector.broadcast %128 : vector<24x1xf32> to vector<24x64xf32>
    %130 = arith.subf %126, %129 : vector<24x64xf32>
    %131 = math.exp %130 : vector<24x64xf32>
    %cst_63 = arith.constant dense<0.000000e+00> : vector<24xf32>
    %132 = vector.multi_reduction <add>, %131, %cst_63 [1] : vector<24x64xf32> to vector<24xf32>
    %133 = vector.shape_cast %132 : vector<24xf32> to vector<24x1xf32>
    %134 = tpu.reciprocal %133 {approx = true} : vector<24x1xf32> -> vector<24x1xf32>
    %135 = vector.broadcast %134 : vector<24x1xf32> to vector<24x64xf32>
    %136 = arith.mulf %131, %135 : vector<24x64xf32>
    %137 = arith.truncf %136 : vector<24x64xf32> to vector<24x64xbf16>
    %cst_64 = arith.constant dense<0.000000e+00> : vector<24x128xf32>
    %138 = tpu.matmul %137, %120, %cst_64 {dimension_numbers = #tpu.dot_dimension_numbers<[1], [0], [0], [1], [0, 0, 1, 1], [], []>} : vector<24x64xbf16>, vector<64x128xbf16>, vector<24x128xf32> -> vector<24x128xf32>
    %139 = arith.truncf %138 : vector<24x128xf32> to vector<24x128xbf16>
    %c0_65 = arith.constant 0 : index
    %c0_66 = arith.constant 0 : index
    %140 = vector.load %arg25[%c0_65, %c0_66] : memref<128x128xbf16, #tpu.memory_space<vmem>>, vector<128x128xbf16>
    %cst_67 = arith.constant dense<0.000000e+00> : vector<24x128xf32>
    %141 = tpu.matmul %139, %140, %cst_67 {dimension_numbers = #tpu.dot_dimension_numbers<[1], [0], [0], [1], [0, 0, 1, 1], [], []>} : vector<24x128xbf16>, vector<128x128xbf16>, vector<24x128xf32> -> vector<24x128xf32>
    %c0_68 = arith.constant 0 : index
    %c0_69 = arith.constant 0 : index
    %142 = vector.load %arg26[%c0_68, %c0_69] : memref<1x128xf32, #tpu.memory_space<vmem>>, vector<1x128xf32>
    %143 = vector.broadcast %142 : vector<1x128xf32> to vector<24x128xf32>
    %144 = arith.addf %141, %143 : vector<24x128xf32>
    %cst_70 = arith.constant dense<0.000000e+00> : vector<24x128xf32>
    %145 = tpu.matmul %123, %76, %cst_70 {dimension_numbers = #tpu.dot_dimension_numbers<[1], [0], [0], [1], [0, 0, 1, 1], [], []>} : vector<24x3xf32>, vector<3x128xf32>, vector<24x128xf32> -> vector<24x128xf32>
    %146 = arith.addf %145, %144 : vector<24x128xf32>
    %c0_71 = arith.constant 0 : index
    %c0_72 = arith.constant 0 : index
    %147 = vector.load %arg11[%c0_71, %c0_72] : memref<1x128xf32, #tpu.memory_space<vmem>>, vector<1x128xf32>
    %c0_73 = arith.constant 0 : index
    %c0_74 = arith.constant 0 : index
    %148 = vector.load %arg12[%c0_73, %c0_74] : memref<1x128xf32, #tpu.memory_space<vmem>>, vector<1x128xf32>
    %cst_75 = arith.constant dense<0.000000e+00> : vector<24xf32>
    %149 = vector.multi_reduction <add>, %146, %cst_75 [1] : vector<24x128xf32> to vector<24xf32>
    %150 = vector.shape_cast %149 : vector<24xf32> to vector<24x1xf32>
    %cst_76 = arith.constant 1.280000e+02 : f32
    %151 = vector.broadcast %cst_76 : f32 to vector<24x1xf32>
    %152 = arith.divf %150, %151 : vector<24x1xf32>
    %153 = vector.broadcast %152 : vector<24x1xf32> to vector<24x128xf32>
    %154 = arith.subf %146, %153 : vector<24x128xf32>
    %155 = arith.mulf %154, %154 : vector<24x128xf32>
    %cst_77 = arith.constant dense<0.000000e+00> : vector<24xf32>
    %156 = vector.multi_reduction <add>, %155, %cst_77 [1] : vector<24x128xf32> to vector<24xf32>
    %157 = vector.shape_cast %156 : vector<24xf32> to vector<24x1xf32>
    %cst_78 = arith.constant 1.280000e+02 : f32
    %158 = vector.broadcast %cst_78 : f32 to vector<24x1xf32>
    %159 = arith.divf %157, %158 : vector<24x1xf32>
    %160 = vector.broadcast %152 : vector<24x1xf32> to vector<24x128xf32>
    %161 = arith.subf %146, %160 : vector<24x128xf32>
    %cst_79 = arith.constant 9.99999974E-6 : f32
    %162 = vector.broadcast %cst_79 : f32 to vector<24x1xf32>
    %163 = arith.addf %159, %162 : vector<24x1xf32>
    %164 = math.rsqrt %163 : vector<24x1xf32>
    %165 = vector.broadcast %164 : vector<24x1xf32> to vector<24x128xf32>
    %166 = arith.mulf %161, %165 : vector<24x128xf32>
    %167 = vector.broadcast %147 : vector<1x128xf32> to vector<24x128xf32>
    %168 = arith.mulf %166, %167 : vector<24x128xf32>
    %169 = vector.broadcast %148 : vector<1x128xf32> to vector<24x128xf32>
    %170 = arith.addf %168, %169 : vector<24x128xf32>
    %171 = arith.truncf %170 : vector<24x128xf32> to vector<24x128xbf16>
    %c0_80 = arith.constant 0 : index
    %c0_81 = arith.constant 0 : index
    %172 = vector.load %arg27[%c0_80, %c0_81] : memref<128x128xbf16, #tpu.memory_space<vmem>>, vector<128x128xbf16>
    %cst_82 = arith.constant dense<0.000000e+00> : vector<24x128xf32>
    %173 = tpu.matmul %171, %172, %cst_82 {dimension_numbers = #tpu.dot_dimension_numbers<[1], [0], [0], [1], [0, 0, 1, 1], [], []>} : vector<24x128xbf16>, vector<128x128xbf16>, vector<24x128xf32> -> vector<24x128xf32>
    %c0_83 = arith.constant 0 : index
    %c0_84 = arith.constant 0 : index
    %174 = vector.load %arg28[%c0_83, %c0_84] : memref<1x128xf32, #tpu.memory_space<vmem>>, vector<1x128xf32>
    %175 = vector.broadcast %174 : vector<1x128xf32> to vector<24x128xf32>
    %176 = arith.addf %173, %175 : vector<24x128xf32>
    %cst_85 = arith.constant 0.000000e+00 : f32
    %177 = vector.broadcast %cst_85 : f32 to vector<24x128xf32>
    %178 = arith.maximumf %176, %177 : vector<24x128xf32>
    %179 = arith.truncf %178 : vector<24x128xf32> to vector<24x128xbf16>
    %c0_86 = arith.constant 0 : index
    %c0_87 = arith.constant 0 : index
    %180 = vector.load %arg29[%c0_86, %c0_87] : memref<128x128xbf16, #tpu.memory_space<vmem>>, vector<128x128xbf16>
    %cst_88 = arith.constant dense<0.000000e+00> : vector<24x128xf32>
    %181 = tpu.matmul %179, %180, %cst_88 {dimension_numbers = #tpu.dot_dimension_numbers<[1], [0], [0], [1], [0, 0, 1, 1], [], []>} : vector<24x128xbf16>, vector<128x128xbf16>, vector<24x128xf32> -> vector<24x128xf32>
    %c0_89 = arith.constant 0 : index
    %c0_90 = arith.constant 0 : index
    %182 = vector.load %arg30[%c0_89, %c0_90] : memref<1x128xf32, #tpu.memory_space<vmem>>, vector<1x128xf32>
    %183 = vector.broadcast %182 : vector<1x128xf32> to vector<24x128xf32>
    %184 = arith.addf %181, %183 : vector<24x128xf32>
    %185 = arith.addf %170, %184 : vector<24x128xf32>
    %c0_91 = arith.constant 0 : index
    %c0_92 = arith.constant 0 : index
    %186 = vector.load %arg13[%c0_91, %c0_92] : memref<1x128xf32, #tpu.memory_space<vmem>>, vector<1x128xf32>
    %c0_93 = arith.constant 0 : index
    %c0_94 = arith.constant 0 : index
    %187 = vector.load %arg14[%c0_93, %c0_94] : memref<1x128xf32, #tpu.memory_space<vmem>>, vector<1x128xf32>
    %cst_95 = arith.constant dense<0.000000e+00> : vector<24xf32>
    %188 = vector.multi_reduction <add>, %185, %cst_95 [1] : vector<24x128xf32> to vector<24xf32>
    %189 = vector.shape_cast %188 : vector<24xf32> to vector<24x1xf32>
    %cst_96 = arith.constant 1.280000e+02 : f32
    %190 = vector.broadcast %cst_96 : f32 to vector<24x1xf32>
    %191 = arith.divf %189, %190 : vector<24x1xf32>
    %192 = vector.broadcast %191 : vector<24x1xf32> to vector<24x128xf32>
    %193 = arith.subf %185, %192 : vector<24x128xf32>
    %194 = arith.mulf %193, %193 : vector<24x128xf32>
    %cst_97 = arith.constant dense<0.000000e+00> : vector<24xf32>
    %195 = vector.multi_reduction <add>, %194, %cst_97 [1] : vector<24x128xf32> to vector<24xf32>
    %196 = vector.shape_cast %195 : vector<24xf32> to vector<24x1xf32>
    %cst_98 = arith.constant 1.280000e+02 : f32
    %197 = vector.broadcast %cst_98 : f32 to vector<24x1xf32>
    %198 = arith.divf %196, %197 : vector<24x1xf32>
    %199 = vector.broadcast %191 : vector<24x1xf32> to vector<24x128xf32>
    %200 = arith.subf %185, %199 : vector<24x128xf32>
    %cst_99 = arith.constant 9.99999974E-6 : f32
    %201 = vector.broadcast %cst_99 : f32 to vector<24x1xf32>
    %202 = arith.addf %198, %201 : vector<24x1xf32>
    %203 = math.rsqrt %202 : vector<24x1xf32>
    %204 = vector.broadcast %203 : vector<24x1xf32> to vector<24x128xf32>
    %205 = arith.mulf %200, %204 : vector<24x128xf32>
    %206 = vector.broadcast %186 : vector<1x128xf32> to vector<24x128xf32>
    %207 = arith.mulf %205, %206 : vector<24x128xf32>
    %208 = vector.broadcast %187 : vector<1x128xf32> to vector<24x128xf32>
    %209 = arith.addf %207, %208 : vector<24x128xf32>
    %c0_100 = arith.constant 0 : index
    %c0_101 = arith.constant 0 : index
    %210 = vector.load %arg15[%c0_100, %c0_101] : memref<1x128xf32, #tpu.memory_space<vmem>>, vector<1x128xf32>
    %c0_102 = arith.constant 0 : index
    %c0_103 = arith.constant 0 : index
    %211 = vector.load %arg16[%c0_102, %c0_103] : memref<1x128xf32, #tpu.memory_space<vmem>>, vector<1x128xf32>
    %cst_104 = arith.constant dense<0.000000e+00> : vector<24xf32>
    %212 = vector.multi_reduction <add>, %209, %cst_104 [1] : vector<24x128xf32> to vector<24xf32>
    %213 = vector.shape_cast %212 : vector<24xf32> to vector<24x1xf32>
    %cst_105 = arith.constant 1.280000e+02 : f32
    %214 = vector.broadcast %cst_105 : f32 to vector<24x1xf32>
    %215 = arith.divf %213, %214 : vector<24x1xf32>
    %216 = vector.broadcast %215 : vector<24x1xf32> to vector<24x128xf32>
    %217 = arith.subf %209, %216 : vector<24x128xf32>
    %218 = arith.mulf %217, %217 : vector<24x128xf32>
    %cst_106 = arith.constant dense<0.000000e+00> : vector<24xf32>
    %219 = vector.multi_reduction <add>, %218, %cst_106 [1] : vector<24x128xf32> to vector<24xf32>
    %220 = vector.shape_cast %219 : vector<24xf32> to vector<24x1xf32>
    %cst_107 = arith.constant 1.280000e+02 : f32
    %221 = vector.broadcast %cst_107 : f32 to vector<24x1xf32>
    %222 = arith.divf %220, %221 : vector<24x1xf32>
    %223 = vector.broadcast %215 : vector<24x1xf32> to vector<24x128xf32>
    %224 = arith.subf %209, %223 : vector<24x128xf32>
    %cst_108 = arith.constant 9.99999974E-6 : f32
    %225 = vector.broadcast %cst_108 : f32 to vector<24x1xf32>
    %226 = arith.addf %222, %225 : vector<24x1xf32>
    %227 = math.rsqrt %226 : vector<24x1xf32>
    %228 = vector.broadcast %227 : vector<24x1xf32> to vector<24x128xf32>
    %229 = arith.mulf %224, %228 : vector<24x128xf32>
    %230 = vector.broadcast %210 : vector<1x128xf32> to vector<24x128xf32>
    %231 = arith.mulf %229, %230 : vector<24x128xf32>
    %232 = vector.broadcast %211 : vector<1x128xf32> to vector<24x128xf32>
    %233 = arith.addf %231, %232 : vector<24x128xf32>
    %c0_109 = arith.constant 0 : index
    %c0_110 = arith.constant 0 : index
    %c0_111 = arith.constant 0 : index
    %234 = vector.load %arg31[%c0_109, %c0_110, %c0_111] : memref<1x24x128xf32, #tpu.memory_space<vmem>>, vector<1x24x128xf32>
    %235 = vector.shape_cast %234 : vector<1x24x128xf32> to vector<24x128xf32>
    %236 = vector.shape_cast %233 : vector<24x128xf32> to vector<1x24x128xf32>
    tpu.vector_store %arg31[%c0_109, %c0_110, %c0_111], %236 {strides = array<i32>} : memref<1x24x128xf32, #tpu.memory_space<vmem>>, vector<1x24x128xf32>,
    return
  }
  func.func @transform_0(%arg0: i32) -> (i32, i32) {
    %c0_i32 = arith.constant 0 : i32
    %c0_i32_0 = arith.constant 0 : i32
    %c0_i32_1 = arith.constant 0 : i32
    return %c0_i32, %c0_i32_0 : i32, i32
  }
  func.func @transform_1(%arg0: i32) -> (i32, i32) {
    %c0_i32 = arith.constant 0 : i32
    %c0_i32_0 = arith.constant 0 : i32
    %c0_i32_1 = arith.constant 0 : i32
    return %c0_i32, %c0_i32_0 : i32, i32
  }
  func.func @transform_2(%arg0: i32) -> (i32, i32, i32) {
    %c0_i32 = arith.constant 0 : i32
    %c0_i32_0 = arith.constant 0 : i32
    %c0_i32_1 = arith.constant 0 : i32
    return %arg0, %c0_i32, %c0_i32_0 : i32, i32, i32
  }
  func.func @transform_3(%arg0: i32) -> (i32, i32) {
    %c0_i32 = arith.constant 0 : i32
    %c0_i32_0 = arith.constant 0 : i32
    %c0_i32_1 = arith.constant 0 : i32
    return %c0_i32, %c0_i32_0 : i32, i32
  }
  func.func @transform_4(%arg0: i32) -> (i32, i32) {
    %c0_i32 = arith.constant 0 : i32
    %c0_i32_0 = arith.constant 0 : i32
    %c0_i32_1 = arith.constant 0 : i32
    return %c0_i32, %c0_i32_0 : i32, i32
  }
  func.func @transform_5(%arg0: i32) -> (i32, i32) {
    %c0_i32 = arith.constant 0 : i32
    %c0_i32_0 = arith.constant 0 : i32
    %c0_i32_1 = arith.constant 0 : i32
    return %c0_i32, %c0_i32_0 : i32, i32
  }
  func.func @transform_6(%arg0: i32) -> (i32, i32) {
    %c0_i32 = arith.constant 0 : i32
    %c0_i32_0 = arith.constant 0 : i32
    %c0_i32_1 = arith.constant 0 : i32
    return %c0_i32, %c0_i32_0 : i32, i32
  }
  func.func @transform_7(%arg0: i32) -> (i32, i32) {
    %c0_i32 = arith.constant 0 : i32
    %c0_i32_0 = arith.constant 0 : i32
    %c0_i32_1 = arith.constant 0 : i32
    return %c0_i32, %c0_i32_0 : i32, i32
  }
  func.func @transform_8(%arg0: i32) -> (i32, i32) {
    %c0_i32 = arith.constant 0 : i32
    %c0_i32_0 = arith.constant 0 : i32
    %c0_i32_1 = arith.constant 0 : i32
    return %c0_i32, %c0_i32_0 : i32, i32
  }
  func.func @transform_9(%arg0: i32) -> (i32, i32) {
    %c0_i32 = arith.constant 0 : i32
    %c0_i32_0 = arith.constant 0 : i32
    %c0_i32_1 = arith.constant 0 : i32
    return %c0_i32, %c0_i32_0 : i32, i32
  }
  func.func @transform_10(%arg0: i32) -> (i32, i32) {
    %c0_i32 = arith.constant 0 : i32
    %c0_i32_0 = arith.constant 0 : i32
    %c0_i32_1 = arith.constant 0 : i32
    return %c0_i32, %c0_i32_0 : i32, i32
  }
  func.func @transform_11(%arg0: i32) -> (i32, i32) {
    %c0_i32 = arith.constant 0 : i32
    %c0_i32_0 = arith.constant 0 : i32
    %c0_i32_1 = arith.constant 0 : i32
    return %c0_i32, %c0_i32_0 : i32, i32
  }
  func.func @transform_12(%arg0: i32) -> (i32, i32) {
    %c0_i32 = arith.constant 0 : i32
    %c0_i32_0 = arith.constant 0 : i32
    %c0_i32_1 = arith.constant 0 : i32
    return %c0_i32, %c0_i32_0 : i32, i32
  }
  func.func @transform_13(%arg0: i32) -> (i32, i32) {
    %c0_i32 = arith.constant 0 : i32
    %c0_i32_0 = arith.constant 0 : i32
    %c0_i32_1 = arith.constant 0 : i32
    return %c0_i32, %c0_i32_0 : i32, i32
  }
  func.func @transform_14(%arg0: i32) -> (i32, i32) {
    %c0_i32 = arith.constant 0 : i32
    %c0_i32_0 = arith.constant 0 : i32
    %c0_i32_1 = arith.constant 0 : i32
    return %c0_i32, %c0_i32_0 : i32, i32
  }
  func.func @transform_15(%arg0: i32) -> (i32, i32) {
    %c0_i32 = arith.constant 0 : i32
    %c0_i32_0 = arith.constant 0 : i32
    %c0_i32_1 = arith.constant 0 : i32
    return %c0_i32, %c0_i32_0 : i32, i32
  }
  func.func @transform_16(%arg0: i32) -> (i32, i32) {
    %c0_i32 = arith.constant 0 : i32
    %c0_i32_0 = arith.constant 0 : i32
    %c0_i32_1 = arith.constant 0 : i32
    return %c0_i32, %c0_i32_0 : i32, i32
  }
  func.func @transform_17(%arg0: i32) -> (i32, i32) {
    %c0_i32 = arith.constant 0 : i32
    %c0_i32_0 = arith.constant 0 : i32
    %c0_i32_1 = arith.constant 0 : i32
    return %c0_i32, %c0_i32_0 : i32, i32
  }
  func.func @transform_18(%arg0: i32) -> (i32, i32) {
    %c0_i32 = arith.constant 0 : i32
    %c0_i32_0 = arith.constant 0 : i32
    %c0_i32_1 = arith.constant 0 : i32
    return %c0_i32, %c0_i32_0 : i32, i32
  }
  func.func @transform_19(%arg0: i32) -> (i32, i32) {
    %c0_i32 = arith.constant 0 : i32
    %c0_i32_0 = arith.constant 0 : i32
    %c0_i32_1 = arith.constant 0 : i32
    return %c0_i32, %c0_i32_0 : i32, i32
  }
  func.func @transform_20(%arg0: i32) -> (i32, i32) {
    %c0_i32 = arith.constant 0 : i32
    %c0_i32_0 = arith.constant 0 : i32
    %c0_i32_1 = arith.constant 0 : i32
    return %c0_i32, %c0_i32_0 : i32, i32
  }
  func.func @transform_21(%arg0: i32) -> (i32, i32) {
    %c0_i32 = arith.constant 0 : i32
    %c0_i32_0 = arith.constant 0 : i32
    %c0_i32_1 = arith.constant 0 : i32
    return %c0_i32, %c0_i32_0 : i32, i32
  }
  func.func @transform_22(%arg0: i32) -> (i32, i32) {
    %c0_i32 = arith.constant 0 : i32
    %c0_i32_0 = arith.constant 0 : i32
    %c0_i32_1 = arith.constant 0 : i32
    return %c0_i32, %c0_i32_0 : i32, i32
  }
  func.func @transform_23(%arg0: i32) -> (i32, i32) {
    %c0_i32 = arith.constant 0 : i32
    %c0_i32_0 = arith.constant 0 : i32
    %c0_i32_1 = arith.constant 0 : i32
    return %c0_i32, %c0_i32_0 : i32, i32
  }
  func.func @transform_24(%arg0: i32) -> (i32, i32) {
    %c0_i32 = arith.constant 0 : i32
    %c0_i32_0 = arith.constant 0 : i32
    %c0_i32_1 = arith.constant 0 : i32
    return %c0_i32, %c0_i32_0 : i32, i32
  }
  func.func @transform_25(%arg0: i32) -> (i32, i32) {
    %c0_i32 = arith.constant 0 : i32
    %c0_i32_0 = arith.constant 0 : i32
    %c0_i32_1 = arith.constant 0 : i32
    return %c0_i32, %c0_i32_0 : i32, i32
  }
  func.func @transform_26(%arg0: i32) -> (i32, i32) {
    %c0_i32 = arith.constant 0 : i32
    %c0_i32_0 = arith.constant 0 : i32
    %c0_i32_1 = arith.constant 0 : i32
    return %c0_i32, %c0_i32_0 : i32, i32
  }
  func.func @transform_27(%arg0: i32) -> (i32, i32) {
    %c0_i32 = arith.constant 0 : i32
    %c0_i32_0 = arith.constant 0 : i32
    %c0_i32_1 = arith.constant 0 : i32
    return %c0_i32, %c0_i32_0 : i32, i32
  }
  func.func @transform_28(%arg0: i32) -> (i32, i32) {
    %c0_i32 = arith.constant 0 : i32
    %c0_i32_0 = arith.constant 0 : i32
    %c0_i32_1 = arith.constant 0 : i32
    return %c0_i32, %c0_i32_0 : i32, i32
  }
  func.func @transform_29(%arg0: i32) -> (i32, i32) {
    %c0_i32 = arith.constant 0 : i32
    %c0_i32_0 = arith.constant 0 : i32
    %c0_i32_1 = arith.constant 0 : i32
    return %c0_i32, %c0_i32_0 : i32, i32
  }
  func.func @transform_30(%arg0: i32) -> (i32, i32, i32) {
    %c0_i32 = arith.constant 0 : i32
    %c0_i32_0 = arith.constant 0 : i32
    %c0_i32_1 = arith.constant 0 : i32
    return %arg0, %c0_i32, %c0_i32_0 : i32, i32, i32
  }
}

</mosaic_0001>

<bundles_post_ra>
// kernel: tpu_custom_call.1
= control target key start
LH: loop header
LB: loop body
LE: loop exit
PB: predicated region body
PF: predicated region fallthrough
CT: control target
= control target key end

     0   :  { %s4947_s6 = smov 1   ;;  %s4948_s10 = smov 2   ;;  %s5806_s0 = inlined_call_operand.smem [shape: u32[31], index: -1, kind: input, shape index: {}] }
   0x1   :  { %s5020_s5 = sld [smem:[%s5806_s0]]   ;;  %s4949_s14 = smov 3  }
   0x2   :  { %s5025_s9 = sld [smem:[%s5806_s0 + %s4947_s6]]   ;;  %s4950_s18 = smov 4  }
   0x3   :  { %s5030_s13 = sld [smem:[%s5806_s0 + %s4948_s10]]   ;;  %s4951_s22 = smov 5  }
   0x4   :  { %s5035_s17 = sld [smem:[%s5806_s0 + %s4949_s14]]   ;;  %s4952_s26 = smov 6  }
   0x5   :  { %s5040_s21 = sld [smem:[%s5806_s0 + %s4950_s18]]   ;;  %s4953_s30 = smov 7  }
   0x6   :  { %s5045_s25 = sld [smem:[%s5806_s0 + %s4951_s22]]   ;;  %s4954_s4 = smov 8  }
   0x7   :  { %5821 = sst [smem:[#allocation53_spill]] %s5020_s5  ;;  %s4955_s10 = smov 9  }
   0x8   :  { %5822 = sst [smem:[#allocation54_spill]] %s5025_s9  ;;  %s4956_s15 = smov 10  }
   0x9   :  { %5823 = sst [smem:[#allocation55_spill]] %s5030_s13  ;;  %s4957_s20 = smov 11  }
   0xa   :  { %5824 = sst [smem:[#allocation56_spill]] %s5035_s17  ;;  %s4959_s1 = smov 13  }
   0xb   :  { %s5050_s29 = sld [smem:[%s5806_s0 + %s4952_s26]]   ;;  %s4958_s26 = smov 12  }
   0xc   :  { %s5055_s3 = sld [smem:[%s5806_s0 + %s4953_s30]]   ;;  %s4960_s7 = smov 14  }
   0xd   :  { %s5060_s8 = sld [smem:[%s5806_s0 + %s4954_s4]]   ;;  %s4962_s22 = smov 16  }
   0xe   :  { %s5065_s14 = sld [smem:[%s5806_s0 + %s4955_s10]]   ;;  %s4963_s28 = smov 17  }
   0xf   :  { %s5070_s19 = sld [smem:[%s5806_s0 + %s4956_s15]]   ;;  %s4961_s15 = smov 15  }
  0x10   :  { %s5075_s24 = sld [smem:[%s5806_s0 + %s4957_s20]]  }
  0x11   :  { %s5080_s30 = sld [smem:[%s5806_s0 + %s4958_s26]]  }
  0x12   :  { %5825 = sst [smem:[#allocation57_spill]] %s5055_s3 }
  0x13   :  { %5826 = sst [smem:[#allocation58_spill]] %s5060_s8 }
  0x14   :  { %5827 = sst [smem:[#allocation59_spill]] %s5065_s14 }
  0x15   :  { %5828 = sst [smem:[#allocation60_spill]] %s5070_s19 }
  0x16   :  { %s5085_s6 = sld [smem:[%s5806_s0 + %s4959_s1]]  }
  0x17   :  { %5829 = sst [smem:[#allocation61_spill]] %s5080_s30 }
  0x18   :  { %s5090_s12 = sld [smem:[%s5806_s0 + %s4960_s7]]   ;;  %s4964_s7 = smov 18  }
  0x19   :  { %s5095_s20 = sld [smem:[%s5806_s0 + %s4961_s15]]   ;;  %s4965_s15 = smov 19  }
  0x1a   :  { %s5100_s27 = sld [smem:[%s5806_s0 + %s4962_s22]]   ;;  %s4966_s22 = smov 20  }
  0x1b   :  { %s5105_s4 = sld [smem:[%s5806_s0 + %s4963_s28]]   ;;  %s4967_s28 = smov 21  }
  0x1c   :  { %5830 = sst [smem:[#allocation62_spill]] %s5085_s6 }
  0x1d   :  { %s5110_s5 = sld [smem:[%s5806_s0 + %s4964_s7]]   ;;  %s4968_s7 = smov 22  }
  0x1e   :  { %5831 = sst [smem:[#allocation63_spill]] %s5090_s12 }
  0x1f   :  { %5832 = sst [smem:[#allocation64_spill]] %s5095_s20 }
  0x20   :  { %5833 = sst [smem:[#allocation65_spill]] %s5100_s27 }
  0x21   :  { %5834 = sst [smem:[#allocation66_spill]] %s5105_s4 }
  0x22   :  { %s5115_s17 = sld [smem:[%s5806_s0 + %s4965_s15]]   ;;  %s4969_s15 = smov 23  }
  0x23   :  { %5835 = sst [smem:[#allocation67_spill]] %s5110_s5 }
  0x24   :  { %s5120_s13 = sld [smem:[%s5806_s0 + %s4966_s22]]   ;;  %s4970_s22 = smov 24  }
  0x25   :  { %s5125_s4 = sld [smem:[%s5806_s0 + %s4967_s28]]   ;;  %s4971_s28 = smov 25  }
  0x26   :  { %s5130_s27 = sld [smem:[%s5806_s0 + %s4968_s7]]   ;;  %s4972_s7 = smov 26  }
  0x27   :  { %s5140_s12 = sld [smem:[%s5806_s0 + %s4970_s22]]   ;;  %s4974_s22 = smov 28  }
  0x28   :  { %5836 = sst [smem:[#allocation68_spill]] %s5115_s17 }
  0x29   :  { %s5135_s17 = sld [smem:[%s5806_s0 + %s4969_s15]]   ;;  %s4973_s15 = smov 27  }
  0x2a   :  { %5837 = sst [smem:[#allocation69_spill]] %s5120_s13 }
  0x2b   :  { %5838 = sst [smem:[#allocation70_spill]] %s5125_s4 }
  0x2c   :  { %s5145_s4 = sld [smem:[%s5806_s0 + %s4971_s28]]   ;;  %s4975_s28 = smov 29  }
  0x2d   :  { %5840 = sst [smem:[#allocation72_spill]] %s5140_s12 }
  0x2e   :  { %s5150_s30 = sld [smem:[%s5806_s0 + %s4972_s7]]   ;;  %s4976_s7 = smov 30  }
  0x2f   :  { %5839 = sst [smem:[#allocation71_spill]] %s5135_s17 }
  0x30   :  { %s5155_s17 = sld [smem:[%s5806_s0 + %s4973_s15]]  }
  0x31   :  { %s5160_s12 = sld [smem:[%s5806_s0 + %s4974_s22]]  }
  0x32   :  { %5841 = sst [smem:[#allocation73_spill]] %s5145_s4 }
  0x33   :  { %s5165_s4 = sld [smem:[%s5806_s0 + %s4975_s28]]  }
  0x34   :  { %s5170_s19 = sld [smem:[%s5806_s0 + %s4976_s7]]  }
  0x36   :  { %5842 = sst [smem:[#allocation74_spill]] %s5155_s17 }
  0x37   :  { %5843 = sst [smem:[#allocation75_spill]] %s5160_s12 }
  0x39   :  { %5844 = sst [smem:[#allocation76_spill]] %s5165_s4 }
  0x3a   :  { %5845 = sst [smem:[#allocation77_spill]] %s5170_s19 }
  0x3b   :  { %66 = vsyncpa [#allocation3], 0 }
  0x3c   :  { %67 = vsyncpa [#allocation6], 0 }
  0x3d   :  { %69 = vsyncpa [#allocation6 + $0x1], 0 }
  0x3e   :  { %70 = vsyncpa [#allocation9], 0 }
  0x3f   :  { %71 = vsyncpa [#allocation12], 0 }
  0x40   :  { %72 = vsyncpa [#allocation15], 0 }
  0x41   :  { %73 = vsyncpa [#allocation18], 0 }
  0x42   :  { %74 = vsyncpa [#allocation21], 0 }
  0x43   :  { %75 = vsyncpa [#allocation24], 0 }
  0x44   :  { %76 = vsyncpa [#allocation27], 0 }
  0x45   :  { %77 = vsyncpa [#allocation30], 0 }
  0x46   :  { %78 = vsyncpa [#allocation33], 0 }
  0x47   :  { %79 = vsyncpa [#allocation36], 0 }
  0x48   :  { %80 = vsyncpa [#allocation4], 0 }
  0x49   :  { %82 = vsyncpa [#allocation4 + $0x1], 0  ;;  %s5172_s15 = smov 0   ;;  %s5174_s16 = smov 0  }
  0x4a   :  { %s5176_s0 = smov 0   ;;  %s5178_s18 = smov 0  }
  0x4b LB: > { %s4977_s22 = smov [#allocation7]   ;;  %s5193_s26 = sadd.s32 4294967295, %s4945_s18   ;;  %s4945_s18 = sphi %s5178_s18, %s5915_s18   ;;  %s4941_s0 = sphi %s5176_s0, %s5914_s0   ;;  %s4937_s16 = sphi %s5174_s16, %s5913_s16   ;;  %s4933_s15 = sphi %s5172_s15, %s5912_s15  }
  0x4c   : > { %s786_s23 = sshll.u32 %s4977_s22, 4  ;;  %p3353_p0 = scmp.ge.s32.totalorder %s4945_s18, 1  ;;  %s787_s23 = int_to_ptr.vmem [resolvable:$true] %s786_s23 }
  0x4d   : > { %p5811_p1 = scmp.eq.s32.totalorder %s5193_s26, 0  ;;  %p754_p2 = scmp.lt.s32.totalorder %s4945_s18, 3 }
  0x4e   : > { %s4978_s1 = smov [#allocation8]   ;;  %s4979_s7 = smov [#allocation11]  }
  0x4f   : > { %p5198_p3 = pnand %p3353_p0, %p754_p2  ;;  %s797_s2 = sshll.u32 %s4978_s1, 4  ;;  %s5205_s2 = int_to_ptr.vmem [resolvable:$true] %s797_s2 }
  0x50   : > { %s819_s10 = sshll.u32 %s4979_s7, 4  ;;  %s4980_s22 = smov [#allocation14]   ;;  %s5213_s10 = int_to_ptr.vmem [resolvable:$true] %s819_s10 }
  0x51   : > { %s5846_s28 = scalar_select %p5198_p3, 1, 0 }
  0x52   : > { %p3915_p5 = pneg %p5198_p3  ;;  %s5215_s19 = sshll.u32 %s4980_s22, 4  ;;  %s842_s19 = int_to_ptr.vmem [resolvable:$true] %s5215_s19 }
  0x53   : > { %s4244_s1 = scalar_lea.vmem %s787_s23, 16  ;;  %s4251_s7 = scalar_lea.vmem %s787_s23, 32 }
  0x54   : > { %p5209_p6 = pnand %p3915_p5, %p5811_p1  ;;  %p4245_p8 = scmp.ne.s32.totalorder %s787_s23, %s4244_s1 }
  0x55   : > { %p4252_p11 = scmp.lt.s32.totalorder %s787_s23, %s787_s23  ;;  %p4253_p12 = scmp.lt.s32.totalorder %s4251_s7, %s4244_s1 }
  0x56   : > { %p5219_p7 = pneg %p5209_p6 }
  0x57   : > { %p4254_p13 = por %p4253_p12, %p4252_p11 }
  0x58   : > { %p4247_p9 = pnand %p4245_p8, %p5219_p7 }
  0x5a   : > { %p4248_p10 = pneg %p4247_p9 }
  0x5c   : > { %p4255_p0 = pnand %p4254_p13, %p4248_p10 }
  0x5e   : > { %4258 = shalt.err (!%p4255_p0)
}
  0x5f   : > { %3921 = dma.hbm_to_vmem [thread:$0]  (!%p5209_p6), %s5040_s21, 16, %s787_s23, [#allocation6]  }
  0x60   : > { %s4270_s22 = scalar_lea.vmem %s5205_s2, 16  ;;  %s4277_s17 = scalar_lea.vmem %s5205_s2, 32 }
  0x61   : > { %p4271_p2 = scmp.ne.s32.totalorder %s5205_s2, %s4270_s22  ;;  %p4278_p9 = scmp.lt.s32.totalorder %s5205_s2, %s5205_s2 }
  0x62   : > { %p4279_p11 = scmp.lt.s32.totalorder %s4277_s17, %s4270_s22 }
  0x63   : > { %p4273_p5 = pnand %p4271_p2, %p5219_p7 }
  0x64   : > { %p4280_p10 = por %p4279_p11, %p4278_p9 }
  0x65   : > { %p4274_p8 = pneg %p4273_p5 }
  0x67   : > { %p4281_p12 = pnand %p4280_p10, %p4274_p8 }
  0x69   : > { %4284 = shalt.err (!%p4281_p12)
}
  0x6a   : > { %3924 = dma.hbm_to_vmem [thread:$0]  (!%p5209_p6), %s5045_s25, 16, %s5205_s2, [#allocation9]  }
  0x6b   : > { %s4296_s23 = scalar_lea.vmem %s5213_s10, 16  ;;  %s4303_s1 = scalar_lea.vmem %s5213_s10, 32 }
  0x6c   : > { %p4297_p13 = scmp.ne.s32.totalorder %s5213_s10, %s4296_s23  ;;  %p4304_p5 = scmp.lt.s32.totalorder %s5213_s10, %s5213_s10 }
  0x6d   : > { %p4305_p8 = scmp.lt.s32.totalorder %s4303_s1, %s4296_s23 }
  0x6e   : > { %p4299_p0 = pnand %p4297_p13, %p5219_p7 }
  0x6f   : > { %p4306_p9 = por %p4305_p8, %p4304_p5 }
  0x70   : > { %p4300_p2 = pneg %p4299_p0 }
  0x72   : > { %p4307_p11 = pnand %p4306_p9, %p4300_p2 }
  0x74   : > { %4310 = shalt.err (!%p4307_p11)
}
  0x75   : > { %s5849_s3 = sld [smem:[#allocation57_spill]]  ;;  %s4981_s17 = smov [#allocation17]  }
  0x76   : > { %s863_s2 = sshll.u32 %s4981_s17, 4  ;;  %s4322_s7 = scalar_lea.vmem %s842_s19, 16  ;;  %s864_s2 = int_to_ptr.vmem [resolvable:$true] %s863_s2 }
  0x77   : > { %p4323_p10 = scmp.ne.s32.totalorder %s842_s19, %s4322_s7  ;;  %s4329_s22 = scalar_lea.vmem %s842_s19, 32 }
  0x78   : > { %p4330_p0 = scmp.lt.s32.totalorder %s842_s19, %s842_s19  ;;  %p4331_p5 = scmp.lt.s32.totalorder %s4329_s22, %s4322_s7 }
  0x79   : > { %p4325_p12 = pnand %p4323_p10, %p5219_p7 }
  0x7a   : > { %p4332_p2 = por %p4331_p5, %p4330_p0 }
  0x7b   : > { %3930 = dma.hbm_to_vmem [thread:$0]  (!%p5209_p6), %s5849_s3, 16, %s5213_s10, [#allocation12]  }
  0x7c   : > { %p4326_p13 = pneg %p4325_p12 }
  0x7e   : > { %p4333_p8 = pnand %p4332_p2, %p4326_p13 }
  0x80   : > { %4336 = shalt.err (!%p4333_p8)
}
  0x81   : > { %s5850_s14 = sld [smem:[#allocation59_spill]]  ;;  %s4348_s10 = scalar_lea.vmem %s864_s2, 16 }
  0x82   : > { %p4349_p9 = scmp.ne.s32.totalorder %s864_s2, %s4348_s10  ;;  %s4355_s23 = scalar_lea.vmem %s864_s2, 32 }
  0x83   : > { %p4356_p10 = scmp.lt.s32.totalorder %s864_s2, %s864_s2  ;;  %p4357_p12 = scmp.lt.s32.totalorder %s4355_s23, %s4348_s10 }
  0x84   : > { %p4351_p11 = pnand %p4349_p9, %p5219_p7 }
  0x85   : > { %p4358_p1 = por %p4357_p12, %p4356_p10 }
  0x86   : > { %p4352_p4 = pneg %p4351_p11 }
  0x87   : > { %3936 = dma.hbm_to_vmem [thread:$0]  (!%p5209_p6), %s5850_s14, 16, %s842_s19, [#allocation15]  }
  0x88   : > { %p4359_p3 = pnand %p4358_p1, %p4352_p4 }
  0x8a   : > { %4362 = shalt.err (!%p4359_p3)
}
  0x8b   : > { %3942 = dma.hbm_to_vmem [thread:$0]  (!%p5209_p6), %s5075_s24, 16, %s864_s2, [#allocation18]  }
  0x8c   : > { %s4982_s1 = smov [#allocation20]   ;;  %s4983_s19 = smov [#allocation23]  }
  0x8d   : > { %s885_s17 = sshll.u32 %s4982_s1, 4  ;;  %s907_s7 = sshll.u32 %s4983_s19, 4  ;;  %s886_s17 = int_to_ptr.vmem [resolvable:$true] %s885_s17  ;;  %s908_s7 = int_to_ptr.vmem [resolvable:$true] %s907_s7 }
  0x8e   : > { %s4374_s22 = scalar_lea.vmem %s886_s17, 16  ;;  %s4381_s3 = scalar_lea.vmem %s886_s17, 32 }
  0x8f   : > { %p4375_p13 = scmp.ne.s32.totalorder %s886_s17, %s4374_s22  ;;  %p4382_p2 = scmp.lt.s32.totalorder %s886_s17, %s886_s17 }
  0x90   : > { %p4383_p8 = scmp.lt.s32.totalorder %s4381_s3, %s4374_s22 }
  0x91   : > { %p4377_p0 = pnand %p4375_p13, %p5219_p7 }
  0x92   : > { %p4384_p1 = por %p4383_p8, %p4382_p2 }
  0x93   : > { %p4378_p5 = pneg %p4377_p0 }
  0x95   : > { %p4385_p3 = pnand %p4384_p1, %p4378_p5 }
  0x97   : > { %4388 = shalt.err (!%p4385_p3)
}
  0x98   : > { %s5851_s6 = sld [smem:[#allocation62_spill]]  ;;  %s4400_s2 = scalar_lea.vmem %s908_s7, 16 }
  0x99   : > { %p4401_p4 = scmp.ne.s32.totalorder %s908_s7, %s4400_s2  ;;  %s4407_s10 = scalar_lea.vmem %s908_s7, 32 }
  0x9a   : > { %p4408_p10 = scmp.lt.s32.totalorder %s908_s7, %s908_s7  ;;  %p4409_p12 = scmp.lt.s32.totalorder %s4407_s10, %s4400_s2 }
  0x9b   : > { %p4403_p9 = pnand %p4401_p4, %p5219_p7 }
  0x9c   : > { %p4410_p13 = por %p4409_p12, %p4408_p10 }
  0x9d   : > { %p4404_p11 = pneg %p4403_p9 }
  0x9e   : > { %3948 = dma.hbm_to_vmem [thread:$0]  (!%p5209_p6), %s5851_s6, 16, %s886_s17, [#allocation21]  }
  0x9f   : > { %p4411_p0 = pnand %p4410_p13, %p4404_p11 }
  0xa1   : > { %4414 = shalt.err (!%p4411_p0)
}
  0xa2   : > { %s5852_s20 = sld [smem:[#allocation64_spill]]  ;;  %s4984_s3 = smov [#allocation26]  }
  0xa3   : > { %s933_s23 = sshll.u32 %s4984_s3, 4  ;;  %s4985_s1 = smov [#allocation29]   ;;  %s934_s23 = int_to_ptr.vmem [resolvable:$true] %s933_s23 }
  0xa4   : > { %s957_s17 = sshll.u32 %s4985_s1, 4  ;;  %s4426_s19 = scalar_lea.vmem %s934_s23, 2048  ;;  %s958_s17 = int_to_ptr.vmem [resolvable:$true] %s957_s17 }
  0xa5   : > { %p4427_p5 = scmp.ne.s32.totalorder %s934_s23, %s4426_s19  ;;  %p4434_p1 = scmp.lt.s32.totalorder %s934_s23, %s934_s23 }
  0xa6   : > { %p4435_p3 = scmp.lt.s32.totalorder %s4426_s19, %s4426_s19 }
  0xa7   : > { %p4429_p2 = pnand %p4427_p5, %p5219_p7 }
  0xa8   : > { %3954 = dma.hbm_to_vmem [thread:$0]  (!%p5209_p6), %s5852_s20, 16, %s908_s7, [#allocation24]  }
  0xa9   : > { %p4430_p8 = pneg %p4429_p2  ;;  %p4436_p4 = por %p4435_p3, %p4434_p1 }
  0xab   : > { %p4437_p9 = pnand %p4436_p4, %p4430_p8 }
  0xad   : > { %4440 = shalt.err (!%p4437_p9)
}
  0xae   : > { %s5813_s22 = smov 128   ;;  %s5853_s5 = sld [smem:[#allocation67_spill]] }
  0xaf   : > { %s5814_s7 = smov 8   ;;  %s4452_s2 = scalar_lea.vmem %s958_s17, 2048 }
  0xb0   : > { %p4453_p11 = scmp.ne.s32.totalorder %s958_s17, %s4452_s2  ;;  %p4460_p13 = scmp.lt.s32.totalorder %s958_s17, %s958_s17 }
  0xb1   : > { %p4461_p0 = scmp.lt.s32.totalorder %s4452_s2, %s4452_s2 }
  0xb2   : > { %p4455_p10 = pnand %p4453_p11, %p5219_p7 }
  0xb3   : > { %p4462_p5 = por %p4461_p0, %p4460_p13 }
  0xb4   : > { %3960 = dma.hbm_to_vmem [thread:$0]  (!%p5209_p6), %s5853_s5, 2048, %s934_s23, [#allocation27], %s5813_s22, %s5813_s22, %s5814_s7  }
  0xb5   : > { %p4456_p12 = pneg %p4455_p10 }
  0xb7   : > { %p4463_p2 = pnand %p4462_p5, %p4456_p12 }
  0xb9   : > { %4466 = shalt.err (!%p4463_p2)
}
  0xba   : > { %s5854_s13 = sld [smem:[#allocation69_spill]]  ;;  %s4988_s10 = smov [#allocation32]  }
  0xbb   : > { %s981_s3 = sshll.u32 %s4988_s10, 4  ;;  %s4989_s23 = smov [#allocation35]   ;;  %s982_s3 = int_to_ptr.vmem [resolvable:$true] %s981_s3 }
  0xbc   : > { %s1011_s1 = sshll.u32 %s4989_s23, 4  ;;  %s4478_s19 = scalar_lea.vmem %s982_s3, 2048  ;;  %s1012_s1 = int_to_ptr.vmem [resolvable:$true] %s1011_s1 }
  0xbd   : > { %p4479_p8 = scmp.ne.s32.totalorder %s982_s3, %s4478_s19  ;;  %p4486_p4 = scmp.lt.s32.totalorder %s982_s3, %s982_s3 }
  0xbe   : > { %p4487_p9 = scmp.lt.s32.totalorder %s4478_s19, %s4478_s19 }
  0xbf   : > { %p4481_p1 = pnand %p4479_p8, %p5219_p7 }
  0xc0   : > { %3966 = dma.hbm_to_vmem [thread:$0]  (!%p5209_p6), %s5854_s13, 2048, %s958_s17, [#allocation30], %s5813_s22, %s5813_s22, %s5814_s7  }
  0xc1   : > { %p4482_p3 = pneg %p4481_p1  ;;  %p4488_p11 = por %p4487_p9, %p4486_p4 }
  0xc3   : > { %p4489_p10 = pnand %p4488_p11, %p4482_p3 }
  0xc5   : > { %4492 = shalt.err (!%p4489_p10)
}
  0xc6   : > { %3972 = dma.hbm_to_vmem [thread:$0]  (!%p5209_p6), %s5130_s27, 2048, %s982_s3, [#allocation33], %s5813_s22, %s5813_s22, %s5814_s7  }
  0xc7   : > { %s4504_s17 = scalar_lea.vmem %s1012_s1, 1024  ;;  %p4512_p5 = scmp.lt.s32.totalorder %s1012_s1, %s1012_s1 }
  0xc8   : > { %p4505_p12 = scmp.ne.s32.totalorder %s1012_s1, %s4504_s17  ;;  %p4513_p2 = scmp.lt.s32.totalorder %s4504_s17, %s4504_s17 }
  0xca   : > { %p4507_p13 = pnand %p4505_p12, %p5219_p7  ;;  %p4514_p8 = por %p4513_p2, %p4512_p5 }
  0xcc   : > { %p4508_p0 = pneg %p4507_p13 }
  0xce   : > { %p4515_p1 = pnand %p4514_p8, %p4508_p0 }
  0xd0   : > { %4518 = shalt.err (!%p4515_p1)
}
  0xd1   : > { %s5815_s2 = smov 64   ;;  %s5817_s10 = smov 4  }
  0xd2   : > { %3978 = dma.hbm_to_vmem [thread:$0]  (!%p5209_p6), %s5150_s30, 1024, %s1012_s1, [#allocation36], %s5815_s2, %s5815_s2, %s5817_s10  }
  0xd3   : > { %s4992_s3 = smov [#allocation2]   ;;  %s4993_s19 = smov [#allocation10]  }
  0xd4   : > { %s769_s23 = sshll.u32 %s4992_s3, 4  ;;  %s808_s22 = sshll.u32 %s4993_s19, 4  ;;  %s770_s23 = int_to_ptr.vmem [resolvable:$true] %s769_s23  ;;  %s809_s22 = int_to_ptr.vmem [resolvable:$true] %s808_s22 }
  0xd5   : > { %s4530_s7 = scalar_lea.vmem %s770_s23, 384  ;;  %p4538_p11 = scmp.lt.s32.totalorder %s770_s23, %s770_s23 }
  0xd6   : > { %p4531_p3 = scmp.ne.s32.totalorder %s770_s23, %s4530_s7  ;;  %p4539_p10 = scmp.lt.s32.totalorder %s4530_s7, %s4530_s7 }
  0xd8   : > { %p4533_p4 = pnand %p4531_p3, %p5219_p7  ;;  %p4540_p12 = por %p4539_p10, %p4538_p11 }
  0xda   : > { %p4534_p9 = pneg %p4533_p4 }
  0xdc   : > { %p4541_p13 = pnand %p4540_p12, %p4534_p9 }
  0xde   : > { %4544 = shalt.err (!%p4541_p13)
}
  0xdf   : > { %s5855_s17 = smov 8   ;;  %s5856_s5 = smov 128  }
  0xe0   : > { %s5857_s9 = sld [smem:[#allocation54_spill]]  ;;  %s4556_s1 = scalar_lea.vmem %s809_s22, 16 }
  0xe1   : > { %p4557_p0 = scmp.ne.s32.totalorder %s809_s22, %s4556_s1  ;;  %s4563_s3 = scalar_lea.vmem %s809_s22, 32 }
  0xe2   : > { %p4564_p8 = scmp.lt.s32.totalorder %s809_s22, %s809_s22  ;;  %p4565_p1 = scmp.lt.s32.totalorder %s4563_s3, %s4556_s1 }
  0xe3   : > { %p4559_p5 = pnand %p4557_p0, %p5219_p7 }
  0xe4   : > { %p4566_p3 = por %p4565_p1, %p4564_p8 }
  0xe5   : > { %p4560_p2 = pneg %p4559_p5 }
  0xe6   : > { %3918 = dma.hbm_to_vmem [thread:$0]  (!%p5209_p6), %s5857_s9, 384, %s770_s23, [#allocation3], %s5856_s5, %s5856_s5, %s5855_s17  }
  0xe7   : > { %p4567_p4 = pnand %p4566_p3, %p4560_p2 }
  0xe9   : > { %4570 = shalt.err (!%p4567_p4)
}
  0xea   : > { %3927 = dma.hbm_to_vmem [thread:$0]  (!%p5209_p6), %s5050_s29, 16, %s809_s22, [#allocation9]  }
  0xeb   : > { %s4994_s7 = smov [#allocation13]   ;;  %s4995_s5 = smov [#allocation16]  }
  0xec   : > { %s830_s19 = sshll.u32 %s4994_s7, 4  ;;  %s852_s23 = sshll.u32 %s4995_s5, 4  ;;  %s831_s19 = int_to_ptr.vmem [resolvable:$true] %s830_s19  ;;  %s853_s23 = int_to_ptr.vmem [resolvable:$true] %s852_s23 }
  0xed   : > { %s4582_s17 = scalar_lea.vmem %s831_s19, 16  ;;  %s4589_s2 = scalar_lea.vmem %s831_s19, 32 }
  0xee   : > { %p4583_p9 = scmp.ne.s32.totalorder %s831_s19, %s4582_s17  ;;  %p4590_p12 = scmp.lt.s32.totalorder %s831_s19, %s831_s19 }
  0xef   : > { %p4591_p13 = scmp.lt.s32.totalorder %s4589_s2, %s4582_s17 }
  0xf0   : > { %p4585_p11 = pnand %p4583_p9, %p5219_p7 }
  0xf1   : > { %p4592_p0 = por %p4591_p13, %p4590_p12 }
  0xf2   : > { %p4586_p10 = pneg %p4585_p11 }
  0xf4   : > { %p4593_p5 = pnand %p4592_p0, %p4586_p10 }
  0xf6   : > { %4596 = shalt.err (!%p4593_p5)
}
  0xf7   : > { %s5858_s8 = sld [smem:[#allocation58_spill]]  ;;  %s4608_s22 = scalar_lea.vmem %s853_s23, 16 }
  0xf8   : > { %p4609_p2 = scmp.ne.s32.totalorder %s853_s23, %s4608_s22  ;;  %s4615_s1 = scalar_lea.vmem %s853_s23, 32 }
  0xf9   : > { %p4616_p3 = scmp.lt.s32.totalorder %s853_s23, %s853_s23  ;;  %p4617_p4 = scmp.lt.s32.totalorder %s4615_s1, %s4608_s22 }
  0xfa   : > { %p4611_p8 = pnand %p4609_p2, %p5219_p7 }
  0xfb   : > { %p4618_p9 = por %p4617_p4, %p4616_p3 }
  0xfc   : > { %p4612_p1 = pneg %p4611_p8 }
  0xfd   : > { %3933 = dma.hbm_to_vmem [thread:$0]  (!%p5209_p6), %s5858_s8, 16, %s831_s19, [#allocation12]  }
  0xfe   : > { %p4619_p11 = pnand %p4618_p9, %p4612_p1 }
 0x100   : > { %4622 = shalt.err (!%p4619_p11)
}
 0x101   : > { %s5859_s2 = sld [smem:[#allocation60_spill]]  ;;  %s4996_s3 = smov [#allocation19]  }
 0x102   : > { %s874_s7 = sshll.u32 %s4996_s3, 4  ;;  %s4997_s19 = smov [#allocation22]   ;;  %s875_s7 = int_to_ptr.vmem [resolvable:$true] %s874_s7 }
 0x103   : > { %s896_s5 = sshll.u32 %s4997_s19, 4  ;;  %s4634_s17 = scalar_lea.vmem %s875_s7, 16  ;;  %s897_s5 = int_to_ptr.vmem [resolvable:$true] %s896_s5 }
 0x104   : > { %p4635_p10 = scmp.ne.s32.totalorder %s875_s7, %s4634_s17  ;;  %s4641_s10 = scalar_lea.vmem %s875_s7, 32 }
 0x105   : > { %p4642_p0 = scmp.lt.s32.totalorder %s875_s7, %s875_s7  ;;  %p4643_p5 = scmp.lt.s32.totalorder %s4641_s10, %s4634_s17 }
 0x106   : > { %p4637_p12 = pnand %p4635_p10, %p5219_p7 }
 0x107   : > { %3939 = dma.hbm_to_vmem [thread:$0]  (!%p5209_p6), %s5859_s2, 16, %s853_s23, [#allocation15]  }
 0x108   : > { %p4638_p13 = pneg %p4637_p12  ;;  %p4644_p2 = por %p4643_p5, %p4642_p0 }
 0x10a   : > { %p4645_p8 = pnand %p4644_p2, %p4638_p13 }
 0x10c   : > { %4648 = shalt.err (!%p4645_p8)
}
 0x10d   : > { %s5860_s22 = sld [smem:[#allocation61_spill]]  ;;  %s4660_s23 = scalar_lea.vmem %s897_s5, 16 }
 0x10e   : > { %p4661_p1 = scmp.ne.s32.totalorder %s897_s5, %s4660_s23  ;;  %s4667_s1 = scalar_lea.vmem %s897_s5, 32 }
 0x10f   : > { %p4668_p9 = scmp.lt.s32.totalorder %s897_s5, %s897_s5  ;;  %p4669_p11 = scmp.lt.s32.totalorder %s4667_s1, %s4660_s23 }
 0x110   : > { %p4663_p3 = pnand %p4661_p1, %p5219_p7 }
 0x111   : > { %p4670_p10 = por %p4669_p11, %p4668_p9 }
 0x112   : > { %p4664_p4 = pneg %p4663_p3 }
 0x113   : > { %3945 = dma.hbm_to_vmem [thread:$0]  (!%p5209_p6), %s5860_s22, 16, %s875_s7, [#allocation18]  }
 0x114   : > { %p4671_p12 = pnand %p4670_p10, %p4664_p4 }
 0x116   : > { %4674 = shalt.err (!%p4671_p12)
}
 0x117   : > { %s5861_s10 = sld [smem:[#allocation63_spill]]  ;;  %s4998_s2 = smov [#allocation25]  }
 0x118   : > { %s917_s3 = sshll.u32 %s4998_s2, 4  ;;  %s918_s3 = int_to_ptr.vmem [resolvable:$true] %s917_s3 }
 0x119   : > { %s4686_s7 = scalar_lea.vmem %s918_s3, 6144  ;;  %p4694_p2 = scmp.lt.s32.totalorder %s918_s3, %s918_s3 }
 0x11a   : > { %p4687_p13 = scmp.ne.s32.totalorder %s918_s3, %s4686_s7  ;;  %p4695_p8 = scmp.lt.s32.totalorder %s4686_s7, %s4686_s7 }
 0x11c   : > { %p4689_p0 = pnand %p4687_p13, %p5219_p7  ;;  %p4696_p1 = por %p4695_p8, %p4694_p2 }
 0x11d   : > { %3951 = dma.hbm_to_vmem [thread:$0]  (!%p5209_p6), %s5861_s10, 16, %s897_s5, [#allocation21]  }
 0x11e   : > { %p4690_p5 = pneg %p4689_p0 }
 0x120   : > { %p4697_p3 = pnand %p4696_p1, %p4690_p5 }
 0x122   : > { %4700 = shalt.err (!%p4697_p3)
}
 0x123   : > { %s4999_s19 = smov 384   ;;  %s5862_s17 = sld [smem:[#allocation65_spill]] }
 0x124   : > { %s5000_s22 = smov 24   ;;  %s5001_s5 = smov [#allocation28]  }
 0x125   : > { %s947_s23 = sshll.u32 %s5001_s5, 4  ;;  %s5002_s1 = smov [#allocation31]   ;;  %s948_s23 = int_to_ptr.vmem [resolvable:$true] %s947_s23 }
 0x126   : > { %s971_s10 = sshll.u32 %s5002_s1, 4  ;;  %s4712_s2 = scalar_lea.vmem %s948_s23, 16  ;;  %s972_s10 = int_to_ptr.vmem [resolvable:$true] %s971_s10 }
 0x127   : > { %p4713_p4 = scmp.ne.s32.totalorder %s948_s23, %s4712_s2  ;;  %s4719_s7 = scalar_lea.vmem %s948_s23, 32 }
 0x128   : > { %p4720_p10 = scmp.lt.s32.totalorder %s948_s23, %s948_s23  ;;  %p4721_p12 = scmp.lt.s32.totalorder %s4719_s7, %s4712_s2 }
 0x129   : > { %3957 = dma.hbm_to_vmem [thread:$0]  (!%p5209_p6), %s5862_s17, 6144, %s918_s3, [#allocation24], %s4999_s19, %s4999_s19, %s5000_s22  }
 0x12a   : > { %p4715_p9 = pnand %p4713_p4, %p5219_p7  ;;  %p4722_p13 = por %p4721_p12, %p4720_p10 }
 0x12c   : > { %p4716_p11 = pneg %p4715_p9 }
 0x12e   : > { %p4723_p0 = pnand %p4722_p13, %p4716_p11 }
 0x130   : > { %4726 = shalt.err (!%p4723_p0)
}
 0x131   : > { %s5863_s3 = sld [smem:[#allocation68_spill]]  ;;  %s4738_s19 = scalar_lea.vmem %s972_s10, 16 }
 0x132   : > { %p4739_p5 = scmp.ne.s32.totalorder %s972_s10, %s4738_s19  ;;  %s4745_s17 = scalar_lea.vmem %s972_s10, 32 }
 0x133   : > { %p4746_p1 = scmp.lt.s32.totalorder %s972_s10, %s972_s10  ;;  %p4747_p3 = scmp.lt.s32.totalorder %s4745_s17, %s4738_s19 }
 0x134   : > { %p4741_p2 = pnand %p4739_p5, %p5219_p7 }
 0x135   : > { %p4748_p4 = por %p4747_p3, %p4746_p1 }
 0x136   : > { %p4742_p8 = pneg %p4741_p2 }
 0x137   : > { %3963 = dma.hbm_to_vmem [thread:$0]  (!%p5209_p6), %s5863_s3, 16, %s948_s23, [#allocation27]  }
 0x138   : > { %p4749_p9 = pnand %p4748_p4, %p4742_p8 }
 0x13a   : > { %4752 = shalt.err (!%p4749_p9)
}
 0x13b   : > { %s5864_s22 = sld [smem:[#allocation70_spill]]  ;;  %s5003_s5 = smov [#allocation34]  }
 0x13c   : > { %s995_s1 = sshll.u32 %s5003_s5, 4  ;;  %s5004_s2 = smov [#allocation37]   ;;  %s996_s1 = int_to_ptr.vmem [resolvable:$true] %s995_s1 }
 0x13d   : > { %s1027_s23 = sshll.u32 %s5004_s2, 4  ;;  %s4764_s7 = scalar_lea.vmem %s996_s1, 32  ;;  %s1028_s23 = int_to_ptr.vmem [resolvable:$true] %s1027_s23 }
 0x13e   : > { %p4765_p11 = scmp.ne.s32.totalorder %s996_s1, %s4764_s7  ;;  %p4772_p13 = scmp.lt.s32.totalorder %s996_s1, %s996_s1 }
 0x13f   : > { %p4773_p0 = scmp.lt.s32.totalorder %s4764_s7, %s4764_s7 }
 0x140   : > { %p4767_p10 = pnand %p4765_p11, %p5219_p7 }
 0x141   : > { %3969 = dma.hbm_to_vmem [thread:$0]  (!%p5209_p6), %s5864_s22, 16, %s972_s10, [#allocation30]  }
 0x142   : > { %p4768_p12 = pneg %p4767_p10  ;;  %p4774_p5 = por %p4773_p0, %p4772_p13 }
 0x144   : > { %p4775_p2 = pnand %p4774_p5, %p4768_p12 }
 0x146   : > { %4778 = shalt.err (!%p4775_p2)
}
 0x147   : > { %s5865_s3 = sld [smem:[#allocation71_spill]]  ;;  %s4790_s10 = scalar_lea.vmem %s1028_s23, 1024 }
 0x148   : > { %p4791_p8 = scmp.ne.s32.totalorder %s1028_s23, %s4790_s10  ;;  %p4798_p4 = scmp.lt.s32.totalorder %s1028_s23, %s1028_s23 }
 0x149   : > { %p4799_p9 = scmp.lt.s32.totalorder %s4790_s10, %s4790_s10 }
 0x14a   : > { %p4793_p1 = pnand %p4791_p8, %p5219_p7 }
 0x14b   : > { %p4800_p11 = por %p4799_p9, %p4798_p4 }
 0x14c   : > { %p4794_p3 = pneg %p4793_p1 }
 0x14d   : > { %3975 = dma.hbm_to_vmem [thread:$0]  (!%p5209_p6), %s5865_s3, 32, %s996_s1, [#allocation33]  }
 0x14e   : > { %p4801_p10 = pnand %p4800_p11, %p4794_p3 }
 0x150   : > { %4804 = shalt.err (!%p4801_p10)
}
 0x151   : > { %s5866_s19 = smov 4   ;;  %s5867_s17 = smov 64  }
 0x152   : > { %s5868_s12 = sld [smem:[#allocation75_spill]]  ;;  %s3352_s4 = sadd.s32 4294967294, %s4945_s18  }
 0x153   : > { %s5366_s11 = sadd.s32 1, %s4945_s18   ;;  %s137_s5 = sadd.s32 1, %s4941_s0 }
 0x154   : > { %s134_s22 = ssub.s32 %s4945_s18, %s5366_s11  ;;  %s5869_s1 = sld [smem:[#allocation55_spill]] }
 0x155   : > { %p135_p7 = scmp.eq.s32.totalorder %s134_s22, 0  ;;  %p144_p12 = scmp.ne.s32.totalorder %s4941_s0, %s4937_s16 }
 0x156   : > { %p145_p13 = scmp.eq.s32.totalorder %s4945_s18, 0  ;;  %p150_p0 = scmp.ne.s32.totalorder %s4937_s16, %s4933_s15 }
 0x157   : > { %s5377_s2 = scalar_select %p135_p7, %s4941_s0, %s137_s5  }
 0x158   : > { %3981 = dma.hbm_to_vmem [thread:$0]  (!%p5209_p6), %s5868_s12, 1024, %s1028_s23, [#allocation36], %s5867_s17, %s5867_s17, %s5866_s19  }
 0x159   : > { %p5379_p5 = por %p145_p13, %p144_p12  ;;  %p5871_p6 = scmp.eq.s32.totalorder %s5193_s26, 0 }
 0x15a   : > { %p741_p8 = scmp.eq.s32.totalorder %s5193_s26, 1  ;;  %p747_p1 = scmp.eq.s32.totalorder %s3352_s4, 1 }
 0x15b   : > { %p5385_p2 = por %p5871_p6, %p150_p0  ;;  %p4012_p3 = scmp.lt.s32.totalorder %s4945_s18, 2 }
 0x15c   : > { %s1044_s3 = sand.u32 1, %s4945_s18   ;;  %p5392_p4 = por %p741_p8, %p144_p12 }
 0x15d   : > { %s5872_s23 = scalar_select %p5385_p2, 1, 0 }
 0x15e   : > { %s5873_s10 = scalar_select %p5392_p4, 1, 0 }
 0x15f   : > { %p5396_p9 = por %p747_p1, %p150_p0  ;;  %s1046_s5 = sand.u32 1, %s4941_s0  }
 0x160   : > { %s3377_s6 = sshll.u32 %s1046_s5, 5  ;;  %s3476_s8 = sshll.u32 %s4945_s18, 9 }
 0x161   : > { %s5874_s22 = scalar_select %p5396_p9, 1, 0 }
 0x162   : > { %s5403_s9 = scalar_lea.hbm %s5869_s1, %s3476_s8  ;;  %s1048_s4 = scalar_lea.vmem [#allocation5], %s3377_s6 }
 0x163   : > { %s1055_s12 = sshll.u32 %s1048_s4, 4  ;;  %p5407_p11 = pnand %p4012_p3, %p5379_p5  ;;  %s5411_s12 = int_to_ptr.vmem [resolvable:$true] %s1055_s12 }
 0x164   : > { %s5413_s14 = scalar_lea.sflag [#allocation6], %s1044_s3  ;;  %s4805_s20 = scalar_lea.hbm %s5403_s9, 512 }
 0x165   : > { %p4806_p10 = scmp.ne.s32.totalorder %s5403_s9, %s4805_s20  ;;  %p4807_p7 = pneg %p5407_p11 }
 0x166   : > { %s4810_s8 = scalar_lea.hbm %s5869_s1, 1024  ;;  %p4811_p0 = scmp.lt.s32.totalorder %s5403_s9, %s5869_s1 }
 0x167   : > { %p4808_p12 = pnand %p4807_p7, %p4806_p10  ;;  %p4812_p6 = scmp.lt.s32.totalorder %s4810_s8, %s4805_s20 }
 0x169   : > { %p4809_p13 = pneg %p4808_p12  ;;  %p4813_p8 = por %p4812_p6, %p4811_p0 }
 0x16b   : > { %p4814_p1 = pnand %p4813_p8, %p4809_p13 }
 0x16d   : > { %4817 = shalt.err (!%p4814_p1)
}
 0x16e   : > { %s4818_s6 = scalar_lea.vmem %s5411_s12, 512  ;;  %s5005_s7 = smov [#allocation5]  }
 0x16f   : > { %p4819_p5 = scmp.ne.s32.totalorder %s5411_s12, %s4818_s6  ;;  %s4823_s3 = sshll.u32 %s5005_s7, 4  ;;  %s4824_s3 = int_to_ptr.vmem [resolvable:$false] %s4823_s3 }
 0x170   : > { %s4825_s5 = scalar_lea.vmem %s4824_s3, 1024  ;;  %p4826_p4 = scmp.lt.s32.totalorder %s5411_s12, %s4824_s3 }
 0x171   : > { %p4821_p3 = pnand %p4819_p5, %p4807_p7  ;;  %p4827_p10 = scmp.lt.s32.totalorder %s4825_s5, %s4818_s6 }
 0x173   : > { %p4822_p9 = pneg %p4821_p3  ;;  %p4828_p12 = por %p4827_p10, %p4826_p4 }
 0x175   : > { %p4829_p2 = pnand %p4828_p12, %p4822_p9 }
 0x177   : > { %4832 = shalt.err (!%p4829_p2)
}
 0x178   : > { %3985 = dma.hbm_to_vmem [thread:$0]  (!%p5407_p11), %s5403_s9, 512, %s5411_s12, %s5413_s14, %s5867_s17, %s5867_s17, %s5866_s19  }
 0x179   : > { %p5876_p7 = scmp.ne.s32.totalorder %s5846_s28, 0 }
 0x17a   : > { %p5877_p13 = scmp.eq.s32.totalorder (!%p5876_p7), %s5193_s26, 0 }
 0x17b   : > { %1067 = sbr.rel (%p5876_p7) target bundleno = 4799 (0x12bf), region = 140 }
 0x180   : > { %4876 = dma.done.wait (%p5877_p13), [#allocation3], 384   ;;  %p5878_p0 = pmov %p5877_p13 }
 0x181   : > { %s1073_s13 = sand.u32 1, %s5193_s26   ;;  %s5441_s20 = sand.u32 1, %s4937_s16  }
 0x182   : > { %4878 = vsyncadd (%p5878_p0), [#allocation3], 4294966912  ;;  %s3382_s4 = sshll.u32 %s5441_s20, 5  ;;  %s1074_s8 = scalar_lea.sflag [#allocation6], %s1073_s13 }
 0x183   : > { %s5444_s6 = scalar_lea.vmem [#allocation5], %s3382_s4  ;;  %p5879_p2 = scmp.ne.s32.totalorder %s5872_s23, 0 }
 0x185   : > { %4880 = dma.done.wait (%p5879_p2), %s1074_s8, 512  }
 0x186   : > { %4882 = vsyncadd (%p5879_p2), %s1074_s8, 4294966784  ;;  %p5880_p4 = pmov %p5878_p0 }
 0x187   : > { %p5881_p9 = pmov %p5878_p0 }
 0x188   : > { %4884 = dma.done.wait (%p5880_p4), [#allocation6], 16  }
 0x189   : > { %4886 = vsyncadd (%p5881_p9), [#allocation6], 4294967280  ;;  %p5882_p11 = pmov %p5878_p0 }
 0x18a   : > { %p5883_p6 = pmov %p5878_p0 }
 0x18b   : > { %4888 = dma.done.wait (%p5882_p11), [#allocation9], 32  }
 0x18c   : > { %4890 = vsyncadd (%p5883_p6), [#allocation9], 4294967264  ;;  %p5884_p8 = pmov %p5878_p0 }
 0x18d   : > { %p5885_p1 = pmov %p5878_p0 }
 0x18e   : > { %4892 = dma.done.wait (%p5884_p8), [#allocation12], 32  }
 0x18f   : > { %4894 = vsyncadd (%p5885_p1), [#allocation12], 4294967264  ;;  %p5886_p5 = pmov %p5878_p0 }
 0x190   : > { %p5887_p3 = pmov %p5878_p0 }
 0x191   : > { %4896 = dma.done.wait (%p5886_p5), [#allocation15], 32  }
 0x192   : > { %4898 = vsyncadd (%p5887_p3), [#allocation15], 4294967264  ;;  %p5888_p10 = pmov %p5878_p0 }
 0x193   : > { %p5889_p12 = pmov %p5878_p0 }
 0x194   : > { %4900 = dma.done.wait (%p5888_p10), [#allocation18], 32  }
 0x195   : > { %4902 = vsyncadd (%p5889_p12), [#allocation18], 4294967264  ;;  %p5890_p7 = pmov %p5878_p0 }
 0x196   : > { %p5891_p13 = pmov %p5878_p0 }
 0x197   : > { %4904 = dma.done.wait (%p5890_p7), [#allocation21], 32  }
 0x198   : > { %4906 = vsyncadd (%p5891_p13), [#allocation21], 4294967264 }
 0x199   : > { %4908 = dma.done.wait (%p5878_p0), [#allocation24], 6160   ;;  %p5892_p2 = pmov %p5878_p0 }
 0x19a   : > { %p5893_p4 = pmov %p5878_p0 }
 0x19b   : > { %4910 = vsyncadd (%p5892_p2), [#allocation24], 4294961136 }
 0x19c   : > { %4912 = dma.done.wait (%p5893_p4), [#allocation27], 2064   ;;  %p5894_p9 = pmov %p5878_p0 }
 0x19d   : > { %p5895_p11 = pmov %p5878_p0 }
 0x19e   : > { %4914 = vsyncadd (%p5894_p9), [#allocation27], 4294965232 }
 0x19f   : > { %4916 = dma.done.wait (%p5895_p11), [#allocation30], 2064   ;;  %p5896_p6 = pmov %p5878_p0 }
 0x1a0   : > { %p5897_p8 = pmov %p5878_p0 }
 0x1a1   : > { %4918 = vsyncadd (%p5896_p6), [#allocation30], 4294965232 }
 0x1a2   : > { %4920 = dma.done.wait (%p5897_p8), [#allocation33], 2080   ;;  %p5898_p1 = pmov %p5878_p0 }
 0x1a3   : > { %p5899_p5 = pmov %p5878_p0 }
 0x1a4   : > { %4922 = vsyncadd (%p5898_p1), [#allocation33], 4294965216 }
 0x1a5   : > { %4924 = dma.done.wait (%p5899_p5), [#allocation36], 2048   ;;  %p5900_p3 = pmov %p5878_p0 }
 0x1a6   : > { %s5901_s9 = sld [smem:[#allocation56_spill]]  ;;  %vm1243_vm0 = vcmask 1042432   ;;  %v1318_v2 = vld [vmem:[#allocation25 + $0x170] sm:$0xff]  ;;  %v1317_v3 = vld [vmem:[#allocation25 + $0x168] sm:$0xff]  ;;  %v1319_v4 = vld [vmem:[#allocation25 + $0x178] sm:$0xff]  ;;  %v5006_v5 = vmov 0.0  }
 0x1a7   : > { %4926 = vsyncadd (%p5900_p3), [#allocation36], 4294965248  ;;  %1337 = vmatprep.subr.mxu0 %v1318_v2  ;;  %3600 = vmatprep.subr.mxu1 %v5006_v5  ;;  %v1315_v6 = vld [vmem:[#allocation25 + $0x158] sm:$0xff]  ;;  %v1314_v7 = vld [vmem:[#allocation25 + $0x150] sm:$0xff]  ;;  %vm5007_vm1 = vmmov 0   ;;  %s5902_s14 = sld [smem:[#allocation66_spill]] }
 0x1a8   : > { %v1316_v8 = vld [vmem:[#allocation25 + $0x160] sm:$0xff]  ;;  %1338 = vmatpush1.msra.mxu0 %v1317_v3  ;;  %3601 = vmatpush3.msra.mxu1 %v1319_v4  ;;  %v1311_v10 = vld [vmem:[#allocation25 + $0x138] sm:$0xff]  ;;  %v1313_v11 = vld [vmem:[#allocation25 + $0x148] sm:$0xff]  ;;  %vm1549_vm2 = vcmask 18432   ;;  %vm1561_vm3 = vcmask 23552   ;;  %s5903_s12 = sld [smem:[#allocation53_spill]] }
 0x1a9   : > { %v1312_v9 = vld [vmem:[#allocation25 + $0x140] sm:$0xff]  ;;  %1339 = vmatprep.subr.mxu0 %v1315_v6  ;;  %3602 = vmatprep.subr.mxu1 %v5006_v5  ;;  %v1309_v12 = vld [vmem:[#allocation25 + $0x128] sm:$0xff]  ;;  %v1310_v14 = vld [vmem:[#allocation25 + $0x130] sm:$0xff]  ;;  %vm2320_vm4 = vcmask 523264   ;;  %s5904_s28 = sld [smem:[#allocation72_spill]]  ;;  %s3821_s7 = smul.u32 24, %s5441_s20 }
 0x1aa   : > { %v1308_v13 = vld [vmem:[#allocation25 + $0x120] sm:$0xff]  ;;  %1340 = vmatpush1.msra.mxu0 %v1314_v7  ;;  %3603 = vmatpush3.msra.mxu1 %v1316_v8  ;;  %v1306_v20 = vld [vmem:[#allocation25 + $0x110] sm:$0xff]  ;;  %v1305_v21 = vld [vmem:[#allocation25 + $0x108] sm:$0xff]  ;;  %s5905_s19 = sld [smem:[#allocation73_spill]]  ;;  %s3822_s5 = smul.u32 384, %s5193_s26 }
 0x1ab   : > { %1341 = vmatprep.subr.mxu0 %v1312_v9  ;;  %3604 = vmatprep.subr.mxu1 %v5006_v5  ;;  %v1307_v22 = vld [vmem:[#allocation25 + $0x118] sm:$0xff]  ;;  %v1302_v24 = vld [vmem:[#allocation25 + $0xf0] sm:$0xff]  ;;  %v1304_v25 = vld [vmem:[#allocation25 + $0x100] sm:$0xff]  ;;  %s5906_s17 = sld [smem:[#allocation74_spill]]  ;;  %s1237_s13 = scalar_lea.vmem [#allocation38], %s3821_s7 }
 0x1ac   : > { %v1240_v0 = vld [vmem:[%s5901_s9] sm:$0x7]  ;;  %1342 = vmatpush1.msra.mxu0 %v1311_v10  ;;  %3605 = vmatpush3.msra.mxu1 %v1313_v11  ;;  %v1303_v23 = vld [vmem:[#allocation25 + $0xf8] sm:$0xff]  ;;  %v1300_v26 = vld [vmem:[#allocation25 + $0xe0] sm:$0xff]  ;;  %s5907_s23 = sld [smem:[#allocation76_spill]]  ;;  %s3038_s4 = sshll.u32 %s1237_s13, 4  ;;  %s5767_s4 = int_to_ptr.vmem [resolvable:$true] %s3038_s4 }
 0x1ad   : > { %v1244_v1 = vsel %vm1243_vm0, %v1240_v0, 0.0  ;;  %1343 = vmatprep.subr.mxu0 %v1309_v12  ;;  %3606 = vmatprep.subr.mxu1 %v5006_v5  ;;  %v1299_v27 = vld [vmem:[#allocation25 + $0xd8] sm:$0xff]  ;;  %v1301_v28 = vld [vmem:[#allocation25 + $0xe8] sm:$0xff]  ;;  %v1296_v30 = vld [vmem:[#allocation25 + $0xc0] sm:$0xff]  ;;  %s5908_s3 = sld [smem:[#allocation77_spill]]  ;;  %s4833_s26 = scalar_lea.vmem %s5767_s4, 384 }
 0x1ae   : > { %1245 = vadd.xlane.f32.xlu0 %v1244_v1  ;;  %1344 = vmatpush1.msra.mxu0 %v1308_v13  ;;  %v1297_v29 = vld [vmem:[#allocation25 + $0xc8] sm:$0xff]  ;;  %v1298_v31 = vld [vmem:[#allocation25 + $0xd0] sm:$0xff]  ;;  %v1295_v34 = vld [vmem:[#allocation25 + $0xb8] sm:$0xff]  ;;  %v1322_v1 = vlaneseq  ;;  %p4834_p10 = scmp.ne.s32.totalorder %s5767_s4, %s4833_s26  ;;  %p5909_p12 = scmp.ne.s32.totalorder %s5873_s10, 0 }
 0x1af   : > { %3607 = vmatpush3.msra.mxu1 %v1310_v14  ;;  %1401 = vmatprep.mubr.f32.mxu0 %v5006_v5  ;;  %v1294_v32 = vld [vmem:[#allocation25 + $0xb0] sm:$0xff]  ;;  %v1293_v33 = vld [vmem:[#allocation25 + $0xa8] sm:$0xff]  ;;  %v1291_v35 = vld [vmem:[#allocation25 + $0x98] sm:$0xff]  ;;  %s5009_s9 = smov [#allocation38]  }
 0x1b0   : > { %3608 = vmatprep.subr.mxu1 %v5006_v5  ;;  %1345 = vmatprep.subr.mxu0 %v1306_v20  ;;  %v1290_v36 = vld [vmem:[#allocation25 + $0x90] sm:$0xff]  ;;  %v1292_v37 = vld [vmem:[#allocation25 + $0xa0] sm:$0xff]  ;;  %v1287_v39 = vld [vmem:[#allocation25 + $0x78] sm:$0xff]  ;;  %v5527_v2 = vshrl.u32 %v1322_v1, 7  ;;  %p4835_p7 = pnand %p4834_p10, %p5909_p12 }
 0x1b1   : > { %1346 = vmatpush1.msra.mxu0 %v1305_v21  ;;  %3609 = vmatpush3.msra.mxu1 %v1307_v22  ;;  %v1288_v38 = vld [vmem:[#allocation25 + $0x80] sm:$0xff]  ;;  %v1289_v40 = vld [vmem:[#allocation25 + $0x88] sm:$0xff]  ;;  %v1286_v43 = vld [vmem:[#allocation25 + $0x70] sm:$0xff] }
 0x1b2   : > { %1347 = vmatprep.subr.mxu0 %v1303_v23  ;;  %3610 = vmatprep.subr.mxu1 %v5006_v5  ;;  %v1285_v41 = vld [vmem:[#allocation25 + $0x68] sm:$0xff]  ;;  %v1284_v42 = vld [vmem:[#allocation25 + $0x60] sm:$0xff]  ;;  %v1282_v44 = vld [vmem:[#allocation25 + $0x50] sm:$0xff]  ;;  %v1328_v3 = vsub.s32 1, %v5527_v2  ;;  %v1332_v7 = vsub.s32 2, %v5527_v2  ;;  %v1324_v9 = vsub.s32 0, %v5527_v2  ;;  %p4836_p13 = pneg %p4835_p7 }
 0x1b3   : > { %1348 = vmatpush1.msra.mxu0 %v1302_v24  ;;  %3611 = vmatpush3.msra.mxu1 %v1304_v25  ;;  %v1281_v45 = vld [vmem:[#allocation25 + $0x48] sm:$0xff]  ;;  %v1283_v46 = vld [vmem:[#allocation25 + $0x58] sm:$0xff]  ;;  %v1278_v48 = vld [vmem:[#allocation25 + $0x30] sm:$0xff]  ;;  %s5765_s8 = scalar_lea.hbm %s5908_s3, %s3822_s5 }
 0x1b4   : > { %1349 = vmatprep.subr.mxu0 %v1300_v26  ;;  %3612 = vmatprep.subr.mxu1 %v5006_v5  ;;  %v1279_v47 = vld [vmem:[#allocation25 + $0x38] sm:$0xff]  ;;  %v1280_v49 = vld [vmem:[#allocation25 + $0x40] sm:$0xff]  ;;  %v1277_v52 = vld [vmem:[#allocation25 + $0x28] sm:$0xff] }
 0x1b5   : > { %1350 = vmatpush1.msra.mxu0 %v1299_v27  ;;  %3613 = vmatpush3.msra.mxu1 %v1301_v28  ;;  %v1276_v50 = vld [vmem:[#allocation25 + $0x20] sm:$0xff]  ;;  %v1275_v51 = vld [vmem:[#allocation25 + $0x18] sm:$0xff]  ;;  %v1273_v53 = vld [vmem:[#allocation25 + $0x8] sm:$0xff] }
 0x1b6   : > { %1351 = vmatprep.subr.mxu0 %v1297_v29  ;;  %3614 = vmatprep.subr.mxu1 %v5006_v5  ;;  %v1272_v54 = vld [vmem:[#allocation25] sm:$0xff]  ;;  %v1274_v55 = vld [vmem:[#allocation25 + $0x10] sm:$0xff]  ;;  %v3404_v60 = vld [vmem:[#allocation7] ss:$0 sm:$0xff] }
 0x1b7   : > { %1352 = vmatpush1.msra.mxu0 %v1296_v30  ;;  %3615 = vmatpush3.msra.mxu1 %v1298_v31  ;;  %v3405_v62 = vld [vmem:[#allocation8] ss:$0 sm:$0xff]  ;;  %v5530_v4 = vld [vmem:[#allocation34] sm:$0x3]  ;;  %v1320_v8 = vld [vmem:[%s5902_s14] sm:$0x7] }
 0x1b8   : > { %1353 = vmatprep.subr.mxu0 %v1294_v32  ;;  %3616 = vmatprep.subr.mxu1 %v5006_v5  ;;  %v5533_v6 = vrot.slane %v5530_v4, %v1328_v3  ;;  %v1333_v10 = vrot.slane %v1320_v8, %v1332_v7  ;;  %v1325_v11 = vrot.slane %v1320_v8, %v1324_v9  ;;  %v1653_v29 = vld [vmem:[#allocation26 + $0x78] sm:$0xff]  ;;  %v1652_v30 = vld [vmem:[#allocation26 + $0x70] sm:$0xff]  ;;  %v1651_v31 = vld [vmem:[#allocation26 + $0x68] sm:$0xff]  ;;  %s4837_s14 = sshll.u32 %s5009_s9, 4  ;;  %s4838_s14 = int_to_ptr.vmem [resolvable:$false] %s4837_s14 }
 0x1b9   : > { %1354 = vmatpush1.msra.mxu0 %v1293_v33  ;;  %3617 = vmatpush3.msra.mxu1 %v1295_v34  ;;  %v1329_v12 = vrot.slane %v1320_v8, %v1328_v3  ;;  %v5547_v32 = vld [vmem:[%s5444_s6] sm:$0xff]   ;;  %v5551_v34 = vld [vmem:[%s5444_s6 + $0x8] sm:$0xff]   ;;  %p4840_p0 = scmp.lt.s32.totalorder %s5767_s4, %s4838_s14 }
 0x1ba   : > { %1355 = vmatprep.subr.mxu0 %v1291_v35  ;;  %3618 = vmatprep.subr.mxu1 %v5006_v5  ;;  %v3479_v33 = vunpack.c.l.bf16 %v5547_v32  ;;  %v1650_v35 = vld [vmem:[#allocation26 + $0x60] sm:$0xff] }
 0x1bb   : > { %1356 = vmatpush1.msra.mxu0 %v1290_v36  ;;  %3619 = vmatpush3.msra.mxu1 %v1292_v37  ;;  %v3483_v36 = vunpack.c.l.bf16 %v5551_v34  ;;  %v1649_v37 = vld [vmem:[#allocation26 + $0x58] sm:$0xff] }
 0x1bc   : > { %1357 = vmatprep.subr.mxu0 %v1288_v38  ;;  %3620 = vmatprep.subr.mxu1 %v5006_v5  ;;  %v5559_v38 = vld [vmem:[%s5444_s6 + $0x10] sm:$0xff]  }
 0x1bd   : > { %1358 = vmatpush1.msra.mxu0 %v1287_v39  ;;  %3621 = vmatpush3.msra.mxu1 %v1289_v40  ;;  %v1648_v39 = vld [vmem:[#allocation26 + $0x50] sm:$0xff]  ;;  %v3487_v40 = vunpack.c.l.bf16 %v5559_v38 }
 0x1be   : > { %1359 = vmatprep.subr.mxu0 %v1285_v41  ;;  %3622 = vmatprep.subr.mxu1 %v5006_v5  ;;  %v1647_v41 = vld [vmem:[#allocation26 + $0x48] sm:$0xff] }
 0x1bf   : > { %1360 = vmatpush1.msra.mxu0 %v1284_v42  ;;  %3623 = vmatpush3.msra.mxu1 %v1286_v43  ;;  %v1646_v42 = vld [vmem:[#allocation26 + $0x40] sm:$0xff]  ;;  %v1645_v43 = vld [vmem:[#allocation26 + $0x38] sm:$0xff] }
 0x1c0   : > { %1361 = vmatprep.subr.mxu0 %v1282_v44  ;;  %3624 = vmatprep.subr.mxu1 %v5006_v5  ;;  %v1644_v44 = vld [vmem:[#allocation26 + $0x30] sm:$0xff] }
 0x1c1   : > { %1362 = vmatpush1.msra.mxu0 %v1281_v45  ;;  %3625 = vmatpush3.msra.mxu1 %v1283_v46  ;;  %v1643_v45 = vld [vmem:[#allocation26 + $0x28] sm:$0xff]  ;;  %v1642_v46 = vld [vmem:[#allocation26 + $0x20] sm:$0xff] }
 0x1c2   : > { %1363 = vmatprep.subr.mxu0 %v1279_v47  ;;  %3626 = vmatprep.subr.mxu1 %v5006_v5  ;;  %v1641_v47 = vld [vmem:[#allocation26 + $0x18] sm:$0xff] }
 0x1c3   : > { %1364 = vmatpush1.msra.mxu0 %v1278_v48  ;;  %3627 = vmatpush3.msra.mxu1 %v1280_v49  ;;  %v1640_v48 = vld [vmem:[#allocation26 + $0x10] sm:$0xff]  ;;  %v1639_v49 = vld [vmem:[#allocation26 + $0x8] sm:$0xff] }
 0x1c4   : > { %1365 = vmatprep.subr.mxu0 %v1276_v50  ;;  %3628 = vmatprep.subr.mxu1 %v5006_v5 }
 0x1c5   : > { %1366 = vmatpush1.msra.mxu0 %v1275_v51  ;;  %3629 = vmatpush3.msra.mxu1 %v1277_v52 }
 0x1c6   : > { %1367 = vmatprep.subr.mxu0 %v1273_v53  ;;  %3630 = vmatprep.subr.mxu1 %v5006_v5  ;;  %v1638_v53 = vld [vmem:[#allocation26] sm:$0xff] }
 0x1c7   : > { %1368 = vmatpush1.msra.mxu0 %v1272_v54  ;;  %3631 = vmatpush3.msra.mxu1 %v1274_v55  ;;  %v3495_v54 = vld [vmem:[%s5444_s6 + $0x18] sm:$0xff]   ;;  %v3480_v55 = vunpack.c.h.bf16 %v5547_v32  ;;  %s3025_s6 = scalar_lea.sflag [#allocation4], %s5441_s20 }
 0x1c8   : > { %3632 = vmatprep.mubr.msk.f32.mxu1 %vm5007_vm1, %v5006_v5  ;;  %3640 = vmatprep.subr.mxu1 %v5006_v5 }
 0x1c9   : > { %3635 = vmatprep.subr.mxu0 %v5006_v5 }
 0x237   : > { %v1246_v15 = vpop.xlane.xlu0 %1245 }
 0x238   : > { %v1248_v16 = vmul.f32 0.0078125, %v1246_v15 }
 0x23a   : > { %v5502_v17 = vsub.f32 %v1240_v0, %v1248_v16 }
 0x23c   : > { %v1250_v18 = vmul.f32 %v5502_v17, %v5502_v17 }
 0x23e   : > { %v1251_v19 = vsel %vm1243_vm0, %v1250_v18, 0.0 }
 0x23f   : > { %1252 = vadd.xlane.f32.xlu0 %v1251_v19 }
 0x243   : > { %1872 = vadd.xlane.f32.xlu0 %v3479_v33 }
 0x247   : > { %1876 = vadd.xlane.f32.xlu0 %v3483_v36 }
 0x24b   : > { %1880 = vadd.xlane.f32.xlu0 %v3487_v40 }
 0x2c8   : > { %v1253_v56 = vpop.xlane.xlu0 %1252 }
 0x2c9   : > { %v1254_v57 = vmul.f32 0.0078125, %v1253_v56  ;;  %v3491_v56 = vunpack.c.l.bf16 %v3495_v54 }
 0x2cb   : > { %v1255_v58 = vadd.f32 1e-05, %v1254_v57  ;;  %v3484_v57 = vunpack.c.h.bf16 %v5551_v34  ;;  %1884 = vadd.xlane.f32.xlu0 %v3491_v56 }
 0x2cd   : > { %4179 = vrsqrt.f32 %v1255_v58  ;;  %v1873_v58 = vpop.xlane.xlu0 %1872 }
 0x2da   : > { %v4180_v59 = vpop.eup %4179 }
 0x2db   : > { %v1257_v61 = vmul.f32 %v4180_v59, %v5502_v17  ;;  %v3488_v59 = vunpack.c.h.bf16 %v5559_v38 }
 0x2dd   : > { %v1264_v63 = vmul.f32 %v3404_v60, %v1257_v61  ;;  %v1888_v60 = vmul.f32 0.0078125, %v1873_v58  ;;  %v1877_v61 = vpop.xlane.xlu0 %1876  ;;  %v1774_v58 = vld [vmem:[#allocation29 + $0x70] sm:$0xff] }
 0x2df   : > { %v1271_v0 = vadd.f32 %v3405_v62, %v1264_v63  ;;  %v3492_v62 = vunpack.c.h.bf16 %v3495_v54  ;;  %v5587_v63 = vsub.f32 %v3479_v33, %v1888_v60  ;;  %v4154_v54 = vld [vmem:[#allocation32 + $0x4] ss:$8 sps:$4 sm:$0xff]  }
 0x2e0   : > { %v1772_v60 = vld [vmem:[#allocation29 + $0x60] sm:$0xff] }
 0x2e1   : > { %1402 = vmatmul.mubr.f32.vlgmr.msra.gmra.mxu0 %v1271_v0  ;;  %3633 = vmatmul.mubr.f32.vlgmr.msra.gmra.mxu1 %v1271_v0  ;;  %v1890_v0 = vmul.f32 0.0078125, %v1877_v61  ;;  %v1881_v1 = vpop.xlane.xlu0 %1880  ;;  %v1904_v3 = vmul.f32 %v5587_v63, %v5587_v63 }
 0x2e2   : > { %3637 = vmatprep.mubr.msk.f32.mxu0 %vm5007_vm1, %v5006_v5  ;;  %3642 = vmatprep.mubr.msk.f32.mxu1 %vm5007_vm1, %v5006_v5  ;;  %v1892_v8 = vmul.f32 0.0078125, %v1881_v1 }
 0x2e3   : > { %v5593_v7 = vsub.f32 %v3483_v36, %v1890_v0 }
 0x3a1   : > { %v1403_v13 = vpop.f32.mrf.mxu0  ;;  %v1474_v14 = vpop.f32.mrf.mxu1 }
 0x3a2   : > { %v1475_v15 = vadd.f32 %v1474_v14, %v1333_v10  ;;  %v1404_v16 = vadd.f32 %v1403_v13, %v1325_v11  ;;  %v1906_v10 = vmul.f32 %v5593_v7, %v5593_v7  ;;  %v5599_v11 = vsub.f32 %v3487_v40, %v1892_v8 }
 0x3a3   : > { %v1405_v17 = vpop.f32.mrf.mxu0  ;;  %v3634_v18 = vpop.f32.mrf.mxu1 }
 0x3a4   : > { %v1406_v19 = vadd.f32 %v1405_v17, %v1329_v12  ;;  %3641 = vmatpush3.msk.msra.mxu1 %vm1243_vm0, %v1475_v15  ;;  %v1478_v20 = vmul.f32 0.088388346, %v1404_v16  ;;  %v1908_v12 = vmul.f32 %v5599_v11, %v5599_v11  ;;  %v1885_v15 = vpop.xlane.xlu0 %1884 }
 0x3a5   : > { %3680 = vmatprep.subr.mxu1 %v5006_v5  ;;  %v1894_v16 = vmul.f32 0.0078125, %v1885_v15 }
 0x3a6   : > { %3636 = vmatpush3.xpose.msra.mxu0 %v1406_v19  ;;  %v4131_v19 = vld [vmem:[#allocation32 + $0x70] ss:$8 sps:$4 sm:$0xff]  }
 0x3a7   : > { %3645 = vmatprep.subr.mxu0 %v5006_v5  ;;  %v5603_v17 = vsub.f32 %v3491_v56, %v1894_v16  ;;  %v4152_v56 = vld [vmem:[#allocation32] ss:$8 sps:$4 sm:$0xff]  }
 0x3a9   : > { %3638 = vmatmul.mubr.f32.vlgmr.msra.gmra.mxu0 %v1478_v20  ;;  %v1910_v18 = vmul.f32 %v5603_v17, %v5603_v17  ;;  %v4133_v20 = vld [vmem:[#allocation32 + $0x74] ss:$8 sps:$4 sm:$0xff]  }
 0x3aa   : > { %3677 = vmatprep.mubr.msk.f32.mxu0 %vm5007_vm1, %v5006_v5  ;;  %3646 = vmatpush3.msra.mxu0 %v1653_v29 }
 0x3ab   : > { %3647 = vmatprep.subr.mxu0 %v5006_v5 }
 0x3ac   : > { %3648 = vmatpush3.msra.mxu0 %v1652_v30 }
 0x3ad   : > { %3649 = vmatprep.subr.mxu0 %v5006_v5 }
 0x3ae   : > { %3650 = vmatpush3.msra.mxu0 %v1651_v31 }
 0x3af   : > { %3651 = vmatprep.subr.mxu0 %v5006_v5 }
 0x3b0   : > { %3652 = vmatpush3.msra.mxu0 %v1650_v35 }
 0x3b1   : > { %3653 = vmatprep.subr.mxu0 %v5006_v5 }
 0x3b2   : > { %3654 = vmatpush3.msra.mxu0 %v1649_v37 }
 0x3b3   : > { %3655 = vmatprep.subr.mxu0 %v5006_v5 }
 0x3b4   : > { %3656 = vmatpush3.msra.mxu0 %v1648_v39 }
 0x3b5   : > { %3657 = vmatprep.subr.mxu0 %v5006_v5 }
 0x3b6   : > { %3658 = vmatpush3.msra.mxu0 %v1647_v41  ;;  %v4136_v41 = vld [vmem:[#allocation32 + $0x64] ss:$8 sps:$4 sm:$0xff]  }
 0x3b7   : > { %3659 = vmatprep.subr.mxu0 %v5006_v5 }
 0x3b8   : > { %3660 = vmatpush3.msra.mxu0 %v1646_v42  ;;  %v4134_v42 = vld [vmem:[#allocation32 + $0x60] ss:$8 sps:$4 sm:$0xff]  }
 0x3b9   : > { %3661 = vmatprep.subr.mxu0 %v5006_v5 }
 0x3ba   : > { %3662 = vmatpush3.msra.mxu0 %v1645_v43 }
 0x3bb   : > { %3663 = vmatprep.subr.mxu0 %v5006_v5 }
 0x3bc   : > { %3664 = vmatpush3.msra.mxu0 %v1644_v44  ;;  %v4139_v44 = vld [vmem:[#allocation32 + $0x54] ss:$8 sps:$4 sm:$0xff]  }
 0x3bd   : > { %3665 = vmatprep.subr.mxu0 %v5006_v5 }
 0x3be   : > { %3666 = vmatpush3.msra.mxu0 %v1643_v45  ;;  %v4137_v45 = vld [vmem:[#allocation32 + $0x50] ss:$8 sps:$4 sm:$0xff]  }
 0x3bf   : > { %3667 = vmatprep.subr.mxu0 %v5006_v5 }
 0x3c0   : > { %3668 = vmatpush3.msra.mxu0 %v1642_v46  ;;  %v4142_v46 = vld [vmem:[#allocation32 + $0x44] ss:$8 sps:$4 sm:$0xff]  }
 0x3c1   : > { %3669 = vmatprep.subr.mxu0 %v5006_v5 }
 0x3c2   : > { %3670 = vmatpush3.msra.mxu0 %v1641_v47  ;;  %v4140_v47 = vld [vmem:[#allocation32 + $0x40] ss:$8 sps:$4 sm:$0xff]  }
 0x3c3   : > { %3671 = vmatprep.subr.mxu0 %v5006_v5 }
 0x3c4   : > { %3672 = vmatpush3.msra.mxu0 %v1640_v48  ;;  %v4145_v48 = vld [vmem:[#allocation32 + $0x34] ss:$8 sps:$4 sm:$0xff]  }
 0x3c5   : > { %3673 = vmatprep.subr.mxu0 %v5006_v5 }
 0x3c6   : > { %3674 = vmatpush3.msra.mxu0 %v1639_v49  ;;  %v4143_v49 = vld [vmem:[#allocation32 + $0x30] ss:$8 sps:$4 sm:$0xff]  }
 0x3c7   : > { %3675 = vmatprep.subr.mxu0 %v5006_v5 }
 0x3c8   : > { %3676 = vmatpush3.msra.mxu0 %v1638_v53  ;;  %v4151_v53 = vld [vmem:[#allocation32 + $0x14] ss:$8 sps:$4 sm:$0xff]  }
 0x3c9   : > { %2100 = vmatprep.subr.bf16.mxu0 %v4133_v20 }
 0x469   : > { %v1545_v21 = vpop.f32.mrf.mxu0 }
 0x46a   : > { %v1550_v22 = vsel %vm1549_vm2, %v1545_v21, -inf }
 0x46b   : > { %1551 = vmax.xlane.f32.xlu1 %v1550_v22  ;;  %v3639_v23 = vpop.f32.mrf.mxu0 }
 0x4f4   : > { %v1552_v24 = vpop.xlane.xlu1 %1551 }
 0x4f5   : > { %v1553_v25 = vsub.f32 %v1545_v21, %v1552_v24  ;;  %v3408_v24 = vld [vmem:[#allocation28] ss:$0 sm:$0xff] }
 0x4f7   : > { %v1554_v26 = vmul.f32 1.442695, %v1553_v25 }
 0x4f9   : > { %4181 = vpow2.f32 %v1554_v26 }
 0x506   : > { %v4182_v27 = vpop.eup %4181 }
 0x507   : > { %v1556_v28 = vsel %vm1549_vm2, %v4182_v27, 0.0 }
 0x508   : > { %1557 = vadd.xlane.f32.xlu1 %v1556_v28 }
 0x50c   : > { %1874 = vadd.xlane.f32.xlu1 %v3480_v55 }
 0x510   : > { %1878 = vadd.xlane.f32.xlu1 %v3484_v57 }
 0x514   : > { %1882 = vadd.xlane.f32.xlu1 %v3488_v59 }
 0x518   : > { %1886 = vadd.xlane.f32.xlu1 %v3492_v62 }
 0x51c   : > { %1912 = vadd.xlane.f32.xlu1 %v1904_v3 }
 0x520   : > { %1916 = vadd.xlane.f32.xlu1 %v1906_v10 }
 0x524   : > { %1920 = vadd.xlane.f32.xlu1 %v1908_v12 }
 0x528   : > { %1924 = vadd.xlane.f32.xlu1 %v1910_v18 }
 0x591   : > { %v1558_v50 = vpop.xlane.xlu1 %1557 }
 0x592   : > { %4183 = vrcp.f32 %v1558_v50  ;;  %v4148_v50 = vld [vmem:[#allocation32 + $0x24] ss:$8 sps:$4 sm:$0xff]  }
 0x595   : > { %v1875_v21 = vpop.xlane.xlu1 %1874 }
 0x596   : > { %v1889_v23 = vmul.f32 0.0078125, %v1875_v21 }
 0x599   : > { %v1879_v22 = vpop.xlane.xlu1 %1878 }
 0x59a   : > { %v1891_v28 = vmul.f32 0.0078125, %v1879_v22 }
 0x59c   : > { %v5613_v32 = vsub.f32 %v3484_v57, %v1891_v28  ;;  %v1775_v57 = vld [vmem:[#allocation29 + $0x78] sm:$0xff] }
 0x59d   : > { %v1883_v25 = vpop.xlane.xlu1 %1882 }
 0x59e   : > { %v1893_v34 = vmul.f32 0.0078125, %v1883_v25  ;;  %v1907_v37 = vmul.f32 %v5613_v32, %v5613_v32 }
 0x59f   : > { %v4184_v51 = vpop.eup %4183 }
 0x5a0   : > { %v1560_v52 = vmul.f32 %v4184_v51, %v4182_v27  ;;  %v5607_v27 = vsub.f32 %v3480_v55, %v1889_v23  ;;  %v5617_v36 = vsub.f32 %v3488_v59, %v1893_v34  ;;  %v4146_v51 = vld [vmem:[#allocation32 + $0x20] ss:$8 sps:$4 sm:$0xff]   ;;  %v5008_v55 = vmov 0  }
 0x5a1   : > { %v1887_v35 = vpop.xlane.xlu1 %1886  ;;  %v1773_v59 = vld [vmem:[#allocation29 + $0x68] sm:$0xff] }
 0x5a2   : > { %3643 = vmatmul.mubr.msk.f32.vlgmr.msra.gmra.mxu1 %vm1561_vm3, %v1560_v52  ;;  %v1905_v33 = vmul.f32 %v5607_v27, %v5607_v27  ;;  %v1895_v38 = vmul.f32 0.0078125, %v1887_v35  ;;  %v1909_v40 = vmul.f32 %v5617_v36, %v5617_v36  ;;  %v4149_v52 = vld [vmem:[#allocation32 + $0x10] ss:$8 sps:$4 sm:$0xff]  }
 0x5a3   : > { %3712 = vmatprep.mubr.msk.f32.mxu1 %vm5007_vm1, %v5006_v5  ;;  %3681 = vmatpush3.msra.mxu1 %v1775_v57 }
 0x5a4   : > { %v5621_v39 = vsub.f32 %v3492_v62, %v1895_v38  ;;  %3682 = vmatprep.subr.mxu1 %v5006_v5 }
 0x5a5   : > { %3683 = vmatpush3.msra.mxu1 %v1774_v58  ;;  %v1913_v61 = vpop.xlane.xlu1 %1912  ;;  %v1765_v58 = vld [vmem:[#allocation29 + $0x28] sm:$0xff] }
 0x5a6   : > { %v1911_v43 = vmul.f32 %v5621_v39, %v5621_v39  ;;  %3684 = vmatprep.subr.mxu1 %v5006_v5  ;;  %v1928_v62 = vmul.f32 0.0078125, %v1913_v61 }
 0x5a7   : > { %3685 = vmatpush3.msra.mxu1 %v1773_v59 }
 0x5a8   : > { %3686 = vmatprep.subr.mxu1 %v5006_v5  ;;  %v1936_v0 = vadd.f32 1e-05, %v1928_v62  ;;  %v1764_v62 = vld [vmem:[#allocation29 + $0x20] sm:$0xff] }
 0x5a9   : > { %3687 = vmatpush3.msra.mxu1 %v1772_v60  ;;  %v1917_v1 = vpop.xlane.xlu1 %1916 }
 0x5aa   : > { %3688 = vmatprep.subr.mxu1 %v5006_v5  ;;  %4185 = vrsqrt.f32 %v1936_v0  ;;  %v1930_v10 = vmul.f32 0.0078125, %v1917_v1 }
 0x5ac   : > { %v1938_v16 = vadd.f32 1e-05, %v1930_v10 }
 0x5ad   : > { %v1921_v20 = vpop.xlane.xlu1 %1920 }
 0x5ae   : > { %v1932_v23 = vmul.f32 0.0078125, %v1921_v20 }
 0x5b7   : > { %v4186_v28 = vpop.eup %4185 }
 0x5b8   : > { %v1952_v35 = vmul.f32 %v4186_v28, %v5587_v63  ;;  %v5644_v63 = vld [vmem:[#allocation11] ss:$0 sm:$0xff] }
 0x662   : > { %v1634_v13 = vpop.f32.mrf.mxu1 }
 0x663   : > { %3678 = vmatmul.mubr.f32.vlgmr.msra.gmra.mxu0 %v1634_v13 }
 0x664   : > { %v3644_v14 = vpop.f32.mrf.mxu1  ;;  %2101 = vmatpush1.bf16.msra.mxu0 %v4131_v19  ;;  %2132 = vmatprep.mubr.bf16.mxu0 %v5008_v55 }
 0x665   : > { %2102 = vmatprep.subr.bf16.mxu0 %v4136_v41  ;;  %v1770_v41 = vld [vmem:[#allocation29 + $0x50] sm:$0xff] }
 0x668   : > { %2103 = vmatpush1.bf16.msra.mxu0 %v4134_v42 }
 0x669   : > { %2104 = vmatprep.subr.bf16.mxu0 %v4139_v44 }
 0x66c   : > { %2105 = vmatpush1.bf16.msra.mxu0 %v4137_v45  ;;  %v1769_v45 = vld [vmem:[#allocation29 + $0x48] sm:$0xff] }
 0x66d   : > { %2106 = vmatprep.subr.bf16.mxu0 %v4142_v46  ;;  %v1768_v46 = vld [vmem:[#allocation29 + $0x40] sm:$0xff] }
 0x670   : > { %2107 = vmatpush1.bf16.msra.mxu0 %v4140_v47 }
 0x671   : > { %2108 = vmatprep.subr.bf16.mxu0 %v4145_v48 }
 0x674   : > { %2109 = vmatpush1.bf16.msra.mxu0 %v4143_v49 }
 0x675   : > { %2110 = vmatprep.subr.bf16.mxu0 %v4148_v50  ;;  %v1767_v50 = vld [vmem:[#allocation29 + $0x38] sm:$0xff] }
 0x678   : > { %2111 = vmatpush1.bf16.msra.mxu0 %v4146_v51 }
 0x679   : > { %2112 = vmatprep.subr.bf16.mxu0 %v4151_v53 }
 0x67c   : > { %2113 = vmatpush1.bf16.msra.mxu0 %v4149_v52 }
 0x67d   : > { %2114 = vmatprep.subr.bf16.mxu0 %v4154_v54  ;;  %v1766_v54 = vld [vmem:[#allocation29 + $0x30] sm:$0xff] }
 0x680   : > { %2115 = vmatpush1.bf16.msra.mxu0 %v4152_v56 }
 0x723   : > { %v1727_v26 = vpop.f32.mrf.mxu0 }
 0x724   : > { %v5609_v29 = vadd.f32 %v3408_v24, %v1727_v26 }
 0x725   : > { %v3679_v30 = vpop.f32.mrf.mxu0 }
 0x726   : > { %v1733_v31 = vsel %vm1243_vm0, %v5609_v29, 0.0 }
 0x727   : > { %1734 = vadd.xlane.f32.xlu0 %v1733_v31  ;;  %v1925_v31 = vpop.xlane.xlu1 %1924 }
 0x728   : > { %v1934_v38 = vmul.f32 0.0078125, %v1925_v31 }
 0x72a   : > { %v1942_v47 = vadd.f32 1e-05, %v1934_v38 }
 0x72b   : > { %1914 = vadd.xlane.f32.xlu0 %v1905_v33 }
 0x72f   : > { %1918 = vadd.xlane.f32.xlu0 %v1907_v37  ;;  %v1771_v37 = vld [vmem:[#allocation29 + $0x58] sm:$0xff] }
 0x730   : > { %3689 = vmatpush3.msra.mxu1 %v1771_v37  ;;  %v3410_v37 = vld [vmem:[#allocation14] ss:$0 sm:$0xff] }
 0x731   : > { %3690 = vmatprep.subr.mxu1 %v5006_v5 }
 0x732   : > { %3691 = vmatpush3.msra.mxu1 %v1770_v41 }
 0x733   : > { %1922 = vadd.xlane.f32.xlu0 %v1909_v40  ;;  %v5639_v40 = vld [vmem:[#allocation10] ss:$0 sm:$0xff]  ;;  %3692 = vmatprep.subr.mxu1 %v5006_v5 }
 0x734   : > { %v1966_v44 = vmul.f32 %v5639_v40, %v1952_v35  ;;  %3693 = vmatpush3.msra.mxu1 %v1769_v45 }
 0x735   : > { %3694 = vmatprep.subr.mxu1 %v5006_v5 }
 0x736   : > { %3695 = vmatpush3.msra.mxu1 %v1768_v46  ;;  %v1980_v53 = vadd.f32 %v5644_v63, %v1966_v44 }
 0x737   : > { %1926 = vadd.xlane.f32.xlu0 %v1911_v43  ;;  %3696 = vmatprep.subr.mxu1 %v5006_v5 }
 0x738   : > { %3697 = vmatpush3.msra.mxu1 %v1767_v50 }
 0x739   : > { %3698 = vmatprep.subr.mxu1 %v5006_v5 }
 0x73a   : > { %3699 = vmatpush3.msra.mxu1 %v1766_v54 }
 0x73b   : > { %3700 = vmatprep.subr.mxu1 %v5006_v5 }
 0x73c   : > { %3701 = vmatpush3.msra.mxu1 %v1765_v58 }
 0x73d   : > { %3702 = vmatprep.subr.mxu1 %v5006_v5 }
 0x73e   : > { %3703 = vmatpush3.msra.mxu1 %v1764_v62 }
 0x73f   : > { %3704 = vmatprep.subr.mxu1 %v5006_v5 }
 0x7b0   : > { %v1735_v3 = vpop.xlane.xlu0 %1734 }
 0x7b1   : > { %v1736_v8 = vmul.f32 0.0078125, %v1735_v3 }
 0x7b3   : > { %v5633_v12 = vsub.f32 %v5609_v29, %v1736_v8  ;;  %v1940_v29 = vadd.f32 1e-05, %v1932_v23  ;;  %v1762_v8 = vld [vmem:[#allocation29 + $0x10] sm:$0xff] }
 0x7b4   : > { %v1915_v13 = vpop.xlane.xlu0 %1914 }
 0x7b5   : > { %v1929_v14 = vmul.f32 0.0078125, %v1915_v13  ;;  %v1738_v15 = vmul.f32 %v5633_v12, %v5633_v12 }
 0x7b7   : > { %v1937_v18 = vadd.f32 1e-05, %v1929_v14  ;;  %v1739_v19 = vsel %vm1243_vm0, %v1738_v15, 0.0  ;;  %v1761_v14 = vld [vmem:[#allocation29 + $0x8] sm:$0xff] }
 0x7b8   : > { %1740 = vadd.xlane.f32.xlu1 %v1739_v19  ;;  %v1919_v21 = vpop.xlane.xlu0 %1918 }
 0x7b9   : > { %4187 = vrsqrt.f32 %v1937_v18  ;;  %v1931_v22 = vmul.f32 0.0078125, %v1919_v21 }
 0x7ba   : > { %4189 = vrsqrt.f32 %v1938_v16 }
 0x7bb   : > { %v1939_v24 = vadd.f32 1e-05, %v1931_v22 }
 0x7bc   : > { %v1923_v25 = vpop.xlane.xlu0 %1922 }
 0x7bd   : > { %4191 = vrsqrt.f32 %v1939_v24  ;;  %v1933_v26 = vmul.f32 0.0078125, %v1923_v25 }
 0x7bf   : > { %v1941_v30 = vadd.f32 1e-05, %v1933_v26 }
 0x7c0   : > { %v1927_v33 = vpop.xlane.xlu0 %1926 }
 0x7c1   : > { %4193 = vrsqrt.f32 %v1941_v30  ;;  %v1935_v34 = vmul.f32 0.0078125, %v1927_v33 }
 0x7c2   : > { %4195 = vrsqrt.f32 %v1940_v29 }
 0x7c3   : > { %v1943_v42 = vadd.f32 1e-05, %v1935_v34 }
 0x7c5   : > { %4197 = vrsqrt.f32 %v1943_v42 }
 0x7c6   : > { %v4188_v43 = vpop.eup %4187  ;;  %4199 = vrsqrt.f32 %v1942_v47 }
 0x7c7   : > { %v1953_v48 = vmul.f32 %v4188_v43, %v5607_v27  ;;  %v4190_v49 = vpop.eup %4189 }
 0x7c8   : > { %v1954_v27 = vmul.f32 %v4190_v49, %v5593_v7  ;;  %v1763_v7 = vld [vmem:[#allocation29 + $0x18] sm:$0xff] }
 0x7c9   : > { %v1967_v51 = vmul.f32 %v5639_v40, %v1953_v48  ;;  %3705 = vmatpush3.msra.mxu1 %v1763_v7 }
 0x7ca   : > { %v4192_v52 = vpop.eup %4191  ;;  %v1968_v0 = vmul.f32 %v5639_v40, %v1954_v27  ;;  %3706 = vmatprep.subr.mxu1 %v5006_v5 }
 0x7cb   : > { %v1981_v56 = vadd.f32 %v5644_v63, %v1967_v51  ;;  %v1955_v57 = vmul.f32 %v4192_v52, %v5613_v32  ;;  %3707 = vmatpush3.msra.mxu1 %v1762_v8 }
 0x7cc   : > { %v1982_v10 = vadd.f32 %v5644_v63, %v1968_v0  ;;  %3708 = vmatprep.subr.mxu1 %v5006_v5 }
 0x7cd   : > { %v1988_v59 = vpack.c.bf16 %v1981_v56, %v1980_v53  ;;  %v1969_v60 = vmul.f32 %v5639_v40, %v1955_v57  ;;  %3709 = vmatpush3.msra.mxu1 %v1761_v14 }
 0x7ce   : > { %v4194_v61 = vpop.eup %4193  ;;  %3710 = vmatprep.subr.mxu1 %v5006_v5 }
 0x7cf   : > { %2133 = vmatmul.mubr.bf16.vlgmr.msra.gmra.mxu0 %v1988_v59  ;;  %v4196_v1 = vpop.eup %4195  ;;  %v1983_v32 = vadd.f32 %v5644_v63, %v1969_v60  ;;  %v1957_v3 = vmul.f32 %v4194_v61, %v5617_v36  ;;  %v1760_v36 = vld [vmem:[#allocation29] sm:$0xff]  ;;  %v2013_v61 = vrot.slane %v5530_v4, %v1324_v9 }
 0x7d0   : > { %2142 = vmatprep.mubr.bf16.mxu0 %v5008_v55  ;;  %v1956_v13 = vmul.f32 %v4196_v1, %v5599_v11  ;;  %3711 = vmatpush3.msra.mxu1 %v1760_v36  ;;  %v3411_v36 = vld [vmem:[#allocation31] ss:$0 sm:$0xff] }
 0x7d1   : > { %v1989_v15 = vpack.c.bf16 %v1983_v32, %v1982_v10  ;;  %v1971_v16 = vmul.f32 %v5639_v40, %v1957_v3  ;;  %3715 = vmatprep.subr.bf16.mxu1 %v5006_v5 }
 0x7d2   : > { %v4198_v18 = vpop.eup %4197  ;;  %v1970_v19 = vmul.f32 %v5639_v40, %v1956_v13 }
 0x7d3   : > { %v4200_v20 = vpop.eup %4199  ;;  %v1985_v11 = vadd.f32 %v5644_v63, %v1971_v16  ;;  %v1959_v21 = vmul.f32 %v4198_v18, %v5621_v39 }
 0x7d4   : > { %v1984_v22 = vadd.f32 %v5644_v63, %v1970_v19  ;;  %v1958_v23 = vmul.f32 %v4200_v20, %v5603_v17  ;;  %v3409_v17 = vld [vmem:[#allocation13] ss:$0 sm:$0xff] }
 0x7d5   : > { %v1973_v25 = vmul.f32 %v5639_v40, %v1959_v21 }
 0x7d6   : > { %v1990_v24 = vpack.c.bf16 %v1985_v11, %v1984_v22  ;;  %v1972_v26 = vmul.f32 %v5639_v40, %v1958_v23  ;;  %v5707_v23 = vld [vmem:[%s5903_s12] sm:$0xff] }
 0x7d7   : > { %2143 = vmatmul.mubr.bf16.gmra.mxu0 %v1989_v15  ;;  %v1987_v28 = vadd.f32 %v5644_v63, %v1973_v25 }
 0x7d8   : > { %2152 = vmatprep.mubr.bf16.mxu0 %v5008_v55  ;;  %v1986_v29 = vadd.f32 %v5644_v63, %v1972_v26  ;;  %v5715_v26 = vld [vmem:[%s5903_s12 + $0x8] sm:$0xff] }
 0x7da   : > { %v1991_v39 = vpack.c.bf16 %v1987_v28, %v1986_v29 }
 0x7df   : > { %2153 = vmatmul.mubr.bf16.gmra.mxu0 %v1990_v24 }
 0x7e0   : > { %2162 = vmatprep.mubr.bf16.mxu0 %v5008_v55 }
 0x7e7   : > { %2163 = vmatmul.mubr.bf16.gmra.mxu0 %v1991_v39  ;;  %v5722_v39 = vld [vmem:[%s5903_s12 + $0x10] sm:$0xff] }
 0x841   : > { %v1741_v30 = vpop.xlane.xlu1 %1740 }
 0x842   : > { %v1742_v31 = vmul.f32 0.0078125, %v1741_v30  ;;  %v2225_v30 = vld [vmem:[#allocation2] sm:$0xff] }
 0x844   : > { %v1743_v33 = vadd.f32 1e-05, %v1742_v31 }
 0x846   : > { %4201 = vrsqrt.f32 %v1743_v33 }
 0x853   : > { %v4202_v34 = vpop.eup %4201 }
 0x854   : > { %v1745_v35 = vmul.f32 %v4202_v34, %v5633_v12 }
 0x856   : > { %v1752_v38 = vmul.f32 %v3409_v17, %v1745_v35  ;;  %v2226_v17 = vld [vmem:[#allocation2 + $0x8] sm:$0xff] }
 0x858   : > { %v5682_v41 = vadd.f32 %v3410_v37, %v1752_v38 }
 0x85a   : > { %3713 = vmatmul.mubr.f32.vlgmr.msra.gmra.mxu1 %v5682_v41 }
 0x85b   : > { %3723 = vmatprep.mubr.msk.bf16.mxu1 %vm5007_vm1, %v5006_v5 }
 0x88f   : > { %v2134_v55 = vpop.f32.mrf.mxu0 }
 0x890   : > { %v2135_v18 = vadd.f32 %v2134_v55, %v2013_v61 }
 0x891   : > { %v2136_v40 = vpop.f32.mrf.mxu0 }
 0x892   : > { %v2137_v42 = vadd.f32 %v2136_v40, %v5533_v6  ;;  %v2227_v40 = vld [vmem:[#allocation2 + $0x10] sm:$0xff] }
 0x893   : > { %v2138_v43 = vpop.f32.mrf.mxu0 }
 0x894   : > { %v2139_v16 = vadd.f32 %v2138_v43, %v2013_v61 }
 0x895   : > { %v2140_v44 = vpop.f32.mrf.mxu0 }
 0x896   : > { %v2141_v45 = vadd.f32 %v2140_v44, %v5533_v6 }
 0x897   : > { %v2144_v46 = vpop.f32.mrf.mxu0 }
 0x898   : > { %v5689_v47 = vpack.c.bf16 %v2141_v45, %v2137_v42  ;;  %v2145_v4 = vadd.f32 %v2144_v46, %v2013_v61 }
 0x899   : > { %v2146_v12 = vpop.f32.mrf.mxu0 }
 0x89a   : > { %v2147_v63 = vadd.f32 %v2146_v12, %v5533_v6 }
 0x89b   : > { %v2148_v48 = vpop.f32.mrf.mxu0 }
 0x89c   : > { %v2149_v2 = vadd.f32 %v2148_v48, %v2013_v61 }
 0x89d   : > { %v2150_v49 = vpop.f32.mrf.mxu0 }
 0x89e   : > { %v2151_v50 = vadd.f32 %v2150_v49, %v5533_v6  ;;  %v2174_v9 = vpack.c.bf16 %v2149_v2, %v2145_v4 }
 0x89f   : > { %v2154_v51 = vpop.f32.mrf.mxu0 }
 0x8a0   : > { %v2178_v52 = vpack.c.bf16 %v2151_v50, %v2147_v63  ;;  %v2155_v14 = vadd.f32 %v2154_v51, %v2013_v61 }
 0x8a1   : > { %v2156_v53 = vpop.f32.mrf.mxu0 }
 0x8a2   : > { %v2157_v54 = vadd.f32 %v2156_v53, %v5533_v6 }
 0x8a3   : > { %v2158_v56 = vpop.f32.mrf.mxu0 }
 0x8a4   : > { %v2159_v13 = vadd.f32 %v2158_v56, %v2013_v61 }
 0x8a5   : > { %v2160_v27 = vpop.f32.mrf.mxu0 }
 0x8a6   : > { %v2161_v57 = vadd.f32 %v2160_v27, %v5533_v6  ;;  %v2175_v15 = vpack.c.bf16 %v2159_v13, %v2155_v14 }
 0x8a7   : > { %v2164_v58 = vpop.f32.mrf.mxu0 }
 0x8a8   : > { %v2179_v59 = vpack.c.bf16 %v2161_v57, %v2157_v54  ;;  %v2165_v1 = vadd.f32 %v2164_v58, %v2013_v61 }
 0x8a9   : > { %v2166_v60 = vpop.f32.mrf.mxu0 }
 0x8aa   : > { %v2167_v62 = vadd.f32 %v2166_v60, %v5533_v6  ;;  %v4155_v60 = vld [vmem:[%s5904_s28 + $0x38] sm:$0xff]  }
 0x8ab   : > { %v2168_v0 = vpop.f32.mrf.mxu0  ;;  %3750 = vmatprep.subr.bf16.mxu0 %v4155_v60 }
 0x8ac   : > { %v2169_v7 = vadd.f32 %v2168_v0, %v2013_v61  ;;  %v4156_v61 = vld [vmem:[%s5904_s28 + $0x30] sm:$0xff]   ;;  %3751 = vmatpush3.bf16.msra.mxu0 %v4155_v60  ;;  %v4158_v0 = vld [vmem:[%s5904_s28 + $0x20] sm:$0xff]  }
 0x8ad   : > { %v2170_v32 = vpop.f32.mrf.mxu0  ;;  %3752 = vmatprep.subr.bf16.mxu0 %v4156_v61  ;;  %v4173_v60 = vld [vmem:[#allocation37 + $0x28] sm:$0xff]  }
 0x8ae   : > { %v2176_v3 = vpack.c.bf16 %v2169_v7, %v2165_v1  ;;  %v2171_v8 = vadd.f32 %v2170_v32, %v5533_v6  ;;  %v2173_v6 = vpack.c.bf16 %v2139_v16, %v2135_v18  ;;  %v4159_v1 = vld [vmem:[%s5904_s28 + $0x18] sm:$0xff]   ;;  %v4160_v7 = vld [vmem:[%s5904_s28 + $0x10] sm:$0xff]   ;;  %v4161_v18 = vld [vmem:[%s5904_s28 + $0x8] sm:$0xff]  }
 0x8b0   : > { %v2180_v10 = vpack.c.bf16 %v2171_v8, %v2167_v62  ;;  %3716 = vmatpush3.bf16.xpose.msra.mxu1 %v2176_v3  ;;  %v4157_v62 = vld [vmem:[%s5904_s28 + $0x28] sm:$0xff]   ;;  %3753 = vmatpush3.bf16.msra.mxu0 %v4156_v61  ;;  %v4174_v61 = vld [vmem:[#allocation37 + $0x20] sm:$0xff]  }
 0x8b1   : > { %3717 = vmatprep.subr.bf16.mxu1 %v5006_v5  ;;  %3754 = vmatprep.subr.bf16.mxu0 %v4157_v62 }
 0x8b4   : > { %3755 = vmatpush3.bf16.msra.mxu0 %v4157_v62  ;;  %v4175_v62 = vld [vmem:[#allocation37 + $0x18] sm:$0xff]  }
 0x8b5   : > { %3756 = vmatprep.subr.bf16.mxu0 %v4158_v0 }
 0x8b8   : > { %3718 = vmatpush3.bf16.xpose.msra.mxu1 %v2175_v15  ;;  %3757 = vmatpush3.bf16.msra.mxu0 %v4158_v0 }
 0x8b9   : > { %3719 = vmatprep.subr.bf16.mxu1 %v5006_v5  ;;  %3758 = vmatprep.subr.bf16.mxu0 %v4159_v1 }
 0x8bc   : > { %3759 = vmatpush3.bf16.msra.mxu0 %v4159_v1 }
 0x8bd   : > { %3760 = vmatprep.subr.bf16.mxu0 %v4160_v7 }
 0x8c0   : > { %3720 = vmatpush3.bf16.xpose.msra.mxu1 %v2174_v9  ;;  %3761 = vmatpush3.bf16.msra.mxu0 %v4160_v7 }
 0x8c1   : > { %3721 = vmatprep.subr.bf16.mxu1 %v5006_v5  ;;  %3762 = vmatprep.subr.bf16.mxu0 %v4161_v18 }
 0x8c4   : > { %3763 = vmatpush3.bf16.msra.mxu0 %v4161_v18 }
 0x8c8   : > { %3722 = vmatpush3.bf16.xpose.msra.mxu1 %v2173_v6 }
 0x8c9   : > { %3727 = vmatprep.subr.mxu1 %v5006_v5 }
 0x91a   : > { %v1849_v19 = vpop.f32.mrf.mxu1 }
 0x91b   : > { %v1850_v20 = vadd.f32 %v3411_v36, %v1849_v19 }
 0x91c   : > { %v3714_v11 = vpop.f32.mrf.mxu1 }
 0x91d   : > { %v1853_v21 = vmul.f32 0.088388346, %v1850_v20 }
 0x91f   : > { %v2181_v22 = vpack.c.bf16 %v1853_v21, %v1853_v21 }
 0x921   : > { %3724 = vmatmul.mubr.bf16.vlgmr.msra.gmra.mxu1 %v2181_v22 }
 0x922   : > { %3729 = vmatprep.mubr.msk.f32.mxu1 %vm5007_vm1, %v5006_v5 }
 0x9e1   : > { %v2216_v24 = vpop.f32.mrf.mxu1 }
 0x9e2   : > { %3728 = vmatpush3.msk.msra.mxu1 %vm1243_vm0, %v2216_v24 }
 0x9e3   : > { %v3725_v25 = vpop.f32.mrf.mxu1  ;;  %3730 = vmatmul.mubr.msk.f32.vlgmr.msra.gmra.mxu1 %vm1561_vm3, %v5707_v23  ;;  %3738 = vmatprep.subr.bf16.mxu1 %v2180_v10 }
 0x9e4   : > { %3739 = vmatpush3.bf16.msra.mxu1 %v2180_v10  ;;  %3732 = vmatprep.mubr.msk.f32.mxu1 %vm5007_vm1, %v5006_v5 }
 0x9e5   : > { %v2219_v28 = vpop.f32.mrf.mxu1  ;;  %3740 = vmatprep.subr.bf16.mxu1 %v2179_v59 }
 0x9e7   : > { %v3726_v29 = vpop.f32.mrf.mxu1  ;;  %3733 = vmatmul.mubr.msk.f32.gmra.mxu1 %vm1561_vm3, %v5715_v26 }
 0x9e8   : > { %3741 = vmatpush3.bf16.msra.mxu1 %v2179_v59  ;;  %3735 = vmatprep.mubr.msk.f32.mxu1 %vm5007_vm1, %v5006_v5  ;;  %v3436_v29 = vld [vmem:[%s5905_s19] ss:$0 sm:$0xff]  ;;  %s4839_s19 = scalar_lea.vmem %s4838_s14, 768 }
 0x9e9   : > { %3742 = vmatprep.subr.bf16.mxu1 %v2178_v52  ;;  %p4841_p2 = scmp.lt.s32.totalorder %s4839_s19, %s4833_s26 }
 0x9eb   : > { %3736 = vmatmul.mubr.msk.f32.gmra.mxu1 %vm1561_vm3, %v5722_v39  ;;  %p4842_p4 = por %p4841_p2, %p4840_p0 }
 0x9ec   : > { %3743 = vmatpush3.bf16.msra.mxu1 %v2178_v52 }
 0x9ed   : > { %3744 = vmatprep.subr.bf16.mxu1 %v5689_v47  ;;  %p4843_p9 = pnand %p4842_p4, %p4836_p13 }
 0x9f0   : > { %3745 = vmatpush3.bf16.msra.mxu1 %v5689_v47 }
 0x9f1   : > { %3770 = vmatprep.subr.mxu1 %v5006_v5 }
 0xaa3   : > { %v2306_v31 = vpop.f32.mrf.mxu1 }
 0xaa4   : > { %v2307_v33 = vadd.f32 %v2306_v31, %v2225_v30 }
 0xaa5   : > { %v3731_v34 = vpop.f32.mrf.mxu1 }
 0xaa6   : > { %v2321_v35 = vsel %vm2320_vm4, %v2307_v33, -inf }
 0xaa7   : > { %2322 = vmax.xlane.f32.xlu0 %v2321_v35  ;;  %v2311_v37 = vpop.f32.mrf.mxu1 }
 0xaa8   : > { %v2312_v38 = vadd.f32 %v2311_v37, %v2226_v17 }
 0xaa9   : > { %v3734_v55 = vpop.f32.mrf.mxu1 }
 0xaaa   : > { %v2324_v42 = vsel %vm2320_vm4, %v2312_v38, -inf  ;;  %v4163_v55 = vld [vmem:[#allocation35 + $0x38] sm:$0xff]  }
 0xaab   : > { %2325 = vmax.xlane.f32.xlu1 %v2324_v42  ;;  %v2316_v43 = vpop.f32.mrf.mxu1 }
 0xaac   : > { %v2317_v44 = vadd.f32 %v2316_v43, %v2227_v40 }
 0xaad   : > { %v3737_v45 = vpop.f32.mrf.mxu1 }
 0xaae   : > { %v2327_v46 = vsel %vm2320_vm4, %v2317_v44, -inf }
 0xaaf   : > { %2328 = vmax.xlane.f32.xlu0 %v2327_v46 }
 0xb30   : > { %v2323_v47 = vpop.xlane.xlu0 %2322 }
 0xb31   : > { %v2330_v12 = vsub.f32 %v2307_v33, %v2323_v47 }
 0xb33   : > { %v2333_v63 = vmul.f32 1.442695, %v2330_v12 }
 0xb34   : > { %v2326_v48 = vpop.xlane.xlu1 %2325 }
 0xb35   : > { %4203 = vpow2.f32 %v2333_v63  ;;  %v2331_v49 = vsub.f32 %v2312_v38, %v2326_v48 }
 0xb37   : > { %v2335_v50 = vmul.f32 1.442695, %v2331_v49 }
 0xb38   : > { %v2329_v51 = vpop.xlane.xlu0 %2328 }
 0xb39   : > { %4205 = vpow2.f32 %v2335_v50  ;;  %v2332_v52 = vsub.f32 %v2317_v44, %v2329_v51  ;;  %v4164_v51 = vld [vmem:[#allocation35 + $0x30] sm:$0xff]  }
 0xb3b   : > { %v2337_v53 = vmul.f32 1.442695, %v2332_v52  ;;  %v4165_v52 = vld [vmem:[#allocation35 + $0x28] sm:$0xff]  }
 0xb3d   : > { %4207 = vpow2.f32 %v2337_v53  ;;  %v4166_v53 = vld [vmem:[#allocation35 + $0x20] sm:$0xff]  }
 0xb42   : > { %v4204_v54 = vpop.eup %4203 }
 0xb43   : > { %v2339_v56 = vsel %vm2320_vm4, %v4204_v54, 0.0 }
 0xb44   : > { %2340 = vadd.xlane.f32.xlu1 %v2339_v56  ;;  %v4168_v56 = vld [vmem:[#allocation35 + $0x10] sm:$0xff]  }
 0xb46   : > { %v4206_v27 = vpop.eup %4205 }
 0xb47   : > { %v2342_v57 = vsel %vm2320_vm4, %v4206_v27, 0.0 }
 0xb48   : > { %2343 = vadd.xlane.f32.xlu0 %v2342_v57  ;;  %v4170_v57 = vld [vmem:[#allocation35] sm:$0xff]  }
 0xb4a   : > { %v4208_v58 = vpop.eup %4207 }
 0xb4b   : > { %v2345_v59 = vsel %vm2320_vm4, %v4208_v58, 0.0 }
 0xb4c   : > { %2346 = vadd.xlane.f32.xlu1 %v2345_v59  ;;  %v4172_v59 = vld [vmem:[#allocation37 + $0x30] sm:$0xff]  }
 0xbcd   : > { %v2341_v32 = vpop.xlane.xlu1 %2340 }
 0xbce   : > { %4209 = vrcp.f32 %v2341_v32 }
 0xbd1   : > { %v2344_v3 = vpop.xlane.xlu0 %2343 }
 0xbd2   : > { %4211 = vrcp.f32 %v2344_v3 }
 0xbd5   : > { %v2347_v8 = vpop.xlane.xlu1 %2346 }
 0xbd6   : > { %4213 = vrcp.f32 %v2347_v8 }
 0xbdb   : > { %v4210_v10 = vpop.eup %4209 }
 0xbdc   : > { %v2351_v14 = vmul.f32 %v4210_v10, %v4204_v54  ;;  %v4167_v54 = vld [vmem:[#allocation35 + $0x18] sm:$0xff]  }
 0xbdf   : > { %v4212_v13 = vpop.eup %4211 }
 0xbe0   : > { %v2352_v15 = vmul.f32 %v4212_v13, %v4206_v27  ;;  %v4169_v27 = vld [vmem:[#allocation35 + $0x8] sm:$0xff]  }
 0xbe2   : > { %v2354_v2 = vpack.c.bf16 %v2352_v15, %v2351_v14 }
 0xbe3   : > { %v4214_v4 = vpop.eup %4213 }
 0xbe4   : > { %v2353_v9 = vmul.f32 %v4214_v4, %v4208_v58  ;;  %3746 = vmatprep.mubr.msk.bf16.mxu1 %vm2320_vm4, %v2354_v2  ;;  %v4171_v58 = vld [vmem:[#allocation37 + $0x38] sm:$0xff]   ;;  %v3449_v4 = vld [vmem:[#allocation16] ss:$0 sm:$0xff] }
 0xbe6   : > { %v2355_v16 = vpack.c.bf16 %v2353_v9, %v2353_v9 }
 0xbe8   : > { %3747 = vmatmul.mubr.msk.bf16.vlgmr.msra.gmra.mxu1 %vm2320_vm4, %v2355_v16 }
 0xbe9   : > { %3771 = vmatpush3.msk.msra.mxu1 %vm1243_vm0, %v5682_v41  ;;  %3772 = vmatprep.mubr.msk.f32.mxu1 %vm5007_vm1, %v5006_v5  ;;  %v4162_v41 = vld [vmem:[%s5904_s28] sm:$0xff]  }
 0xbea   : > { %3764 = vmatprep.subr.bf16.mxu0 %v4162_v41  ;;  %3801 = vmatprep.subr.bf16.mxu1 %v4171_v58 }
 0xbeb   : > { %3765 = vmatpush3.bf16.msra.mxu0 %v4162_v41 }
 0xbec   : > { %3781 = vmatprep.subr.bf16.mxu0 %v4163_v55 }
 0xbf0   : > { %3773 = vmatmul.mubr.msk.f32.vlgmr.msra.gmra.mxu1 %vm1561_vm3, %v5707_v23 }
 0xbf1   : > { %3775 = vmatprep.mubr.msk.f32.mxu1 %vm5007_vm1, %v5006_v5  ;;  %3802 = vmatpush3.bf16.msra.mxu1 %v4171_v58 }
 0xbf2   : > { %3803 = vmatprep.subr.bf16.mxu1 %v4172_v59 }
 0xbf4   : > { %3776 = vmatmul.mubr.msk.f32.gmra.mxu1 %vm1561_vm3, %v5715_v26 }
 0xbf5   : > { %3778 = vmatprep.mubr.msk.f32.mxu1 %vm5007_vm1, %v5006_v5  ;;  %3804 = vmatpush3.bf16.msra.mxu1 %v4172_v59 }
 0xbf6   : > { %3805 = vmatprep.subr.bf16.mxu1 %v4173_v60 }
 0xbf8   : > { %3779 = vmatmul.mubr.msk.f32.gmra.mxu1 %vm1561_vm3, %v5722_v39 }
 0xbf9   : > { %3806 = vmatpush3.bf16.msra.mxu1 %v4173_v60 }
 0xbfa   : > { %3807 = vmatprep.subr.bf16.mxu1 %v4174_v61 }
 0xbfd   : > { %3808 = vmatpush3.bf16.msra.mxu1 %v4174_v61 }
 0xbfe   : > { %3809 = vmatprep.subr.bf16.mxu1 %v4175_v62 }
 0xc01   : > { %3810 = vmatpush3.bf16.msra.mxu1 %v4175_v62 }
 0xca8   : > { %v3748_v6 = vpop.f32.mrf.mxu1 }
 0xca9   : > { %v2411_v21 = vpack.c.bf16 %v3748_v6, %v3748_v6 }
 0xcaa   : > { %v2396_v36 = vpop.f32.mrf.mxu1 }
 0xcac   : > { %v3749_v19 = vpop.f32.mrf.mxu1 }
 0xcae   : > { %v2399_v20 = vpop.f32.mrf.mxu1 }
 0xcaf   : > { %v2410_v11 = vpack.c.bf16 %v2399_v20, %v2396_v36  ;;  %v3450_v36 = vld [vmem:[#allocation17] ss:$0 sm:$0xff] }
 0xcb0   : > { %v2600_v22 = vpop.f32.mrf.mxu1 }
 0xcb1   : > { %3766 = vmatprep.mubr.bf16.mxu0 %v2410_v11 }
 0xcb2   : > { %3767 = vmatmul.mubr.bf16.vlgmr.msra.gmra.mxu0 %v2411_v21  ;;  %v3774_v5 = vpop.f32.mrf.mxu1 }
 0xcb3   : > { %3782 = vmatpush3.bf16.msra.mxu0 %v4163_v55 }
 0xcb4   : > { %v2605_v23 = vpop.f32.mrf.mxu1  ;;  %3783 = vmatprep.subr.bf16.mxu0 %v4164_v51 }
 0xcb6   : > { %v3777_v24 = vpop.f32.mrf.mxu1 }
 0xcb7   : > { %3784 = vmatpush3.bf16.msra.mxu0 %v4164_v51  ;;  %v4176_v24 = vld [vmem:[#allocation37 + $0x10] sm:$0xff]  }
 0xcb8   : > { %v2610_v25 = vpop.f32.mrf.mxu1  ;;  %3785 = vmatprep.subr.bf16.mxu0 %v4165_v52  ;;  %3811 = vmatprep.subr.bf16.mxu1 %v4176_v24 }
 0xcb9   : > { %3812 = vmatpush3.bf16.msra.mxu1 %v4176_v24 }
 0xcba   : > { %v3780_v26 = vpop.f32.mrf.mxu1 }
 0xcbb   : > { %3786 = vmatpush3.bf16.msra.mxu0 %v4165_v52  ;;  %v4178_v26 = vld [vmem:[#allocation37] sm:$0xff]  }
 0xcbc   : > { %3787 = vmatprep.subr.bf16.mxu0 %v4166_v53 }
 0xcbf   : > { %3788 = vmatpush3.bf16.msra.mxu0 %v4166_v53 }
 0xcc0   : > { %3789 = vmatprep.subr.bf16.mxu0 %v4167_v54 }
 0xcc3   : > { %3790 = vmatpush3.bf16.msra.mxu0 %v4167_v54 }
 0xcc4   : > { %3791 = vmatprep.subr.bf16.mxu0 %v4168_v56 }
 0xcc7   : > { %3792 = vmatpush3.bf16.msra.mxu0 %v4168_v56 }
 0xcc8   : > { %3793 = vmatprep.subr.bf16.mxu0 %v4169_v27 }
 0xccb   : > { %3794 = vmatpush3.bf16.msra.mxu0 %v4169_v27 }
 0xccc   : > { %3795 = vmatprep.subr.bf16.mxu0 %v4170_v57 }
 0xccf   : > { %3796 = vmatpush3.bf16.msra.mxu0 %v4170_v57 }
 0xd72   : > { %v3768_v28 = vpop.f32.mrf.mxu0 }
 0xd73   : > { %v2526_v33 = vadd.f32 %v3768_v28, %v3436_v29 }
 0xd74   : > { %v2517_v39 = vpop.f32.mrf.mxu0 }
 0xd75   : > { %v2518_v30 = vadd.f32 %v3436_v29, %v2517_v39  ;;  %v2611_v37 = vadd.f32 %v2610_v25, %v2526_v33  ;;  %v4177_v25 = vld [vmem:[#allocation37 + $0x8] sm:$0xff]  }
 0xd76   : > { %v3769_v31 = vpop.f32.mrf.mxu0  ;;  %3813 = vmatprep.subr.bf16.mxu1 %v4177_v25 }
 0xd77   : > { %v2601_v34 = vadd.f32 %v2600_v22, %v2518_v30  ;;  %3814 = vmatpush3.bf16.msra.mxu1 %v4177_v25 }
 0xd78   : > { %v2520_v17 = vpop.f32.mrf.mxu0  ;;  %3815 = vmatprep.subr.bf16.mxu1 %v4178_v26 }
 0xd79   : > { %v2521_v35 = vadd.f32 %v3436_v29, %v2520_v17  ;;  %2616 = vadd.xlane.f32.xlu0 %v2601_v34  ;;  %v3451_v29 = vld [vmem:[%s5906_s17] ss:$0 sm:$0xff] }
 0xd7b   : > { %v2606_v38 = vadd.f32 %v2605_v23, %v2521_v35  ;;  %3816 = vmatpush3.bf16.msra.mxu1 %v4178_v26 }
 0xd7d   : > { %2618 = vadd.xlane.f32.xlu1 %v2606_v38  ;;  %2620 = vadd.xlane.f32.xlu0 %v2611_v37 }
 0xe02   : > { %v2617_v40 = vpop.xlane.xlu0 %2616 }
 0xe03   : > { %v2622_v42 = vmul.f32 0.0078125, %v2617_v40 }
 0xe05   : > { %v2625_v43 = vsub.f32 %v2601_v34, %v2622_v42 }
 0xe06   : > { %v2619_v44 = vpop.xlane.xlu1 %2618  ;;  %v2621_v45 = vpop.xlane.xlu0 %2620 }
 0xe07   : > { %v2623_v46 = vmul.f32 0.0078125, %v2619_v44  ;;  %v2624_v47 = vmul.f32 0.0078125, %v2621_v45  ;;  %v2628_v12 = vmul.f32 %v2625_v43, %v2625_v43 }
 0xe09   : > { %v2626_v63 = vsub.f32 %v2606_v38, %v2623_v46  ;;  %v2627_v48 = vsub.f32 %v2611_v37, %v2624_v47  ;;  %2631 = vadd.xlane.f32.xlu1 %v2628_v12 }
 0xe0b   : > { %v2629_v49 = vmul.f32 %v2626_v63, %v2626_v63  ;;  %v2630_v50 = vmul.f32 %v2627_v48, %v2627_v48 }
 0xe0d   : > { %2633 = vadd.xlane.f32.xlu0 %v2629_v49  ;;  %2635 = vadd.xlane.f32.xlu1 %v2630_v50 }
 0xe92   : > { %v2632_v0 = vpop.xlane.xlu1 %2631 }
 0xe93   : > { %v2637_v1 = vmul.f32 0.0078125, %v2632_v0 }
 0xe95   : > { %v2640_v7 = vadd.f32 1e-05, %v2637_v1 }
 0xe96   : > { %v2636_v32 = vpop.xlane.xlu1 %2635  ;;  %v2634_v3 = vpop.xlane.xlu0 %2633 }
 0xe97   : > { %4215 = vrsqrt.f32 %v2640_v7  ;;  %v2639_v8 = vmul.f32 0.0078125, %v2636_v32  ;;  %v2638_v10 = vmul.f32 0.0078125, %v2634_v3 }
 0xe99   : > { %v2642_v13 = vadd.f32 1e-05, %v2639_v8  ;;  %v2641_v14 = vadd.f32 1e-05, %v2638_v10 }
 0xe9b   : > { %4217 = vrsqrt.f32 %v2642_v13 }
 0xe9c   : > { %4219 = vrsqrt.f32 %v2641_v14 }
 0xea4   : > { %v4216_v15 = vpop.eup %4215 }
 0xea5   : > { %v2646_v2 = vmul.f32 %v4216_v15, %v2625_v43  ;;  %v3460_v43 = vld [vmem:[%s5907_s23] ss:$0 sm:$0xff] }
 0xea7   : > { %v2655_v6 = vmul.f32 %v3449_v4, %v2646_v2  ;;  %v3469_v2 = vld [vmem:[#allocation19] ss:$0 sm:$0xff] }
 0xea8   : > { %v4218_v9 = vpop.eup %4217 }
 0xea9   : > { %v4220_v16 = vpop.eup %4219  ;;  %v2648_v18 = vmul.f32 %v4218_v9, %v2627_v48  ;;  %v2664_v21 = vadd.f32 %v3450_v36, %v2655_v6  ;;  %v3470_v9 = vld [vmem:[#allocation20] ss:$0 sm:$0xff] }
 0xeaa   : > { %v2647_v41 = vmul.f32 %v4220_v16, %v2626_v63 }
 0xeab   : > { %v2657_v19 = vmul.f32 %v3449_v4, %v2648_v18 }
 0xeac   : > { %v2656_v20 = vmul.f32 %v3449_v4, %v2647_v41 }
 0xead   : > { %v2666_v11 = vadd.f32 %v3450_v36, %v2657_v19 }
 0xeae   : > { %v2665_v22 = vadd.f32 %v3450_v36, %v2656_v20 }
 0xeaf   : > { %v2668_v5 = vpack.c.bf16 %v2666_v11, %v2666_v11 }
 0xeb0   : > { %v2667_v23 = vpack.c.bf16 %v2665_v22, %v2664_v21 }
 0xeb2   : > { %3797 = vmatprep.mubr.bf16.mxu0 %v2667_v23 }
 0xeb3   : > { %3798 = vmatmul.mubr.bf16.vlgmr.msra.gmra.mxu0 %v2668_v5 }
 0xf73   : > { %v3799_v28 = vpop.f32.mrf.mxu0 }
 0xf74   : > { %v2783_v30 = vadd.f32 %v3799_v28, %v3451_v29 }
 0xf75   : > { %v2774_v39 = vpop.f32.mrf.mxu0 }
 0xf76   : > { %v2775_v33 = vadd.f32 %v3451_v29, %v2774_v39  ;;  %v2790_v35 = vmax.f32 %v2783_v30, 0.0 }
 0xf77   : > { %v3800_v31 = vpop.f32.mrf.mxu0 }
 0xf78   : > { %v2788_v37 = vmax.f32 %v2775_v33, 0.0  ;;  %v2792_v40 = vpack.c.bf16 %v2790_v35, %v2790_v35 }
 0xf79   : > { %v2777_v34 = vpop.f32.mrf.mxu0 }
 0xf7a   : > { %v2778_v17 = vadd.f32 %v3451_v29, %v2777_v34 }
 0xf7c   : > { %v2789_v38 = vmax.f32 %v2778_v17, 0.0 }
 0xf7e   : > { %v2791_v55 = vpack.c.bf16 %v2789_v38, %v2788_v37 }
 0xf80   : > { %3817 = vmatprep.mubr.bf16.mxu1 %v2791_v55 }
 0xf81   : > { %3818 = vmatmul.mubr.bf16.vlgmr.msra.gmra.mxu1 %v2792_v40 }
0x1041   : > { %v3819_v42 = vpop.f32.mrf.mxu1 }
0x1042   : > { %v2907_v47 = vadd.f32 %v3819_v42, %v3460_v43 }
0x1043   : > { %v2898_v44 = vpop.f32.mrf.mxu1 }
0x1044   : > { %v2899_v45 = vadd.f32 %v3460_v43, %v2898_v44  ;;  %v2914_v50 = vadd.f32 %v2907_v47, %v2666_v11 }
0x1045   : > { %v3820_v46 = vpop.f32.mrf.mxu1 }
0x1046   : > { %v2912_v12 = vadd.f32 %v2899_v45, %v2664_v21  ;;  %v3471_v46 = vld [vmem:[#allocation22] ss:$0 sm:$0xff] }
0x1047   : > { %v2901_v63 = vpop.f32.mrf.mxu1 }
0x1048   : > { %v2902_v48 = vadd.f32 %v3460_v43, %v2901_v63  ;;  %2917 = vadd.xlane.f32.xlu0 %v2912_v12 }
0x104a   : > { %v2913_v49 = vadd.f32 %v2902_v48, %v2665_v22 }
0x104c   : > { %2919 = vadd.xlane.f32.xlu1 %v2913_v49  ;;  %2921 = vadd.xlane.f32.xlu0 %v2914_v50 }
0x10d1   : > { %v2918_v51 = vpop.xlane.xlu0 %2917 }
0x10d2   : > { %v2923_v52 = vmul.f32 0.0078125, %v2918_v51 }
0x10d4   : > { %v2926_v53 = vsub.f32 %v2912_v12, %v2923_v52  ;;  %v3472_v12 = vld [vmem:[#allocation23] ss:$0 sm:$0xff] }
0x10d5   : > { %v2920_v54 = vpop.xlane.xlu1 %2919  ;;  %v2922_v56 = vpop.xlane.xlu0 %2921 }
0x10d6   : > { %v2924_v27 = vmul.f32 0.0078125, %v2920_v54  ;;  %v2925_v57 = vmul.f32 0.0078125, %v2922_v56  ;;  %v2929_v58 = vmul.f32 %v2926_v53, %v2926_v53 }
0x10d8   : > { %v2927_v59 = vsub.f32 %v2913_v49, %v2924_v27  ;;  %v2928_v60 = vsub.f32 %v2914_v50, %v2925_v57  ;;  %2932 = vadd.xlane.f32.xlu1 %v2929_v58 }
0x10da   : > { %v2930_v61 = vmul.f32 %v2927_v59, %v2927_v59  ;;  %v2931_v62 = vmul.f32 %v2928_v60, %v2928_v60 }
0x10dc   : > { %2934 = vadd.xlane.f32.xlu0 %v2930_v61  ;;  %2936 = vadd.xlane.f32.xlu1 %v2931_v62 }
0x1161   : > { %v2933_v0 = vpop.xlane.xlu1 %2932 }
0x1162   : > { %v2938_v1 = vmul.f32 0.0078125, %v2933_v0 }
0x1164   : > { %v2941_v7 = vadd.f32 1e-05, %v2938_v1 }
0x1165   : > { %v2937_v32 = vpop.xlane.xlu1 %2936  ;;  %v2935_v3 = vpop.xlane.xlu0 %2934 }
0x1166   : > { %4221 = vrsqrt.f32 %v2941_v7  ;;  %v2940_v8 = vmul.f32 0.0078125, %v2937_v32  ;;  %v2939_v10 = vmul.f32 0.0078125, %v2935_v3 }
0x1168   : > { %v2943_v13 = vadd.f32 1e-05, %v2940_v8  ;;  %v2942_v14 = vadd.f32 1e-05, %v2939_v10 }
0x116a   : > { %4223 = vrsqrt.f32 %v2943_v13 }
0x116b   : > { %4225 = vrsqrt.f32 %v2942_v14 }
0x1173   : > { %v4222_v15 = vpop.eup %4221 }
0x1174   : > { %v2947_v4 = vmul.f32 %v4222_v15, %v2926_v53 }
0x1176   : > { %v2956_v16 = vmul.f32 %v3469_v2, %v2947_v4 }
0x1177   : > { %v4224_v18 = vpop.eup %4223 }
0x1178   : > { %v4226_v41 = vpop.eup %4225  ;;  %v2965_v6 = vadd.f32 %v3470_v9, %v2956_v16  ;;  %v2949_v36 = vmul.f32 %v4224_v18, %v2928_v60 }
0x1179   : > { %v2948_v19 = vmul.f32 %v4226_v41, %v2927_v59 }
0x117a   : > { %2970 = vadd.xlane.f32.xlu0 %v2965_v6  ;;  %v2958_v20 = vmul.f32 %v3469_v2, %v2949_v36 }
0x117b   : > { %v2957_v11 = vmul.f32 %v3469_v2, %v2948_v19 }
0x117c   : > { %v2967_v21 = vadd.f32 %v3470_v9, %v2958_v20 }
0x117d   : > { %v2966_v22 = vadd.f32 %v3470_v9, %v2957_v11 }
0x117e   : > { %2974 = vadd.xlane.f32.xlu0 %v2967_v21 }
0x117f   : > { %2972 = vadd.xlane.f32.xlu1 %v2966_v22 }
0x1203   : > { %v2971_v5 = vpop.xlane.xlu0 %2970 }
0x1204   : > { %v2976_v23 = vmul.f32 0.0078125, %v2971_v5 }
0x1206   : > { %v2979_v24 = vsub.f32 %v2965_v6, %v2976_v23 }
0x1207   : > { %v2975_v25 = vpop.xlane.xlu0 %2974 }
0x1208   : > { %v2973_v26 = vpop.xlane.xlu1 %2972  ;;  %v2978_v28 = vmul.f32 0.0078125, %v2975_v25  ;;  %v2982_v29 = vmul.f32 %v2979_v24, %v2979_v24 }
0x1209   : > { %v2977_v39 = vmul.f32 0.0078125, %v2973_v26 }
0x120a   : > { %v2981_v30 = vsub.f32 %v2967_v21, %v2978_v28  ;;  %2985 = vadd.xlane.f32.xlu1 %v2982_v29 }
0x120b   : > { %v2980_v31 = vsub.f32 %v2966_v22, %v2977_v39 }
0x120c   : > { %v2984_v33 = vmul.f32 %v2981_v30, %v2981_v30 }
0x120d   : > { %v2983_v34 = vmul.f32 %v2980_v31, %v2980_v31 }
0x120e   : > { %2989 = vadd.xlane.f32.xlu1 %v2984_v33 }
0x120f   : > { %2987 = vadd.xlane.f32.xlu0 %v2983_v34 }
0x1293   : > { %v2986_v17 = vpop.xlane.xlu1 %2985 }
0x1294   : > { %v2991_v35 = vmul.f32 0.0078125, %v2986_v17 }
0x1296   : > { %v2994_v37 = vadd.f32 1e-05, %v2991_v35 }
0x1297   : > { %v2990_v38 = vpop.xlane.xlu1 %2989 }
0x1298   : > { %4227 = vrsqrt.f32 %v2994_v37  ;;  %v2993_v55 = vmul.f32 0.0078125, %v2990_v38  ;;  %v2988_v40 = vpop.xlane.xlu0 %2987 }
0x1299   : > { %v2992_v42 = vmul.f32 0.0078125, %v2988_v40 }
0x129a   : > { %v2996_v43 = vadd.f32 1e-05, %v2993_v55 }
0x129b   : > { %v2995_v44 = vadd.f32 1e-05, %v2992_v42 }
0x129c   : > { %4229 = vrsqrt.f32 %v2996_v43 }
0x129d   : > { %4231 = vrsqrt.f32 %v2995_v44 }
0x12a5   : > { %v4228_v45 = vpop.eup %4227 }
0x12a6   : > { %v3000_v47 = vmul.f32 %v4228_v45, %v2979_v24 }
0x12a8   : > { %v3009_v63 = vmul.f32 %v3471_v46, %v3000_v47 }
0x12a9   : > { %v4230_v48 = vpop.eup %4229 }
0x12aa   : > { %v4232_v49 = vpop.eup %4231  ;;  %v3018_v50 = vadd.f32 %v3472_v12, %v3009_v63  ;;  %v3002_v51 = vmul.f32 %v4230_v48, %v2981_v30 }
0x12ab   : > { %v3001_v52 = vmul.f32 %v4232_v49, %v2980_v31 }
0x12ac   : > { %v3011_v53 = vmul.f32 %v3471_v46, %v3002_v51  ;;  %3021 = vst [vmem:[%s1237_s13] sm:$0xff] %v3018_v50 }
0x12ad   : > { %v3010_v54 = vmul.f32 %v3471_v46, %v3001_v52 }
0x12ae   : > { %v3020_v56 = vadd.f32 %v3472_v12, %v3011_v53 }
0x12af   : > { %v3019_v27 = vadd.f32 %v3472_v12, %v3010_v54 }
0x12b0   : > { %3023 = vst [vmem:[%s1237_s13 + $0x10] sm:$0xff] %v3020_v56 }
0x12b1   : > { %3022 = vst [vmem:[%s1237_s13 + $0x8] sm:$0xff] %v3019_v27 }
0x12b2   : > { %4846 = shalt.err (!%p4843_p9)
}
0x12b3   : > { %s4847_s17 = scalar_lea.hbm %s5765_s8, 384  ;;  %s4851_s23 = scalar_lea.hbm %s5908_s3, 768 }
0x12b4   : > { %p4848_p11 = scmp.ne.s32.totalorder %s5765_s8, %s4847_s17  ;;  %p4852_p1 = scmp.lt.s32.totalorder %s5765_s8, %s5908_s3 }
0x12b5   : > { %p4853_p5 = scmp.lt.s32.totalorder %s4851_s23, %s4847_s17 }
0x12b6   : > { %p4849_p6 = pnand %p4848_p11, %p5909_p12 }
0x12b7   : > { %p4854_p3 = por %p4853_p5, %p4852_p1 }
0x12b8   : > { %p4850_p8 = pneg %p4849_p6 }
0x12ba   : > { %p4855_p10 = pnand %p4854_p3, %p4850_p8 }
0x12bc   : > { %4858 = shalt.err (!%p4855_p10)
}
0x12bd   : > { %s5010_s7 = smov 128   ;;  %s5011_s5 = smov 8  }
0x12be   : > { %3913 = dma.vmem_to_hbm [thread:$0]  (%p5909_p12), %s5767_s4, 384, %s5765_s8, %s3025_s6, %s5010_s7, %s5010_s7, %s5011_s5  }
0x12bf PF: > { %s3053_s13 = sand.u32 1, %s4933_s15   ;;  %p5910_p7 = scmp.ne.s32.totalorder %s5874_s22, 0 }
0x12c0   : > { %p5911_p13 = scmp.ge.s32.totalorder %s4945_s18, 2  ;;  %s3054_s26 = scalar_lea.sflag [#allocation4], %s3053_s13 }
0x12c2   : > { %p3987_p0 = pnand %p5911_p13, %p5910_p7 }
0x12c4   : > { %p3988_p2 = pneg %p3987_p0 }
0x12c6   : > { %4928 = dma.done.wait (%p3988_p2), %s3054_s26, 384  }
0x12c7   : > { %4930 = vsyncadd (%p3988_p2), %s3054_s26, 4294966912  ;;  %p85_p4 = scmp.ge.s32.totalorder %s5366_s11, 4   ;;  %s5912_s15 = smov %s4937_s16 }
0x12c8   : > { %s5913_s16 = smov %s4941_s0  ;;  %s5914_s0 = smov %s5377_s2 }
0x12c9   : > { %s5915_s18 = smov %s5366_s11  ;;  %87 = sbr.rel (!%p85_p4) target bundleno = 75 (0x4b), region = 304 }
0x12ce   :  { %3059 = vsyncpa [#allocation3], 1 }
0x12cf   :  { %3061 = vsyncpa [#allocation3 + $0x1], 1 }
0x12d0   :  { %3062 = vsyncpa [#allocation6], 1 }
0x12d1   :  { %3064 = vsyncpa [#allocation6 + $0x1], 1 }
0x12d2   :  { %3065 = vsyncpa [#allocation9], 1 }
0x12d3   :  { %3066 = vsyncpa [#allocation12], 1 }
0x12d4   :  { %3067 = vsyncpa [#allocation15], 1 }
0x12d5   :  { %3068 = vsyncpa [#allocation18], 1 }
0x12d6   :  { %3069 = vsyncpa [#allocation21], 1 }
0x12d7   :  { %3070 = vsyncpa [#allocation24], 1 }
0x12d8   :  { %3071 = vsyncpa [#allocation27], 1 }
0x12d9   :  { %3072 = vsyncpa [#allocation30], 1 }
0x12da   :  { %3073 = vsyncpa [#allocation33], 1 }
0x12db   :  { %3074 = vsyncpa [#allocation36], 1 }
0x12dc   :  { %3075 = vsyncpa [#allocation4], 1 }
0x12dd   :  { %3077 = vsyncpa [#allocation4 + $0x1], 1 }

// kernel: tpu_custom_call.1
= control target key start
LH: loop header
LB: loop body
LE: loop exit
PB: predicated region body
PF: predicated region fallthrough
CT: control target
= control target key end

     0   :  { %s4947_s6 = smov 1   ;;  %s4948_s10 = smov 2   ;;  %s5806_s0 = inlined_call_operand.smem [shape: u32[31], index: -1, kind: input, shape index: {}] }
   0x1   :  { %s5020_s5 = sld [smem:[%s5806_s0]]   ;;  %s4949_s14 = smov 3  }
   0x2   :  { %s5025_s9 = sld [smem:[%s5806_s0 + %s4947_s6]]   ;;  %s4950_s18 = smov 4  }
   0x3   :  { %s5030_s13 = sld [smem:[%s5806_s0 + %s4948_s10]]   ;;  %s4951_s22 = smov 5  }
   0x4   :  { %s5035_s17 = sld [smem:[%s5806_s0 + %s4949_s14]]   ;;  %s4952_s26 = smov 6  }
   0x5   :  { %s5040_s21 = sld [smem:[%s5806_s0 + %s4950_s18]]   ;;  %s4953_s30 = smov 7  }
   0x6   :  { %s5045_s25 = sld [smem:[%s5806_s0 + %s4951_s22]]   ;;  %s4954_s4 = smov 8  }
   0x7   :  { %5821 = sst [smem:[#allocation53_spill]] %s5020_s5  ;;  %s4955_s10 = smov 9  }
   0x8   :  { %5822 = sst [smem:[#allocation54_spill]] %s5025_s9  ;;  %s4956_s15 = smov 10  }
   0x9   :  { %5823 = sst [smem:[#allocation55_spill]] %s5030_s13  ;;  %s4957_s20 = smov 11  }
   0xa   :  { %5824 = sst [smem:[#allocation56_spill]] %s5035_s17  ;;  %s4959_s1 = smov 13  }
   0xb   :  { %s5050_s29 = sld [smem:[%s5806_s0 + %s4952_s26]]   ;;  %s4958_s26 = smov 12  }
   0xc   :  { %s5055_s3 = sld [smem:[%s5806_s0 + %s4953_s30]]   ;;  %s4960_s7 = smov 14  }
   0xd   :  { %s5060_s8 = sld [smem:[%s5806_s0 + %s4954_s4]]   ;;  %s4962_s22 = smov 16  }
   0xe   :  { %s5065_s14 = sld [smem:[%s5806_s0 + %s4955_s10]]   ;;  %s4963_s28 = smov 17  }
   0xf   :  { %s5070_s19 = sld [smem:[%s5806_s0 + %s4956_s15]]   ;;  %s4961_s15 = smov 15  }
  0x10   :  { %s5075_s24 = sld [smem:[%s5806_s0 + %s4957_s20]]  }
  0x11   :  { %s5080_s30 = sld [smem:[%s5806_s0 + %s4958_s26]]  }
  0x12   :  { %5825 = sst [smem:[#allocation57_spill]] %s5055_s3 }
  0x13   :  { %5826 = sst [smem:[#allocation58_spill]] %s5060_s8 }
  0x14   :  { %5827 = sst [smem:[#allocation59_spill]] %s5065_s14 }
  0x15   :  { %5828 = sst [smem:[#allocation60_spill]] %s5070_s19 }
  0x16   :  { %s5085_s6 = sld [smem:[%s5806_s0 + %s4959_s1]]  }
  0x17   :  { %5829 = sst [smem:[#allocation61_spill]] %s5080_s30 }
  0x18   :  { %s5090_s12 = sld [smem:[%s5806_s0 + %s4960_s7]]   ;;  %s4964_s7 = smov 18  }
  0x19   :  { %s5095_s20 = sld [smem:[%s5806_s0 + %s4961_s15]]   ;;  %s4965_s15 = smov 19  }
  0x1a   :  { %s5100_s27 = sld [smem:[%s5806_s0 + %s4962_s22]]   ;;  %s4966_s22 = smov 20  }
  0x1b   :  { %s5105_s4 = sld [smem:[%s5806_s0 + %s4963_s28]]   ;;  %s4967_s28 = smov 21  }
  0x1c   :  { %5830 = sst [smem:[#allocation62_spill]] %s5085_s6 }
  0x1d   :  { %s5110_s5 = sld [smem:[%s5806_s0 + %s4964_s7]]   ;;  %s4968_s7 = smov 22  }
  0x1e   :  { %5831 = sst [smem:[#allocation63_spill]] %s5090_s12 }
  0x1f   :  { %5832 = sst [smem:[#allocation64_spill]] %s5095_s20 }
  0x20   :  { %5833 = sst [smem:[#allocation65_spill]] %s5100_s27 }
  0x21   :  { %5834 = sst [smem:[#allocation66_spill]] %s5105_s4 }
  0x22   :  { %s5115_s17 = sld [smem:[%s5806_s0 + %s4965_s15]]   ;;  %s4969_s15 = smov 23  }
  0x23   :  { %5835 = sst [smem:[#allocation67_spill]] %s5110_s5 }
  0x24   :  { %s5120_s13 = sld [smem:[%s5806_s0 + %s4966_s22]]   ;;  %s4970_s22 = smov 24  }
  0x25   :  { %s5125_s4 = sld [smem:[%s5806_s0 + %s4967_s28]]   ;;  %s4971_s28 = smov 25  }
  0x26   :  { %s5130_s27 = sld [smem:[%s5806_s0 + %s4968_s7]]   ;;  %s4972_s7 = smov 26  }
  0x27   :  { %s5140_s12 = sld [smem:[%s5806_s0 + %s4970_s22]]   ;;  %s4974_s22 = smov 28  }
  0x28   :  { %5836 = sst [smem:[#allocation68_spill]] %s5115_s17 }
  0x29   :  { %s5135_s17 = sld [smem:[%s5806_s0 + %s4969_s15]]   ;;  %s4973_s15 = smov 27  }
  0x2a   :  { %5837 = sst [smem:[#allocation69_spill]] %s5120_s13 }
  0x2b   :  { %5838 = sst [smem:[#allocation70_spill]] %s5125_s4 }
  0x2c   :  { %s5145_s4 = sld [smem:[%s5806_s0 + %s4971_s28]]   ;;  %s4975_s28 = smov 29  }
  0x2d   :  { %5840 = sst [smem:[#allocation72_spill]] %s5140_s12 }
  0x2e   :  { %s5150_s30 = sld [smem:[%s5806_s0 + %s4972_s7]]   ;;  %s4976_s7 = smov 30  }
  0x2f   :  { %5839 = sst [smem:[#allocation71_spill]] %s5135_s17 }
  0x30   :  { %s5155_s17 = sld [smem:[%s5806_s0 + %s4973_s15]]  }
  0x31   :  { %s5160_s12 = sld [smem:[%s5806_s0 + %s4974_s22]]  }
  0x32   :  { %5841 = sst [smem:[#allocation73_spill]] %s5145_s4 }
  0x33   :  { %s5165_s4 = sld [smem:[%s5806_s0 + %s4975_s28]]  }
  0x34   :  { %s5170_s19 = sld [smem:[%s5806_s0 + %s4976_s7]]  }
  0x36   :  { %5842 = sst [smem:[#allocation74_spill]] %s5155_s17 }
  0x37   :  { %5843 = sst [smem:[#allocation75_spill]] %s5160_s12 }
  0x39   :  { %5844 = sst [smem:[#allocation76_spill]] %s5165_s4 }
  0x3a   :  { %5845 = sst [smem:[#allocation77_spill]] %s5170_s19 }
  0x3b   :  { %66 = vsyncpa [#allocation3], 0 }
  0x3c   :  { %67 = vsyncpa [#allocation6], 0 }
  0x3d   :  { %69 = vsyncpa [#allocation6 + $0x1], 0 }
  0x3e   :  { %70 = vsyncpa [#allocation9], 0 }
  0x3f   :  { %71 = vsyncpa [#allocation12], 0 }
  0x40   :  { %72 = vsyncpa [#allocation15], 0 }
  0x41   :  { %73 = vsyncpa [#allocation18], 0 }
  0x42   :  { %74 = vsyncpa [#allocation21], 0 }
  0x43   :  { %75 = vsyncpa [#allocation24], 0 }
  0x44   :  { %76 = vsyncpa [#allocation27], 0 }
  0x45   :  { %77 = vsyncpa [#allocation30], 0 }
  0x46   :  { %78 = vsyncpa [#allocation33], 0 }
  0x47   :  { %79 = vsyncpa [#allocation36], 0 }
  0x48   :  { %80 = vsyncpa [#allocation4], 0 }
  0x49   :  { %82 = vsyncpa [#allocation4 + $0x1], 0  ;;  %s5172_s15 = smov 0   ;;  %s5174_s16 = smov 0  }
  0x4a   :  { %s5176_s0 = smov 0   ;;  %s5178_s18 = smov 0  }
  0x4b LB: > { %s4977_s22 = smov [#allocation7]   ;;  %s5193_s26 = sadd.s32 4294967295, %s4945_s18   ;;  %s4945_s18 = sphi %s5178_s18, %s5915_s18   ;;  %s4941_s0 = sphi %s5176_s0, %s5914_s0   ;;  %s4937_s16 = sphi %s5174_s16, %s5913_s16   ;;  %s4933_s15 = sphi %s5172_s15, %s5912_s15  }
  0x4c   : > { %s786_s23 = sshll.u32 %s4977_s22, 4  ;;  %p3353_p0 = scmp.ge.s32.totalorder %s4945_s18, 1  ;;  %s787_s23 = int_to_ptr.vmem [resolvable:$true] %s786_s23 }
  0x4d   : > { %p5811_p1 = scmp.eq.s32.totalorder %s5193_s26, 0  ;;  %p754_p2 = scmp.lt.s32.totalorder %s4945_s18, 3 }
  0x4e   : > { %s4978_s1 = smov [#allocation8]   ;;  %s4979_s7 = smov [#allocation11]  }
  0x4f   : > { %p5198_p3 = pnand %p3353_p0, %p754_p2  ;;  %s797_s2 = sshll.u32 %s4978_s1, 4  ;;  %s5205_s2 = int_to_ptr.vmem [resolvable:$true] %s797_s2 }
  0x50   : > { %s819_s10 = sshll.u32 %s4979_s7, 4  ;;  %s4980_s22 = smov [#allocation14]   ;;  %s5213_s10 = int_to_ptr.vmem [resolvable:$true] %s819_s10 }
  0x51   : > { %s5846_s28 = scalar_select %p5198_p3, 1, 0 }
  0x52   : > { %p3915_p5 = pneg %p5198_p3  ;;  %s5215_s19 = sshll.u32 %s4980_s22, 4  ;;  %s842_s19 = int_to_ptr.vmem [resolvable:$true] %s5215_s19 }
  0x53   : > { %s4244_s1 = scalar_lea.vmem %s787_s23, 16  ;;  %s4251_s7 = scalar_lea.vmem %s787_s23, 32 }
  0x54   : > { %p5209_p6 = pnand %p3915_p5, %p5811_p1  ;;  %p4245_p8 = scmp.ne.s32.totalorder %s787_s23, %s4244_s1 }
  0x55   : > { %p4252_p11 = scmp.lt.s32.totalorder %s787_s23, %s787_s23  ;;  %p4253_p12 = scmp.lt.s32.totalorder %s4251_s7, %s4244_s1 }
  0x56   : > { %p5219_p7 = pneg %p5209_p6 }
  0x57   : > { %p4254_p13 = por %p4253_p12, %p4252_p11 }
  0x58   : > { %p4247_p9 = pnand %p4245_p8, %p5219_p7 }
  0x5a   : > { %p4248_p10 = pneg %p4247_p9 }
  0x5c   : > { %p4255_p0 = pnand %p4254_p13, %p4248_p10 }
  0x5e   : > { %4258 = shalt.err (!%p4255_p0)
}
  0x5f   : > { %3921 = dma.hbm_to_vmem [thread:$0]  (!%p5209_p6), %s5040_s21, 16, %s787_s23, [#allocation6]  }
  0x60   : > { %s4270_s22 = scalar_lea.vmem %s5205_s2, 16  ;;  %s4277_s17 = scalar_lea.vmem %s5205_s2, 32 }
  0x61   : > { %p4271_p2 = scmp.ne.s32.totalorder %s5205_s2, %s4270_s22  ;;  %p4278_p9 = scmp.lt.s32.totalorder %s5205_s2, %s5205_s2 }
  0x62   : > { %p4279_p11 = scmp.lt.s32.totalorder %s4277_s17, %s4270_s22 }
  0x63   : > { %p4273_p5 = pnand %p4271_p2, %p5219_p7 }
  0x64   : > { %p4280_p10 = por %p4279_p11, %p4278_p9 }
  0x65   : > { %p4274_p8 = pneg %p4273_p5 }
  0x67   : > { %p4281_p12 = pnand %p4280_p10, %p4274_p8 }
  0x69   : > { %4284 = shalt.err (!%p4281_p12)
}
  0x6a   : > { %3924 = dma.hbm_to_vmem [thread:$0]  (!%p5209_p6), %s5045_s25, 16, %s5205_s2, [#allocation9]  }
  0x6b   : > { %s4296_s23 = scalar_lea.vmem %s5213_s10, 16  ;;  %s4303_s1 = scalar_lea.vmem %s5213_s10, 32 }
  0x6c   : > { %p4297_p13 = scmp.ne.s32.totalorder %s5213_s10, %s4296_s23  ;;  %p4304_p5 = scmp.lt.s32.totalorder %s5213_s10, %s5213_s10 }
  0x6d   : > { %p4305_p8 = scmp.lt.s32.totalorder %s4303_s1, %s4296_s23 }
  0x6e   : > { %p4299_p0 = pnand %p4297_p13, %p5219_p7 }
  0x6f   : > { %p4306_p9 = por %p4305_p8, %p4304_p5 }
  0x70   : > { %p4300_p2 = pneg %p4299_p0 }
  0x72   : > { %p4307_p11 = pnand %p4306_p9, %p4300_p2 }
  0x74   : > { %4310 = shalt.err (!%p4307_p11)
}
  0x75   : > { %s5849_s3 = sld [smem:[#allocation57_spill]]  ;;  %s4981_s17 = smov [#allocation17]  }
  0x76   : > { %s863_s2 = sshll.u32 %s4981_s17, 4  ;;  %s4322_s7 = scalar_lea.vmem %s842_s19, 16  ;;  %s864_s2 = int_to_ptr.vmem [resolvable:$true] %s863_s2 }
  0x77   : > { %p4323_p10 = scmp.ne.s32.totalorder %s842_s19, %s4322_s7  ;;  %s4329_s22 = scalar_lea.vmem %s842_s19, 32 }
  0x78   : > { %p4330_p0 = scmp.lt.s32.totalorder %s842_s19, %s842_s19  ;;  %p4331_p5 = scmp.lt.s32.totalorder %s4329_s22, %s4322_s7 }
  0x79   : > { %p4325_p12 = pnand %p4323_p10, %p5219_p7 }
  0x7a   : > { %p4332_p2 = por %p4331_p5, %p4330_p0 }
  0x7b   : > { %3930 = dma.hbm_to_vmem [thread:$0]  (!%p5209_p6), %s5849_s3, 16, %s5213_s10, [#allocation12]  }
  0x7c   : > { %p4326_p13 = pneg %p4325_p12 }
  0x7e   : > { %p4333_p8 = pnand %p4332_p2, %p4326_p13 }
  0x80   : > { %4336 = shalt.err (!%p4333_p8)
}
  0x81   : > { %s5850_s14 = sld [smem:[#allocation59_spill]]  ;;  %s4348_s10 = scalar_lea.vmem %s864_s2, 16 }
  0x82   : > { %p4349_p9 = scmp.ne.s32.totalorder %s864_s2, %s4348_s10  ;;  %s4355_s23 = scalar_lea.vmem %s864_s2, 32 }
  0x83   : > { %p4356_p10 = scmp.lt.s32.totalorder %s864_s2, %s864_s2  ;;  %p4357_p12 = scmp.lt.s32.totalorder %s4355_s23, %s4348_s10 }
  0x84   : > { %p4351_p11 = pnand %p4349_p9, %p5219_p7 }
  0x85   : > { %p4358_p1 = por %p4357_p12, %p4356_p10 }
  0x86   : > { %p4352_p4 = pneg %p4351_p11 }
  0x87   : > { %3936 = dma.hbm_to_vmem [thread:$0]  (!%p5209_p6), %s5850_s14, 16, %s842_s19, [#allocation15]  }
  0x88   : > { %p4359_p3 = pnand %p4358_p1, %p4352_p4 }
  0x8a   : > { %4362 = shalt.err (!%p4359_p3)
}
  0x8b   : > { %3942 = dma.hbm_to_vmem [thread:$0]  (!%p5209_p6), %s5075_s24, 16, %s864_s2, [#allocation18]  }
  0x8c   : > { %s4982_s1 = smov [#allocation20]   ;;  %s4983_s19 = smov [#allocation23]  }
  0x8d   : > { %s885_s17 = sshll.u32 %s4982_s1, 4  ;;  %s907_s7 = sshll.u32 %s4983_s19, 4  ;;  %s886_s17 = int_to_ptr.vmem [resolvable:$true] %s885_s17  ;;  %s908_s7 = int_to_ptr.vmem [resolvable:$true] %s907_s7 }
  0x8e   : > { %s4374_s22 = scalar_lea.vmem %s886_s17, 16  ;;  %s4381_s3 = scalar_lea.vmem %s886_s17, 32 }
  0x8f   : > { %p4375_p13 = scmp.ne.s32.totalorder %s886_s17, %s4374_s22  ;;  %p4382_p2 = scmp.lt.s32.totalorder %s886_s17, %s886_s17 }
  0x90   : > { %p4383_p8 = scmp.lt.s32.totalorder %s4381_s3, %s4374_s22 }
  0x91   : > { %p4377_p0 = pnand %p4375_p13, %p5219_p7 }
  0x92   : > { %p4384_p1 = por %p4383_p8, %p4382_p2 }
  0x93   : > { %p4378_p5 = pneg %p4377_p0 }
  0x95   : > { %p4385_p3 = pnand %p4384_p1, %p4378_p5 }
  0x97   : > { %4388 = shalt.err (!%p4385_p3)
}
  0x98   : > { %s5851_s6 = sld [smem:[#allocation62_spill]]  ;;  %s4400_s2 = scalar_lea.vmem %s908_s7, 16 }
  0x99   : > { %p4401_p4 = scmp.ne.s32.totalorder %s908_s7, %s4400_s2  ;;  %s4407_s10 = scalar_lea.vmem %s908_s7, 32 }
  0x9a   : > { %p4408_p10 = scmp.lt.s32.totalorder %s908_s7, %s908_s7  ;;  %p4409_p12 = scmp.lt.s32.totalorder %s4407_s10, %s4400_s2 }
  0x9b   : > { %p4403_p9 = pnand %p4401_p4, %p5219_p7 }
  0x9c   : > { %p4410_p13 = por %p4409_p12, %p4408_p10 }
  0x9d   : > { %p4404_p11 = pneg %p4403_p9 }
  0x9e   : > { %3948 = dma.hbm_to_vmem [thread:$0]  (!%p5209_p6), %s5851_s6, 16, %s886_s17, [#allocation21]  }
  0x9f   : > { %p4411_p0 = pnand %p4410_p13, %p4404_p11 }
  0xa1   : > { %4414 = shalt.err (!%p4411_p0)
}
  0xa2   : > { %s5852_s20 = sld [smem:[#allocation64_spill]]  ;;  %s4984_s3 = smov [#allocation26]  }
  0xa3   : > { %s933_s23 = sshll.u32 %s4984_s3, 4  ;;  %s4985_s1 = smov [#allocation29]   ;;  %s934_s23 = int_to_ptr.vmem [resolvable:$true] %s933_s23 }
  0xa4   : > { %s957_s17 = sshll.u32 %s4985_s1, 4  ;;  %s4426_s19 = scalar_lea.vmem %s934_s23, 2048  ;;  %s958_s17 = int_to_ptr.vmem [resolvable:$true] %s957_s17 }
  0xa5   : > { %p4427_p5 = scmp.ne.s32.totalorder %s934_s23, %s4426_s19  ;;  %p4434_p1 = scmp.lt.s32.totalorder %s934_s23, %s934_s23 }
  0xa6   : > { %p4435_p3 = scmp.lt.s32.totalorder %s4426_s19, %s4426_s19 }
  0xa7   : > { %p4429_p2 = pnand %p4427_p5, %p5219_p7 }
  0xa8   : > { %3954 = dma.hbm_to_vmem [thread:$0]  (!%p5209_p6), %s5852_s20, 16, %s908_s7, [#allocation24]  }
  0xa9   : > { %p4430_p8 = pneg %p4429_p2  ;;  %p4436_p4 = por %p4435_p3, %p4434_p1 }
  0xab   : > { %p4437_p9 = pnand %p4436_p4, %p4430_p8 }
  0xad   : > { %4440 = shalt.err (!%p4437_p9)
}
  0xae   : > { %s5813_s22 = smov 128   ;;  %s5853_s5 = sld [smem:[#allocation67_spill]] }
  0xaf   : > { %s5814_s7 = smov 8   ;;  %s4452_s2 = scalar_lea.vmem %s958_s17, 2048 }
  0xb0   : > { %p4453_p11 = scmp.ne.s32.totalorder %s958_s17, %s4452_s2  ;;  %p4460_p13 = scmp.lt.s32.totalorder %s958_s17, %s958_s17 }
  0xb1   : > { %p4461_p0 = scmp.lt.s32.totalorder %s4452_s2, %s4452_s2 }
  0xb2   : > { %p4455_p10 = pnand %p4453_p11, %p5219_p7 }
  0xb3   : > { %p4462_p5 = por %p4461_p0, %p4460_p13 }
  0xb4   : > { %3960 = dma.hbm_to_vmem [thread:$0]  (!%p5209_p6), %s5853_s5, 2048, %s934_s23, [#allocation27], %s5813_s22, %s5813_s22, %s5814_s7  }
  0xb5   : > { %p4456_p12 = pneg %p4455_p10 }
  0xb7   : > { %p4463_p2 = pnand %p4462_p5, %p4456_p12 }
  0xb9   : > { %4466 = shalt.err (!%p4463_p2)
}
  0xba   : > { %s5854_s13 = sld [smem:[#allocation69_spill]]  ;;  %s4988_s10 = smov [#allocation32]  }
  0xbb   : > { %s981_s3 = sshll.u32 %s4988_s10, 4  ;;  %s4989_s23 = smov [#allocation35]   ;;  %s982_s3 = int_to_ptr.vmem [resolvable:$true] %s981_s3 }
  0xbc   : > { %s1011_s1 = sshll.u32 %s4989_s23, 4  ;;  %s4478_s19 = scalar_lea.vmem %s982_s3, 2048  ;;  %s1012_s1 = int_to_ptr.vmem [resolvable:$true] %s1011_s1 }
  0xbd   : > { %p4479_p8 = scmp.ne.s32.totalorder %s982_s3, %s4478_s19  ;;  %p4486_p4 = scmp.lt.s32.totalorder %s982_s3, %s982_s3 }
  0xbe   : > { %p4487_p9 = scmp.lt.s32.totalorder %s4478_s19, %s4478_s19 }
  0xbf   : > { %p4481_p1 = pnand %p4479_p8, %p5219_p7 }
  0xc0   : > { %3966 = dma.hbm_to_vmem [thread:$0]  (!%p5209_p6), %s5854_s13, 2048, %s958_s17, [#allocation30], %s5813_s22, %s5813_s22, %s5814_s7  }
  0xc1   : > { %p4482_p3 = pneg %p4481_p1  ;;  %p4488_p11 = por %p4487_p9, %p4486_p4 }
  0xc3   : > { %p4489_p10 = pnand %p4488_p11, %p4482_p3 }
  0xc5   : > { %4492 = shalt.err (!%p4489_p10)
}
  0xc6   : > { %3972 = dma.hbm_to_vmem [thread:$0]  (!%p5209_p6), %s5130_s27, 2048, %s982_s3, [#allocation33], %s5813_s22, %s5813_s22, %s5814_s7  }
  0xc7   : > { %s4504_s17 = scalar_lea.vmem %s1012_s1, 1024  ;;  %p4512_p5 = scmp.lt.s32.totalorder %s1012_s1, %s1012_s1 }
  0xc8   : > { %p4505_p12 = scmp.ne.s32.totalorder %s1012_s1, %s4504_s17  ;;  %p4513_p2 = scmp.lt.s32.totalorder %s4504_s17, %s4504_s17 }
  0xca   : > { %p4507_p13 = pnand %p4505_p12, %p5219_p7  ;;  %p4514_p8 = por %p4513_p2, %p4512_p5 }
  0xcc   : > { %p4508_p0 = pneg %p4507_p13 }
  0xce   : > { %p4515_p1 = pnand %p4514_p8, %p4508_p0 }
  0xd0   : > { %4518 = shalt.err (!%p4515_p1)
}
  0xd1   : > { %s5815_s2 = smov 64   ;;  %s5817_s10 = smov 4  }
  0xd2   : > { %3978 = dma.hbm_to_vmem [thread:$0]  (!%p5209_p6), %s5150_s30, 1024, %s1012_s1, [#allocation36], %s5815_s2, %s5815_s2, %s5817_s10  }
  0xd3   : > { %s4992_s3 = smov [#allocation2]   ;;  %s4993_s19 = smov [#allocation10]  }
  0xd4   : > { %s769_s23 = sshll.u32 %s4992_s3, 4  ;;  %s808_s22 = sshll.u32 %s4993_s19, 4  ;;  %s770_s23 = int_to_ptr.vmem [resolvable:$true] %s769_s23  ;;  %s809_s22 = int_to_ptr.vmem [resolvable:$true] %s808_s22 }
  0xd5   : > { %s4530_s7 = scalar_lea.vmem %s770_s23, 384  ;;  %p4538_p11 = scmp.lt.s32.totalorder %s770_s23, %s770_s23 }
  0xd6   : > { %p4531_p3 = scmp.ne.s32.totalorder %s770_s23, %s4530_s7  ;;  %p4539_p10 = scmp.lt.s32.totalorder %s4530_s7, %s4530_s7 }
  0xd8   : > { %p4533_p4 = pnand %p4531_p3, %p5219_p7  ;;  %p4540_p12 = por %p4539_p10, %p4538_p11 }
  0xda   : > { %p4534_p9 = pneg %p4533_p4 }
  0xdc   : > { %p4541_p13 = pnand %p4540_p12, %p4534_p9 }
  0xde   : > { %4544 = shalt.err (!%p4541_p13)
}
  0xdf   : > { %s5855_s17 = smov 8   ;;  %s5856_s5 = smov 128  }
  0xe0   : > { %s5857_s9 = sld [smem:[#allocation54_spill]]  ;;  %s4556_s1 = scalar_lea.vmem %s809_s22, 16 }
  0xe1   : > { %p4557_p0 = scmp.ne.s32.totalorder %s809_s22, %s4556_s1  ;;  %s4563_s3 = scalar_lea.vmem %s809_s22, 32 }
  0xe2   : > { %p4564_p8 = scmp.lt.s32.totalorder %s809_s22, %s809_s22  ;;  %p4565_p1 = scmp.lt.s32.totalorder %s4563_s3, %s4556_s1 }
  0xe3   : > { %p4559_p5 = pnand %p4557_p0, %p5219_p7 }
  0xe4   : > { %p4566_p3 = por %p4565_p1, %p4564_p8 }
  0xe5   : > { %p4560_p2 = pneg %p4559_p5 }
  0xe6   : > { %3918 = dma.hbm_to_vmem [thread:$0]  (!%p5209_p6), %s5857_s9, 384, %s770_s23, [#allocation3], %s5856_s5, %s5856_s5, %s5855_s17  }
  0xe7   : > { %p4567_p4 = pnand %p4566_p3, %p4560_p2 }
  0xe9   : > { %4570 = shalt.err (!%p4567_p4)
}
  0xea   : > { %3927 = dma.hbm_to_vmem [thread:$0]  (!%p5209_p6), %s5050_s29, 16, %s809_s22, [#allocation9]  }
  0xeb   : > { %s4994_s7 = smov [#allocation13]   ;;  %s4995_s5 = smov [#allocation16]  }
  0xec   : > { %s830_s19 = sshll.u32 %s4994_s7, 4  ;;  %s852_s23 = sshll.u32 %s4995_s5, 4  ;;  %s831_s19 = int_to_ptr.vmem [resolvable:$true] %s830_s19  ;;  %s853_s23 = int_to_ptr.vmem [resolvable:$true] %s852_s23 }
  0xed   : > { %s4582_s17 = scalar_lea.vmem %s831_s19, 16  ;;  %s4589_s2 = scalar_lea.vmem %s831_s19, 32 }
  0xee   : > { %p4583_p9 = scmp.ne.s32.totalorder %s831_s19, %s4582_s17  ;;  %p4590_p12 = scmp.lt.s32.totalorder %s831_s19, %s831_s19 }
  0xef   : > { %p4591_p13 = scmp.lt.s32.totalorder %s4589_s2, %s4582_s17 }
  0xf0   : > { %p4585_p11 = pnand %p4583_p9, %p5219_p7 }
  0xf1   : > { %p4592_p0 = por %p4591_p13, %p4590_p12 }
  0xf2   : > { %p4586_p10 = pneg %p4585_p11 }
  0xf4   : > { %p4593_p5 = pnand %p4592_p0, %p4586_p10 }
  0xf6   : > { %4596 = shalt.err (!%p4593_p5)
}
  0xf7   : > { %s5858_s8 = sld [smem:[#allocation58_spill]]  ;;  %s4608_s22 = scalar_lea.vmem %s853_s23, 16 }
  0xf8   : > { %p4609_p2 = scmp.ne.s32.totalorder %s853_s23, %s4608_s22  ;;  %s4615_s1 = scalar_lea.vmem %s853_s23, 32 }
  0xf9   : > { %p4616_p3 = scmp.lt.s32.totalorder %s853_s23, %s853_s23  ;;  %p4617_p4 = scmp.lt.s32.totalorder %s4615_s1, %s4608_s22 }
  0xfa   : > { %p4611_p8 = pnand %p4609_p2, %p5219_p7 }
  0xfb   : > { %p4618_p9 = por %p4617_p4, %p4616_p3 }
  0xfc   : > { %p4612_p1 = pneg %p4611_p8 }
  0xfd   : > { %3933 = dma.hbm_to_vmem [thread:$0]  (!%p5209_p6), %s5858_s8, 16, %s831_s19, [#allocation12]  }
  0xfe   : > { %p4619_p11 = pnand %p4618_p9, %p4612_p1 }
 0x100   : > { %4622 = shalt.err (!%p4619_p11)
}
 0x101   : > { %s5859_s2 = sld [smem:[#allocation60_spill]]  ;;  %s4996_s3 = smov [#allocation19]  }
 0x102   : > { %s874_s7 = sshll.u32 %s4996_s3, 4  ;;  %s4997_s19 = smov [#allocation22]   ;;  %s875_s7 = int_to_ptr.vmem [resolvable:$true] %s874_s7 }
 0x103   : > { %s896_s5 = sshll.u32 %s4997_s19, 4  ;;  %s4634_s17 = scalar_lea.vmem %s875_s7, 16  ;;  %s897_s5 = int_to_ptr.vmem [resolvable:$true] %s896_s5 }
 0x104   : > { %p4635_p10 = scmp.ne.s32.totalorder %s875_s7, %s4634_s17  ;;  %s4641_s10 = scalar_lea.vmem %s875_s7, 32 }
 0x105   : > { %p4642_p0 = scmp.lt.s32.totalorder %s875_s7, %s875_s7  ;;  %p4643_p5 = scmp.lt.s32.totalorder %s4641_s10, %s4634_s17 }
 0x106   : > { %p4637_p12 = pnand %p4635_p10, %p5219_p7 }
 0x107   : > { %3939 = dma.hbm_to_vmem [thread:$0]  (!%p5209_p6), %s5859_s2, 16, %s853_s23, [#allocation15]  }
 0x108   : > { %p4638_p13 = pneg %p4637_p12  ;;  %p4644_p2 = por %p4643_p5, %p4642_p0 }
 0x10a   : > { %p4645_p8 = pnand %p4644_p2, %p4638_p13 }
 0x10c   : > { %4648 = shalt.err (!%p4645_p8)
}
 0x10d   : > { %s5860_s22 = sld [smem:[#allocation61_spill]]  ;;  %s4660_s23 = scalar_lea.vmem %s897_s5, 16 }
 0x10e   : > { %p4661_p1 = scmp.ne.s32.totalorder %s897_s5, %s4660_s23  ;;  %s4667_s1 = scalar_lea.vmem %s897_s5, 32 }
 0x10f   : > { %p4668_p9 = scmp.lt.s32.totalorder %s897_s5, %s897_s5  ;;  %p4669_p11 = scmp.lt.s32.totalorder %s4667_s1, %s4660_s23 }
 0x110   : > { %p4663_p3 = pnand %p4661_p1, %p5219_p7 }
 0x111   : > { %p4670_p10 = por %p4669_p11, %p4668_p9 }
 0x112   : > { %p4664_p4 = pneg %p4663_p3 }
 0x113   : > { %3945 = dma.hbm_to_vmem [thread:$0]  (!%p5209_p6), %s5860_s22, 16, %s875_s7, [#allocation18]  }
 0x114   : > { %p4671_p12 = pnand %p4670_p10, %p4664_p4 }
 0x116   : > { %4674 = shalt.err (!%p4671_p12)
}
 0x117   : > { %s5861_s10 = sld [smem:[#allocation63_spill]]  ;;  %s4998_s2 = smov [#allocation25]  }
 0x118   : > { %s917_s3 = sshll.u32 %s4998_s2, 4  ;;  %s918_s3 = int_to_ptr.vmem [resolvable:$true] %s917_s3 }
 0x119   : > { %s4686_s7 = scalar_lea.vmem %s918_s3, 6144  ;;  %p4694_p2 = scmp.lt.s32.totalorder %s918_s3, %s918_s3 }
 0x11a   : > { %p4687_p13 = scmp.ne.s32.totalorder %s918_s3, %s4686_s7  ;;  %p4695_p8 = scmp.lt.s32.totalorder %s4686_s7, %s4686_s7 }
 0x11c   : > { %p4689_p0 = pnand %p4687_p13, %p5219_p7  ;;  %p4696_p1 = por %p4695_p8, %p4694_p2 }
 0x11d   : > { %3951 = dma.hbm_to_vmem [thread:$0]  (!%p5209_p6), %s5861_s10, 16, %s897_s5, [#allocation21]  }
 0x11e   : > { %p4690_p5 = pneg %p4689_p0 }
 0x120   : > { %p4697_p3 = pnand %p4696_p1, %p4690_p5 }
 0x122   : > { %4700 = shalt.err (!%p4697_p3)
}
 0x123   : > { %s4999_s19 = smov 384   ;;  %s5862_s17 = sld [smem:[#allocation65_spill]] }
 0x124   : > { %s5000_s22 = smov 24   ;;  %s5001_s5 = smov [#allocation28]  }
 0x125   : > { %s947_s23 = sshll.u32 %s5001_s5, 4  ;;  %s5002_s1 = smov [#allocation31]   ;;  %s948_s23 = int_to_ptr.vmem [resolvable:$true] %s947_s23 }
 0x126   : > { %s971_s10 = sshll.u32 %s5002_s1, 4  ;;  %s4712_s2 = scalar_lea.vmem %s948_s23, 16  ;;  %s972_s10 = int_to_ptr.vmem [resolvable:$true] %s971_s10 }
 0x127   : > { %p4713_p4 = scmp.ne.s32.totalorder %s948_s23, %s4712_s2  ;;  %s4719_s7 = scalar_lea.vmem %s948_s23, 32 }
 0x128   : > { %p4720_p10 = scmp.lt.s32.totalorder %s948_s23, %s948_s23  ;;  %p4721_p12 = scmp.lt.s32.totalorder %s4719_s7, %s4712_s2 }
 0x129   : > { %3957 = dma.hbm_to_vmem [thread:$0]  (!%p5209_p6), %s5862_s17, 6144, %s918_s3, [#allocation24], %s4999_s19, %s4999_s19, %s5000_s22  }
 0x12a   : > { %p4715_p9 = pnand %p4713_p4, %p5219_p7  ;;  %p4722_p13 = por %p4721_p12, %p4720_p10 }
 0x12c   : > { %p4716_p11 = pneg %p4715_p9 }
 0x12e   : > { %p4723_p0 = pnand %p4722_p13, %p4716_p11 }
 0x130   : > { %4726 = shalt.err (!%p4723_p0)
}
 0x131   : > { %s5863_s3 = sld [smem:[#allocation68_spill]]  ;;  %s4738_s19 = scalar_lea.vmem %s972_s10, 16 }
 0x132   : > { %p4739_p5 = scmp.ne.s32.totalorder %s972_s10, %s4738_s19  ;;  %s4745_s17 = scalar_lea.vmem %s972_s10, 32 }
 0x133   : > { %p4746_p1 = scmp.lt.s32.totalorder %s972_s10, %s972_s10  ;;  %p4747_p3 = scmp.lt.s32.totalorder %s4745_s17, %s4738_s19 }
 0x134   : > { %p4741_p2 = pnand %p4739_p5, %p5219_p7 }
 0x135   : > { %p4748_p4 = por %p4747_p3, %p4746_p1 }
 0x136   : > { %p4742_p8 = pneg %p4741_p2 }
 0x137   : > { %3963 = dma.hbm_to_vmem [thread:$0]  (!%p5209_p6), %s5863_s3, 16, %s948_s23, [#allocation27]  }
 0x138   : > { %p4749_p9 = pnand %p4748_p4, %p4742_p8 }
 0x13a   : > { %4752 = shalt.err (!%p4749_p9)
}
 0x13b   : > { %s5864_s22 = sld [smem:[#allocation70_spill]]  ;;  %s5003_s5 = smov [#allocation34]  }
 0x13c   : > { %s995_s1 = sshll.u32 %s5003_s5, 4  ;;  %s5004_s2 = smov [#allocation37]   ;;  %s996_s1 = int_to_ptr.vmem [resolvable:$true] %s995_s1 }
 0x13d   : > { %s1027_s23 = sshll.u32 %s5004_s2, 4  ;;  %s4764_s7 = scalar_lea.vmem %s996_s1, 32  ;;  %s1028_s23 = int_to_ptr.vmem [resolvable:$true] %s1027_s23 }
 0x13e   : > { %p4765_p11 = scmp.ne.s32.totalorder %s996_s1, %s4764_s7  ;;  %p4772_p13 = scmp.lt.s32.totalorder %s996_s1, %s996_s1 }
 0x13f   : > { %p4773_p0 = scmp.lt.s32.totalorder %s4764_s7, %s4764_s7 }
 0x140   : > { %p4767_p10 = pnand %p4765_p11, %p5219_p7 }
 0x141   : > { %3969 = dma.hbm_to_vmem [thread:$0]  (!%p5209_p6), %s5864_s22, 16, %s972_s10, [#allocation30]  }
 0x142   : > { %p4768_p12 = pneg %p4767_p10  ;;  %p4774_p5 = por %p4773_p0, %p4772_p13 }
 0x144   : > { %p4775_p2 = pnand %p4774_p5, %p4768_p12 }
 0x146   : > { %4778 = shalt.err (!%p4775_p2)
}
 0x147   : > { %s5865_s3 = sld [smem:[#allocation71_spill]]  ;;  %s4790_s10 = scalar_lea.vmem %s1028_s23, 1024 }
 0x148   : > { %p4791_p8 = scmp.ne.s32.totalorder %s1028_s23, %s4790_s10  ;;  %p4798_p4 = scmp.lt.s32.totalorder %s1028_s23, %s1028_s23 }
 0x149   : > { %p4799_p9 = scmp.lt.s32.totalorder %s4790_s10, %s4790_s10 }
 0x14a   : > { %p4793_p1 = pnand %p4791_p8, %p5219_p7 }
 0x14b   : > { %p4800_p11 = por %p4799_p9, %p4798_p4 }
 0x14c   : > { %p4794_p3 = pneg %p4793_p1 }
 0x14d   : > { %3975 = dma.hbm_to_vmem [thread:$0]  (!%p5209_p6), %s5865_s3, 32, %s996_s1, [#allocation33]  }
 0x14e   : > { %p4801_p10 = pnand %p4800_p11, %p4794_p3 }
 0x150   : > { %4804 = shalt.err (!%p4801_p10)
}
 0x151   : > { %s5866_s19 = smov 4   ;;  %s5867_s17 = smov 64  }
 0x152   : > { %s5868_s12 = sld [smem:[#allocation75_spill]]  ;;  %s3352_s4 = sadd.s32 4294967294, %s4945_s18  }
 0x153   : > { %s5366_s11 = sadd.s32 1, %s4945_s18   ;;  %s137_s5 = sadd.s32 1, %s4941_s0 }
 0x154   : > { %s134_s22 = ssub.s32 %s4945_s18, %s5366_s11  ;;  %s5869_s1 = sld [smem:[#allocation55_spill]] }
 0x155   : > { %p135_p7 = scmp.eq.s32.totalorder %s134_s22, 0  ;;  %p144_p12 = scmp.ne.s32.totalorder %s4941_s0, %s4937_s16 }
 0x156   : > { %p145_p13 = scmp.eq.s32.totalorder %s4945_s18, 0  ;;  %p150_p0 = scmp.ne.s32.totalorder %s4937_s16, %s4933_s15 }
 0x157   : > { %s5377_s2 = scalar_select %p135_p7, %s4941_s0, %s137_s5  }
 0x158   : > { %3981 = dma.hbm_to_vmem [thread:$0]  (!%p5209_p6), %s5868_s12, 1024, %s1028_s23, [#allocation36], %s5867_s17, %s5867_s17, %s5866_s19  }
 0x159   : > { %p5379_p5 = por %p145_p13, %p144_p12  ;;  %p5871_p6 = scmp.eq.s32.totalorder %s5193_s26, 0 }
 0x15a   : > { %p741_p8 = scmp.eq.s32.totalorder %s5193_s26, 1  ;;  %p747_p1 = scmp.eq.s32.totalorder %s3352_s4, 1 }
 0x15b   : > { %p5385_p2 = por %p5871_p6, %p150_p0  ;;  %p4012_p3 = scmp.lt.s32.totalorder %s4945_s18, 2 }
 0x15c   : > { %s1044_s3 = sand.u32 1, %s4945_s18   ;;  %p5392_p4 = por %p741_p8, %p144_p12 }
 0x15d   : > { %s5872_s23 = scalar_select %p5385_p2, 1, 0 }
 0x15e   : > { %s5873_s10 = scalar_select %p5392_p4, 1, 0 }
 0x15f   : > { %p5396_p9 = por %p747_p1, %p150_p0  ;;  %s1046_s5 = sand.u32 1, %s4941_s0  }
 0x160   : > { %s3377_s6 = sshll.u32 %s1046_s5, 5  ;;  %s3476_s8 = sshll.u32 %s4945_s18, 9 }
 0x161   : > { %s5874_s22 = scalar_select %p5396_p9, 1, 0 }
 0x162   : > { %s5403_s9 = scalar_lea.hbm %s5869_s1, %s3476_s8  ;;  %s1048_s4 = scalar_lea.vmem [#allocation5], %s3377_s6 }
 0x163   : > { %s1055_s12 = sshll.u32 %s1048_s4, 4  ;;  %p5407_p11 = pnand %p4012_p3, %p5379_p5  ;;  %s5411_s12 = int_to_ptr.vmem [resolvable:$true] %s1055_s12 }
 0x164   : > { %s5413_s14 = scalar_lea.sflag [#allocation6], %s1044_s3  ;;  %s4805_s20 = scalar_lea.hbm %s5403_s9, 512 }
 0x165   : > { %p4806_p10 = scmp.ne.s32.totalorder %s5403_s9, %s4805_s20  ;;  %p4807_p7 = pneg %p5407_p11 }
 0x166   : > { %s4810_s8 = scalar_lea.hbm %s5869_s1, 1024  ;;  %p4811_p0 = scmp.lt.s32.totalorder %s5403_s9, %s5869_s1 }
 0x167   : > { %p4808_p12 = pnand %p4807_p7, %p4806_p10  ;;  %p4812_p6 = scmp.lt.s32.totalorder %s4810_s8, %s4805_s20 }
 0x169   : > { %p4809_p13 = pneg %p4808_p12  ;;  %p4813_p8 = por %p4812_p6, %p4811_p0 }
 0x16b   : > { %p4814_p1 = pnand %p4813_p8, %p4809_p13 }
 0x16d   : > { %4817 = shalt.err (!%p4814_p1)
}
 0x16e   : > { %s4818_s6 = scalar_lea.vmem %s5411_s12, 512  ;;  %s5005_s7 = smov [#allocation5]  }
 0x16f   : > { %p4819_p5 = scmp.ne.s32.totalorder %s5411_s12, %s4818_s6  ;;  %s4823_s3 = sshll.u32 %s5005_s7, 4  ;;  %s4824_s3 = int_to_ptr.vmem [resolvable:$false] %s4823_s3 }
 0x170   : > { %s4825_s5 = scalar_lea.vmem %s4824_s3, 1024  ;;  %p4826_p4 = scmp.lt.s32.totalorder %s5411_s12, %s4824_s3 }
 0x171   : > { %p4821_p3 = pnand %p4819_p5, %p4807_p7  ;;  %p4827_p10 = scmp.lt.s32.totalorder %s4825_s5, %s4818_s6 }
 0x173   : > { %p4822_p9 = pneg %p4821_p3  ;;  %p4828_p12 = por %p4827_p10, %p4826_p4 }
 0x175   : > { %p4829_p2 = pnand %p4828_p12, %p4822_p9 }
 0x177   : > { %4832 = shalt.err (!%p4829_p2)
}
 0x178   : > { %3985 = dma.hbm_to_vmem [thread:$0]  (!%p5407_p11), %s5403_s9, 512, %s5411_s12, %s5413_s14, %s5867_s17, %s5867_s17, %s5866_s19  }
 0x179   : > { %p5876_p7 = scmp.ne.s32.totalorder %s5846_s28, 0 }
 0x17a   : > { %p5877_p13 = scmp.eq.s32.totalorder (!%p5876_p7), %s5193_s26, 0 }
 0x17b   : > { %1067 = sbr.rel (%p5876_p7) target bundleno = 4799 (0x12bf), region = 140 }
 0x180   : > { %4876 = dma.done.wait (%p5877_p13), [#allocation3], 384   ;;  %p5878_p0 = pmov %p5877_p13 }
 0x181   : > { %s1073_s13 = sand.u32 1, %s5193_s26   ;;  %s5441_s20 = sand.u32 1, %s4937_s16  }
 0x182   : > { %4878 = vsyncadd (%p5878_p0), [#allocation3], 4294966912  ;;  %s3382_s4 = sshll.u32 %s5441_s20, 5  ;;  %s1074_s8 = scalar_lea.sflag [#allocation6], %s1073_s13 }
 0x183   : > { %s5444_s6 = scalar_lea.vmem [#allocation5], %s3382_s4  ;;  %p5879_p2 = scmp.ne.s32.totalorder %s5872_s23, 0 }
 0x185   : > { %4880 = dma.done.wait (%p5879_p2), %s1074_s8, 512  }
 0x186   : > { %4882 = vsyncadd (%p5879_p2), %s1074_s8, 4294966784  ;;  %p5880_p4 = pmov %p5878_p0 }
 0x187   : > { %p5881_p9 = pmov %p5878_p0 }
 0x188   : > { %4884 = dma.done.wait (%p5880_p4), [#allocation6], 16  }
 0x189   : > { %4886 = vsyncadd (%p5881_p9), [#allocation6], 4294967280  ;;  %p5882_p11 = pmov %p5878_p0 }
 0x18a   : > { %p5883_p6 = pmov %p5878_p0 }
 0x18b   : > { %4888 = dma.done.wait (%p5882_p11), [#allocation9], 32  }
 0x18c   : > { %4890 = vsyncadd (%p5883_p6), [#allocation9], 4294967264  ;;  %p5884_p8 = pmov %p5878_p0 }
 0x18d   : > { %p5885_p1 = pmov %p5878_p0 }
 0x18e   : > { %4892 = dma.done.wait (%p5884_p8), [#allocation12], 32  }
 0x18f   : > { %4894 = vsyncadd (%p5885_p1), [#allocation12], 4294967264  ;;  %p5886_p5 = pmov %p5878_p0 }
 0x190   : > { %p5887_p3 = pmov %p5878_p0 }
 0x191   : > { %4896 = dma.done.wait (%p5886_p5), [#allocation15], 32  }
 0x192   : > { %4898 = vsyncadd (%p5887_p3), [#allocation15], 4294967264  ;;  %p5888_p10 = pmov %p5878_p0 }
 0x193   : > { %p5889_p12 = pmov %p5878_p0 }
 0x194   : > { %4900 = dma.done.wait (%p5888_p10), [#allocation18], 32  }
 0x195   : > { %4902 = vsyncadd (%p5889_p12), [#allocation18], 4294967264  ;;  %p5890_p7 = pmov %p5878_p0 }
 0x196   : > { %p5891_p13 = pmov %p5878_p0 }
 0x197   : > { %4904 = dma.done.wait (%p5890_p7), [#allocation21], 32  }
 0x198   : > { %4906 = vsyncadd (%p5891_p13), [#allocation21], 4294967264 }
 0x199   : > { %4908 = dma.done.wait (%p5878_p0), [#allocation24], 6160   ;;  %p5892_p2 = pmov %p5878_p0 }
 0x19a   : > { %p5893_p4 = pmov %p5878_p0 }
 0x19b   : > { %4910 = vsyncadd (%p5892_p2), [#allocation24], 4294961136 }
 0x19c   : > { %4912 = dma.done.wait (%p5893_p4), [#allocation27], 2064   ;;  %p5894_p9 = pmov %p5878_p0 }
 0x19d   : > { %p5895_p11 = pmov %p5878_p0 }
 0x19e   : > { %4914 = vsyncadd (%p5894_p9), [#allocation27], 4294965232 }
 0x19f   : > { %4916 = dma.done.wait (%p5895_p11), [#allocation30], 2064   ;;  %p5896_p6 = pmov %p5878_p0 }
 0x1a0   : > { %p5897_p8 = pmov %p5878_p0 }
 0x1a1   : > { %4918 = vsyncadd (%p5896_p6), [#allocation30], 4294965232 }
 0x1a2   : > { %4920 = dma.done.wait (%p5897_p8), [#allocation33], 2080   ;;  %p5898_p1 = pmov %p5878_p0 }
 0x1a3   : > { %p5899_p5 = pmov %p5878_p0 }
 0x1a4   : > { %4922 = vsyncadd (%p5898_p1), [#allocation33], 4294965216 }
 0x1a5   : > { %4924 = dma.done.wait (%p5899_p5), [#allocation36], 2048   ;;  %p5900_p3 = pmov %p5878_p0 }
 0x1a6   : > { %s5901_s9 = sld [smem:[#allocation56_spill]]  ;;  %vm1243_vm0 = vcmask 1042432   ;;  %v1318_v2 = vld [vmem:[#allocation25 + $0x170] sm:$0xff]  ;;  %v1317_v3 = vld [vmem:[#allocation25 + $0x168] sm:$0xff]  ;;  %v1319_v4 = vld [vmem:[#allocation25 + $0x178] sm:$0xff]  ;;  %v5006_v5 = vmov 0.0  }
 0x1a7   : > { %4926 = vsyncadd (%p5900_p3), [#allocation36], 4294965248  ;;  %1337 = vmatprep.subr.mxu0 %v1318_v2  ;;  %3600 = vmatprep.subr.mxu1 %v5006_v5  ;;  %v1315_v6 = vld [vmem:[#allocation25 + $0x158] sm:$0xff]  ;;  %v1314_v7 = vld [vmem:[#allocation25 + $0x150] sm:$0xff]  ;;  %vm5007_vm1 = vmmov 0   ;;  %s5902_s14 = sld [smem:[#allocation66_spill]] }
 0x1a8   : > { %v1316_v8 = vld [vmem:[#allocation25 + $0x160] sm:$0xff]  ;;  %1338 = vmatpush1.msra.mxu0 %v1317_v3  ;;  %3601 = vmatpush3.msra.mxu1 %v1319_v4  ;;  %v1311_v10 = vld [vmem:[#allocation25 + $0x138] sm:$0xff]  ;;  %v1313_v11 = vld [vmem:[#allocation25 + $0x148] sm:$0xff]  ;;  %vm1549_vm2 = vcmask 18432   ;;  %vm1561_vm3 = vcmask 23552   ;;  %s5903_s12 = sld [smem:[#allocation53_spill]] }
 0x1a9   : > { %v1312_v9 = vld [vmem:[#allocation25 + $0x140] sm:$0xff]  ;;  %1339 = vmatprep.subr.mxu0 %v1315_v6  ;;  %3602 = vmatprep.subr.mxu1 %v5006_v5  ;;  %v1309_v12 = vld [vmem:[#allocation25 + $0x128] sm:$0xff]  ;;  %v1310_v14 = vld [vmem:[#allocation25 + $0x130] sm:$0xff]  ;;  %vm2320_vm4 = vcmask 523264   ;;  %s5904_s28 = sld [smem:[#allocation72_spill]]  ;;  %s3821_s7 = smul.u32 24, %s5441_s20 }
 0x1aa   : > { %v1308_v13 = vld [vmem:[#allocation25 + $0x120] sm:$0xff]  ;;  %1340 = vmatpush1.msra.mxu0 %v1314_v7  ;;  %3603 = vmatpush3.msra.mxu1 %v1316_v8  ;;  %v1306_v20 = vld [vmem:[#allocation25 + $0x110] sm:$0xff]  ;;  %v1305_v21 = vld [vmem:[#allocation25 + $0x108] sm:$0xff]  ;;  %s5905_s19 = sld [smem:[#allocation73_spill]]  ;;  %s3822_s5 = smul.u32 384, %s5193_s26 }
 0x1ab   : > { %1341 = vmatprep.subr.mxu0 %v1312_v9  ;;  %3604 = vmatprep.subr.mxu1 %v5006_v5  ;;  %v1307_v22 = vld [vmem:[#allocation25 + $0x118] sm:$0xff]  ;;  %v1302_v24 = vld [vmem:[#allocation25 + $0xf0] sm:$0xff]  ;;  %v1304_v25 = vld [vmem:[#allocation25 + $0x100] sm:$0xff]  ;;  %s5906_s17 = sld [smem:[#allocation74_spill]]  ;;  %s1237_s13 = scalar_lea.vmem [#allocation38], %s3821_s7 }
 0x1ac   : > { %v1240_v0 = vld [vmem:[%s5901_s9] sm:$0x7]  ;;  %1342 = vmatpush1.msra.mxu0 %v1311_v10  ;;  %3605 = vmatpush3.msra.mxu1 %v1313_v11  ;;  %v1303_v23 = vld [vmem:[#allocation25 + $0xf8] sm:$0xff]  ;;  %v1300_v26 = vld [vmem:[#allocation25 + $0xe0] sm:$0xff]  ;;  %s5907_s23 = sld [smem:[#allocation76_spill]]  ;;  %s3038_s4 = sshll.u32 %s1237_s13, 4  ;;  %s5767_s4 = int_to_ptr.vmem [resolvable:$true] %s3038_s4 }
 0x1ad   : > { %v1244_v1 = vsel %vm1243_vm0, %v1240_v0, 0.0  ;;  %1343 = vmatprep.subr.mxu0 %v1309_v12  ;;  %3606 = vmatprep.subr.mxu1 %v5006_v5  ;;  %v1299_v27 = vld [vmem:[#allocation25 + $0xd8] sm:$0xff]  ;;  %v1301_v28 = vld [vmem:[#allocation25 + $0xe8] sm:$0xff]  ;;  %v1296_v30 = vld [vmem:[#allocation25 + $0xc0] sm:$0xff]  ;;  %s5908_s3 = sld [smem:[#allocation77_spill]]  ;;  %s4833_s26 = scalar_lea.vmem %s5767_s4, 384 }
 0x1ae   : > { %1245 = vadd.xlane.f32.xlu0 %v1244_v1  ;;  %1344 = vmatpush1.msra.mxu0 %v1308_v13  ;;  %v1297_v29 = vld [vmem:[#allocation25 + $0xc8] sm:$0xff]  ;;  %v1298_v31 = vld [vmem:[#allocation25 + $0xd0] sm:$0xff]  ;;  %v1295_v34 = vld [vmem:[#allocation25 + $0xb8] sm:$0xff]  ;;  %v1322_v1 = vlaneseq  ;;  %p4834_p10 = scmp.ne.s32.totalorder %s5767_s4, %s4833_s26  ;;  %p5909_p12 = scmp.ne.s32.totalorder %s5873_s10, 0 }
 0x1af   : > { %3607 = vmatpush3.msra.mxu1 %v1310_v14  ;;  %1401 = vmatprep.mubr.f32.mxu0 %v5006_v5  ;;  %v1294_v32 = vld [vmem:[#allocation25 + $0xb0] sm:$0xff]  ;;  %v1293_v33 = vld [vmem:[#allocation25 + $0xa8] sm:$0xff]  ;;  %v1291_v35 = vld [vmem:[#allocation25 + $0x98] sm:$0xff]  ;;  %s5009_s9 = smov [#allocation38]  }
 0x1b0   : > { %3608 = vmatprep.subr.mxu1 %v5006_v5  ;;  %1345 = vmatprep.subr.mxu0 %v1306_v20  ;;  %v1290_v36 = vld [vmem:[#allocation25 + $0x90] sm:$0xff]  ;;  %v1292_v37 = vld [vmem:[#allocation25 + $0xa0] sm:$0xff]  ;;  %v1287_v39 = vld [vmem:[#allocation25 + $0x78] sm:$0xff]  ;;  %v5527_v2 = vshrl.u32 %v1322_v1, 7  ;;  %p4835_p7 = pnand %p4834_p10, %p5909_p12 }
 0x1b1   : > { %1346 = vmatpush1.msra.mxu0 %v1305_v21  ;;  %3609 = vmatpush3.msra.mxu1 %v1307_v22  ;;  %v1288_v38 = vld [vmem:[#allocation25 + $0x80] sm:$0xff]  ;;  %v1289_v40 = vld [vmem:[#allocation25 + $0x88] sm:$0xff]  ;;  %v1286_v43 = vld [vmem:[#allocation25 + $0x70] sm:$0xff] }
 0x1b2   : > { %1347 = vmatprep.subr.mxu0 %v1303_v23  ;;  %3610 = vmatprep.subr.mxu1 %v5006_v5  ;;  %v1285_v41 = vld [vmem:[#allocation25 + $0x68] sm:$0xff]  ;;  %v1284_v42 = vld [vmem:[#allocation25 + $0x60] sm:$0xff]  ;;  %v1282_v44 = vld [vmem:[#allocation25 + $0x50] sm:$0xff]  ;;  %v1328_v3 = vsub.s32 1, %v5527_v2  ;;  %v1332_v7 = vsub.s32 2, %v5527_v2  ;;  %v1324_v9 = vsub.s32 0, %v5527_v2  ;;  %p4836_p13 = pneg %p4835_p7 }
 0x1b3   : > { %1348 = vmatpush1.msra.mxu0 %v1302_v24  ;;  %3611 = vmatpush3.msra.mxu1 %v1304_v25  ;;  %v1281_v45 = vld [vmem:[#allocation25 + $0x48] sm:$0xff]  ;;  %v1283_v46 = vld [vmem:[#allocation25 + $0x58] sm:$0xff]  ;;  %v1278_v48 = vld [vmem:[#allocation25 + $0x30] sm:$0xff]  ;;  %s5765_s8 = scalar_lea.hbm %s5908_s3, %s3822_s5 }
 0x1b4   : > { %1349 = vmatprep.subr.mxu0 %v1300_v26  ;;  %3612 = vmatprep.subr.mxu1 %v5006_v5  ;;  %v1279_v47 = vld [vmem:[#allocation25 + $0x38] sm:$0xff]  ;;  %v1280_v49 = vld [vmem:[#allocation25 + $0x40] sm:$0xff]  ;;  %v1277_v52 = vld [vmem:[#allocation25 + $0x28] sm:$0xff] }
 0x1b5   : > { %1350 = vmatpush1.msra.mxu0 %v1299_v27  ;;  %3613 = vmatpush3.msra.mxu1 %v1301_v28  ;;  %v1276_v50 = vld [vmem:[#allocation25 + $0x20] sm:$0xff]  ;;  %v1275_v51 = vld [vmem:[#allocation25 + $0x18] sm:$0xff]  ;;  %v1273_v53 = vld [vmem:[#allocation25 + $0x8] sm:$0xff] }
 0x1b6   : > { %1351 = vmatprep.subr.mxu0 %v1297_v29  ;;  %3614 = vmatprep.subr.mxu1 %v5006_v5  ;;  %v1272_v54 = vld [vmem:[#allocation25] sm:$0xff]  ;;  %v1274_v55 = vld [vmem:[#allocation25 + $0x10] sm:$0xff]  ;;  %v3404_v60 = vld [vmem:[#allocation7] ss:$0 sm:$0xff] }
 0x1b7   : > { %1352 = vmatpush1.msra.mxu0 %v1296_v30  ;;  %3615 = vmatpush3.msra.mxu1 %v1298_v31  ;;  %v3405_v62 = vld [vmem:[#allocation8] ss:$0 sm:$0xff]  ;;  %v5530_v4 = vld [vmem:[#allocation34] sm:$0x3]  ;;  %v1320_v8 = vld [vmem:[%s5902_s14] sm:$0x7] }
 0x1b8   : > { %1353 = vmatprep.subr.mxu0 %v1294_v32  ;;  %3616 = vmatprep.subr.mxu1 %v5006_v5  ;;  %v5533_v6 = vrot.slane %v5530_v4, %v1328_v3  ;;  %v1333_v10 = vrot.slane %v1320_v8, %v1332_v7  ;;  %v1325_v11 = vrot.slane %v1320_v8, %v1324_v9  ;;  %v1653_v29 = vld [vmem:[#allocation26 + $0x78] sm:$0xff]  ;;  %v1652_v30 = vld [vmem:[#allocation26 + $0x70] sm:$0xff]  ;;  %v1651_v31 = vld [vmem:[#allocation26 + $0x68] sm:$0xff]  ;;  %s4837_s14 = sshll.u32 %s5009_s9, 4  ;;  %s4838_s14 = int_to_ptr.vmem [resolvable:$false] %s4837_s14 }
 0x1b9   : > { %1354 = vmatpush1.msra.mxu0 %v1293_v33  ;;  %3617 = vmatpush3.msra.mxu1 %v1295_v34  ;;  %v1329_v12 = vrot.slane %v1320_v8, %v1328_v3  ;;  %v5547_v32 = vld [vmem:[%s5444_s6] sm:$0xff]   ;;  %v5551_v34 = vld [vmem:[%s5444_s6 + $0x8] sm:$0xff]   ;;  %p4840_p0 = scmp.lt.s32.totalorder %s5767_s4, %s4838_s14 }
 0x1ba   : > { %1355 = vmatprep.subr.mxu0 %v1291_v35  ;;  %3618 = vmatprep.subr.mxu1 %v5006_v5  ;;  %v3479_v33 = vunpack.c.l.bf16 %v5547_v32  ;;  %v1650_v35 = vld [vmem:[#allocation26 + $0x60] sm:$0xff] }
 0x1bb   : > { %1356 = vmatpush1.msra.mxu0 %v1290_v36  ;;  %3619 = vmatpush3.msra.mxu1 %v1292_v37  ;;  %v3483_v36 = vunpack.c.l.bf16 %v5551_v34  ;;  %v1649_v37 = vld [vmem:[#allocation26 + $0x58] sm:$0xff] }
 0x1bc   : > { %1357 = vmatprep.subr.mxu0 %v1288_v38  ;;  %3620 = vmatprep.subr.mxu1 %v5006_v5  ;;  %v5559_v38 = vld [vmem:[%s5444_s6 + $0x10] sm:$0xff]  }
 0x1bd   : > { %1358 = vmatpush1.msra.mxu0 %v1287_v39  ;;  %3621 = vmatpush3.msra.mxu1 %v1289_v40  ;;  %v1648_v39 = vld [vmem:[#allocation26 + $0x50] sm:$0xff]  ;;  %v3487_v40 = vunpack.c.l.bf16 %v5559_v38 }
 0x1be   : > { %1359 = vmatprep.subr.mxu0 %v1285_v41  ;;  %3622 = vmatprep.subr.mxu1 %v5006_v5  ;;  %v1647_v41 = vld [vmem:[#allocation26 + $0x48] sm:$0xff] }
 0x1bf   : > { %1360 = vmatpush1.msra.mxu0 %v1284_v42  ;;  %3623 = vmatpush3.msra.mxu1 %v1286_v43  ;;  %v1646_v42 = vld [vmem:[#allocation26 + $0x40] sm:$0xff]  ;;  %v1645_v43 = vld [vmem:[#allocation26 + $0x38] sm:$0xff] }
 0x1c0   : > { %1361 = vmatprep.subr.mxu0 %v1282_v44  ;;  %3624 = vmatprep.subr.mxu1 %v5006_v5  ;;  %v1644_v44 = vld [vmem:[#allocation26 + $0x30] sm:$0xff] }
 0x1c1   : > { %1362 = vmatpush1.msra.mxu0 %v1281_v45  ;;  %3625 = vmatpush3.msra.mxu1 %v1283_v46  ;;  %v1643_v45 = vld [vmem:[#allocation26 + $0x28] sm:$0xff]  ;;  %v1642_v46 = vld [vmem:[#allocation26 + $0x20] sm:$0xff] }
 0x1c2   : > { %1363 = vmatprep.subr.mxu0 %v1279_v47  ;;  %3626 = vmatprep.subr.mxu1 %v5006_v5  ;;  %v1641_v47 = vld [vmem:[#allocation26 + $0x18] sm:$0xff] }
 0x1c3   : > { %1364 = vmatpush1.msra.mxu0 %v1278_v48  ;;  %3627 = vmatpush3.msra.mxu1 %v1280_v49  ;;  %v1640_v48 = vld [vmem:[#allocation26 + $0x10] sm:$0xff]  ;;  %v1639_v49 = vld [vmem:[#allocation26 + $0x8] sm:$0xff] }
 0x1c4   : > { %1365 = vmatprep.subr.mxu0 %v1276_v50  ;;  %3628 = vmatprep.subr.mxu1 %v5006_v5 }
 0x1c5   : > { %1366 = vmatpush1.msra.mxu0 %v1275_v51  ;;  %3629 = vmatpush3.msra.mxu1 %v1277_v52 }
 0x1c6   : > { %1367 = vmatprep.subr.mxu0 %v1273_v53  ;;  %3630 = vmatprep.subr.mxu1 %v5006_v5  ;;  %v1638_v53 = vld [vmem:[#allocation26] sm:$0xff] }
 0x1c7   : > { %1368 = vmatpush1.msra.mxu0 %v1272_v54  ;;  %3631 = vmatpush3.msra.mxu1 %v1274_v55  ;;  %v3495_v54 = vld [vmem:[%s5444_s6 + $0x18] sm:$0xff]   ;;  %v3480_v55 = vunpack.c.h.bf16 %v5547_v32  ;;  %s3025_s6 = scalar_lea.sflag [#allocation4], %s5441_s20 }
 0x1c8   : > { %3632 = vmatprep.mubr.msk.f32.mxu1 %vm5007_vm1, %v5006_v5  ;;  %3640 = vmatprep.subr.mxu1 %v5006_v5 }
 0x1c9   : > { %3635 = vmatprep.subr.mxu0 %v5006_v5 }
 0x237   : > { %v1246_v15 = vpop.xlane.xlu0 %1245 }
 0x238   : > { %v1248_v16 = vmul.f32 0.0078125, %v1246_v15 }
 0x23a   : > { %v5502_v17 = vsub.f32 %v1240_v0, %v1248_v16 }
 0x23c   : > { %v1250_v18 = vmul.f32 %v5502_v17, %v5502_v17 }
 0x23e   : > { %v1251_v19 = vsel %vm1243_vm0, %v1250_v18, 0.0 }
 0x23f   : > { %1252 = vadd.xlane.f32.xlu0 %v1251_v19 }
 0x243   : > { %1872 = vadd.xlane.f32.xlu0 %v3479_v33 }
 0x247   : > { %1876 = vadd.xlane.f32.xlu0 %v3483_v36 }
 0x24b   : > { %1880 = vadd.xlane.f32.xlu0 %v3487_v40 }
 0x2c8   : > { %v1253_v56 = vpop.xlane.xlu0 %1252 }
 0x2c9   : > { %v1254_v57 = vmul.f32 0.0078125, %v1253_v56  ;;  %v3491_v56 = vunpack.c.l.bf16 %v3495_v54 }
 0x2cb   : > { %v1255_v58 = vadd.f32 1e-05, %v1254_v57  ;;  %v3484_v57 = vunpack.c.h.bf16 %v5551_v34  ;;  %1884 = vadd.xlane.f32.xlu0 %v3491_v56 }
 0x2cd   : > { %4179 = vrsqrt.f32 %v1255_v58  ;;  %v1873_v58 = vpop.xlane.xlu0 %1872 }
 0x2da   : > { %v4180_v59 = vpop.eup %4179 }
 0x2db   : > { %v1257_v61 = vmul.f32 %v4180_v59, %v5502_v17  ;;  %v3488_v59 = vunpack.c.h.bf16 %v5559_v38 }
 0x2dd   : > { %v1264_v63 = vmul.f32 %v3404_v60, %v1257_v61  ;;  %v1888_v60 = vmul.f32 0.0078125, %v1873_v58  ;;  %v1877_v61 = vpop.xlane.xlu0 %1876  ;;  %v1774_v58 = vld [vmem:[#allocation29 + $0x70] sm:$0xff] }
 0x2df   : > { %v1271_v0 = vadd.f32 %v3405_v62, %v1264_v63  ;;  %v3492_v62 = vunpack.c.h.bf16 %v3495_v54  ;;  %v5587_v63 = vsub.f32 %v3479_v33, %v1888_v60  ;;  %v4154_v54 = vld [vmem:[#allocation32 + $0x4] ss:$8 sps:$4 sm:$0xff]  }
 0x2e0   : > { %v1772_v60 = vld [vmem:[#allocation29 + $0x60] sm:$0xff] }
 0x2e1   : > { %1402 = vmatmul.mubr.f32.vlgmr.msra.gmra.mxu0 %v1271_v0  ;;  %3633 = vmatmul.mubr.f32.vlgmr.msra.gmra.mxu1 %v1271_v0  ;;  %v1890_v0 = vmul.f32 0.0078125, %v1877_v61  ;;  %v1881_v1 = vpop.xlane.xlu0 %1880  ;;  %v1904_v3 = vmul.f32 %v5587_v63, %v5587_v63 }
 0x2e2   : > { %3637 = vmatprep.mubr.msk.f32.mxu0 %vm5007_vm1, %v5006_v5  ;;  %3642 = vmatprep.mubr.msk.f32.mxu1 %vm5007_vm1, %v5006_v5  ;;  %v1892_v8 = vmul.f32 0.0078125, %v1881_v1 }
 0x2e3   : > { %v5593_v7 = vsub.f32 %v3483_v36, %v1890_v0 }
 0x3a1   : > { %v1403_v13 = vpop.f32.mrf.mxu0  ;;  %v1474_v14 = vpop.f32.mrf.mxu1 }
 0x3a2   : > { %v1475_v15 = vadd.f32 %v1474_v14, %v1333_v10  ;;  %v1404_v16 = vadd.f32 %v1403_v13, %v1325_v11  ;;  %v1906_v10 = vmul.f32 %v5593_v7, %v5593_v7  ;;  %v5599_v11 = vsub.f32 %v3487_v40, %v1892_v8 }
 0x3a3   : > { %v1405_v17 = vpop.f32.mrf.mxu0  ;;  %v3634_v18 = vpop.f32.mrf.mxu1 }
 0x3a4   : > { %v1406_v19 = vadd.f32 %v1405_v17, %v1329_v12  ;;  %3641 = vmatpush3.msk.msra.mxu1 %vm1243_vm0, %v1475_v15  ;;  %v1478_v20 = vmul.f32 0.088388346, %v1404_v16  ;;  %v1908_v12 = vmul.f32 %v5599_v11, %v5599_v11  ;;  %v1885_v15 = vpop.xlane.xlu0 %1884 }
 0x3a5   : > { %3680 = vmatprep.subr.mxu1 %v5006_v5  ;;  %v1894_v16 = vmul.f32 0.0078125, %v1885_v15 }
 0x3a6   : > { %3636 = vmatpush3.xpose.msra.mxu0 %v1406_v19  ;;  %v4131_v19 = vld [vmem:[#allocation32 + $0x70] ss:$8 sps:$4 sm:$0xff]  }
 0x3a7   : > { %3645 = vmatprep.subr.mxu0 %v5006_v5  ;;  %v5603_v17 = vsub.f32 %v3491_v56, %v1894_v16  ;;  %v4152_v56 = vld [vmem:[#allocation32] ss:$8 sps:$4 sm:$0xff]  }
 0x3a9   : > { %3638 = vmatmul.mubr.f32.vlgmr.msra.gmra.mxu0 %v1478_v20  ;;  %v1910_v18 = vmul.f32 %v5603_v17, %v5603_v17  ;;  %v4133_v20 = vld [vmem:[#allocation32 + $0x74] ss:$8 sps:$4 sm:$0xff]  }
 0x3aa   : > { %3677 = vmatprep.mubr.msk.f32.mxu0 %vm5007_vm1, %v5006_v5  ;;  %3646 = vmatpush3.msra.mxu0 %v1653_v29 }
 0x3ab   : > { %3647 = vmatprep.subr.mxu0 %v5006_v5 }
 0x3ac   : > { %3648 = vmatpush3.msra.mxu0 %v1652_v30 }
 0x3ad   : > { %3649 = vmatprep.subr.mxu0 %v5006_v5 }
 0x3ae   : > { %3650 = vmatpush3.msra.mxu0 %v1651_v31 }
 0x3af   : > { %3651 = vmatprep.subr.mxu0 %v5006_v5 }
 0x3b0   : > { %3652 = vmatpush3.msra.mxu0 %v1650_v35 }
 0x3b1   : > { %3653 = vmatprep.subr.mxu0 %v5006_v5 }
 0x3b2   : > { %3654 = vmatpush3.msra.mxu0 %v1649_v37 }
 0x3b3   : > { %3655 = vmatprep.subr.mxu0 %v5006_v5 }
 0x3b4   : > { %3656 = vmatpush3.msra.mxu0 %v1648_v39 }
 0x3b5   : > { %3657 = vmatprep.subr.mxu0 %v5006_v5 }
 0x3b6   : > { %3658 = vmatpush3.msra.mxu0 %v1647_v41  ;;  %v4136_v41 = vld [vmem:[#allocation32 + $0x64] ss:$8 sps:$4 sm:$0xff]  }
 0x3b7   : > { %3659 = vmatprep.subr.mxu0 %v5006_v5 }
 0x3b8   : > { %3660 = vmatpush3.msra.mxu0 %v1646_v42  ;;  %v4134_v42 = vld [vmem:[#allocation32 + $0x60] ss:$8 sps:$4 sm:$0xff]  }
 0x3b9   : > { %3661 = vmatprep.subr.mxu0 %v5006_v5 }
 0x3ba   : > { %3662 = vmatpush3.msra.mxu0 %v1645_v43 }
 0x3bb   : > { %3663 = vmatprep.subr.mxu0 %v5006_v5 }
 0x3bc   : > { %3664 = vmatpush3.msra.mxu0 %v1644_v44  ;;  %v4139_v44 = vld [vmem:[#allocation32 + $0x54] ss:$8 sps:$4 sm:$0xff]  }
 0x3bd   : > { %3665 = vmatprep.subr.mxu0 %v5006_v5 }
 0x3be   : > { %3666 = vmatpush3.msra.mxu0 %v1643_v45  ;;  %v4137_v45 = vld [vmem:[#allocation32 + $0x50] ss:$8 sps:$4 sm:$0xff]  }
 0x3bf   : > { %3667 = vmatprep.subr.mxu0 %v5006_v5 }
 0x3c0   : > { %3668 = vmatpush3.msra.mxu0 %v1642_v46  ;;  %v4142_v46 = vld [vmem:[#allocation32 + $0x44] ss:$8 sps:$4 sm:$0xff]  }
 0x3c1   : > { %3669 = vmatprep.subr.mxu0 %v5006_v5 }
 0x3c2   : > { %3670 = vmatpush3.msra.mxu0 %v1641_v47  ;;  %v4140_v47 = vld [vmem:[#allocation32 + $0x40] ss:$8 sps:$4 sm:$0xff]  }
 0x3c3   : > { %3671 = vmatprep.subr.mxu0 %v5006_v5 }
 0x3c4   : > { %3672 = vmatpush3.msra.mxu0 %v1640_v48  ;;  %v4145_v48 = vld [vmem:[#allocation32 + $0x34] ss:$8 sps:$4 sm:$0xff]  }
 0x3c5   : > { %3673 = vmatprep.subr.mxu0 %v5006_v5 }
 0x3c6   : > { %3674 = vmatpush3.msra.mxu0 %v1639_v49  ;;  %v4143_v49 = vld [vmem:[#allocation32 + $0x30] ss:$8 sps:$4 sm:$0xff]  }
 0x3c7   : > { %3675 = vmatprep.subr.mxu0 %v5006_v5 }
 0x3c8   : > { %3676 = vmatpush3.msra.mxu0 %v1638_v53  ;;  %v4151_v53 = vld [vmem:[#allocation32 + $0x14] ss:$8 sps:$4 sm:$0xff]  }
 0x3c9   : > { %2100 = vmatprep.subr.bf16.mxu0 %v4133_v20 }
 0x469   : > { %v1545_v21 = vpop.f32.mrf.mxu0 }
 0x46a   : > { %v1550_v22 = vsel %vm1549_vm2, %v1545_v21, -inf }
 0x46b   : > { %1551 = vmax.xlane.f32.xlu1 %v1550_v22  ;;  %v3639_v23 = vpop.f32.mrf.mxu0 }
 0x4f4   : > { %v1552_v24 = vpop.xlane.xlu1 %1551 }
 0x4f5   : > { %v1553_v25 = vsub.f32 %v1545_v21, %v1552_v24  ;;  %v3408_v24 = vld [vmem:[#allocation28] ss:$0 sm:$0xff] }
 0x4f7   : > { %v1554_v26 = vmul.f32 1.442695, %v1553_v25 }
 0x4f9   : > { %4181 = vpow2.f32 %v1554_v26 }
 0x506   : > { %v4182_v27 = vpop.eup %4181 }
 0x507   : > { %v1556_v28 = vsel %vm1549_vm2, %v4182_v27, 0.0 }
 0x508   : > { %1557 = vadd.xlane.f32.xlu1 %v1556_v28 }
 0x50c   : > { %1874 = vadd.xlane.f32.xlu1 %v3480_v55 }
 0x510   : > { %1878 = vadd.xlane.f32.xlu1 %v3484_v57 }
 0x514   : > { %1882 = vadd.xlane.f32.xlu1 %v3488_v59 }
 0x518   : > { %1886 = vadd.xlane.f32.xlu1 %v3492_v62 }
 0x51c   : > { %1912 = vadd.xlane.f32.xlu1 %v1904_v3 }
 0x520   : > { %1916 = vadd.xlane.f32.xlu1 %v1906_v10 }
 0x524   : > { %1920 = vadd.xlane.f32.xlu1 %v1908_v12 }
 0x528   : > { %1924 = vadd.xlane.f32.xlu1 %v1910_v18 }
 0x591   : > { %v1558_v50 = vpop.xlane.xlu1 %1557 }
 0x592   : > { %4183 = vrcp.f32 %v1558_v50  ;;  %v4148_v50 = vld [vmem:[#allocation32 + $0x24] ss:$8 sps:$4 sm:$0xff]  }
 0x595   : > { %v1875_v21 = vpop.xlane.xlu1 %1874 }
 0x596   : > { %v1889_v23 = vmul.f32 0.0078125, %v1875_v21 }
 0x599   : > { %v1879_v22 = vpop.xlane.xlu1 %1878 }
 0x59a   : > { %v1891_v28 = vmul.f32 0.0078125, %v1879_v22 }
 0x59c   : > { %v5613_v32 = vsub.f32 %v3484_v57, %v1891_v28  ;;  %v1775_v57 = vld [vmem:[#allocation29 + $0x78] sm:$0xff] }
 0x59d   : > { %v1883_v25 = vpop.xlane.xlu1 %1882 }
 0x59e   : > { %v1893_v34 = vmul.f32 0.0078125, %v1883_v25  ;;  %v1907_v37 = vmul.f32 %v5613_v32, %v5613_v32 }
 0x59f   : > { %v4184_v51 = vpop.eup %4183 }
 0x5a0   : > { %v1560_v52 = vmul.f32 %v4184_v51, %v4182_v27  ;;  %v5607_v27 = vsub.f32 %v3480_v55, %v1889_v23  ;;  %v5617_v36 = vsub.f32 %v3488_v59, %v1893_v34  ;;  %v4146_v51 = vld [vmem:[#allocation32 + $0x20] ss:$8 sps:$4 sm:$0xff]   ;;  %v5008_v55 = vmov 0  }
 0x5a1   : > { %v1887_v35 = vpop.xlane.xlu1 %1886  ;;  %v1773_v59 = vld [vmem:[#allocation29 + $0x68] sm:$0xff] }
 0x5a2   : > { %3643 = vmatmul.mubr.msk.f32.vlgmr.msra.gmra.mxu1 %vm1561_vm3, %v1560_v52  ;;  %v1905_v33 = vmul.f32 %v5607_v27, %v5607_v27  ;;  %v1895_v38 = vmul.f32 0.0078125, %v1887_v35  ;;  %v1909_v40 = vmul.f32 %v5617_v36, %v5617_v36  ;;  %v4149_v52 = vld [vmem:[#allocation32 + $0x10] ss:$8 sps:$4 sm:$0xff]  }
 0x5a3   : > { %3712 = vmatprep.mubr.msk.f32.mxu1 %vm5007_vm1, %v5006_v5  ;;  %3681 = vmatpush3.msra.mxu1 %v1775_v57 }
 0x5a4   : > { %v5621_v39 = vsub.f32 %v3492_v62, %v1895_v38  ;;  %3682 = vmatprep.subr.mxu1 %v5006_v5 }
 0x5a5   : > { %3683 = vmatpush3.msra.mxu1 %v1774_v58  ;;  %v1913_v61 = vpop.xlane.xlu1 %1912  ;;  %v1765_v58 = vld [vmem:[#allocation29 + $0x28] sm:$0xff] }
 0x5a6   : > { %v1911_v43 = vmul.f32 %v5621_v39, %v5621_v39  ;;  %3684 = vmatprep.subr.mxu1 %v5006_v5  ;;  %v1928_v62 = vmul.f32 0.0078125, %v1913_v61 }
 0x5a7   : > { %3685 = vmatpush3.msra.mxu1 %v1773_v59 }
 0x5a8   : > { %3686 = vmatprep.subr.mxu1 %v5006_v5  ;;  %v1936_v0 = vadd.f32 1e-05, %v1928_v62  ;;  %v1764_v62 = vld [vmem:[#allocation29 + $0x20] sm:$0xff] }
 0x5a9   : > { %3687 = vmatpush3.msra.mxu1 %v1772_v60  ;;  %v1917_v1 = vpop.xlane.xlu1 %1916 }
 0x5aa   : > { %3688 = vmatprep.subr.mxu1 %v5006_v5  ;;  %4185 = vrsqrt.f32 %v1936_v0  ;;  %v1930_v10 = vmul.f32 0.0078125, %v1917_v1 }
 0x5ac   : > { %v1938_v16 = vadd.f32 1e-05, %v1930_v10 }
 0x5ad   : > { %v1921_v20 = vpop.xlane.xlu1 %1920 }
 0x5ae   : > { %v1932_v23 = vmul.f32 0.0078125, %v1921_v20 }
 0x5b7   : > { %v4186_v28 = vpop.eup %4185 }
 0x5b8   : > { %v1952_v35 = vmul.f32 %v4186_v28, %v5587_v63  ;;  %v5644_v63 = vld [vmem:[#allocation11] ss:$0 sm:$0xff] }
 0x662   : > { %v1634_v13 = vpop.f32.mrf.mxu1 }
 0x663   : > { %3678 = vmatmul.mubr.f32.vlgmr.msra.gmra.mxu0 %v1634_v13 }
 0x664   : > { %v3644_v14 = vpop.f32.mrf.mxu1  ;;  %2101 = vmatpush1.bf16.msra.mxu0 %v4131_v19  ;;  %2132 = vmatprep.mubr.bf16.mxu0 %v5008_v55 }
 0x665   : > { %2102 = vmatprep.subr.bf16.mxu0 %v4136_v41  ;;  %v1770_v41 = vld [vmem:[#allocation29 + $0x50] sm:$0xff] }
 0x668   : > { %2103 = vmatpush1.bf16.msra.mxu0 %v4134_v42 }
 0x669   : > { %2104 = vmatprep.subr.bf16.mxu0 %v4139_v44 }
 0x66c   : > { %2105 = vmatpush1.bf16.msra.mxu0 %v4137_v45  ;;  %v1769_v45 = vld [vmem:[#allocation29 + $0x48] sm:$0xff] }
 0x66d   : > { %2106 = vmatprep.subr.bf16.mxu0 %v4142_v46  ;;  %v1768_v46 = vld [vmem:[#allocation29 + $0x40] sm:$0xff] }
 0x670   : > { %2107 = vmatpush1.bf16.msra.mxu0 %v4140_v47 }
 0x671   : > { %2108 = vmatprep.subr.bf16.mxu0 %v4145_v48 }
 0x674   : > { %2109 = vmatpush1.bf16.msra.mxu0 %v4143_v49 }
 0x675   : > { %2110 = vmatprep.subr.bf16.mxu0 %v4148_v50  ;;  %v1767_v50 = vld [vmem:[#allocation29 + $0x38] sm:$0xff] }
 0x678   : > { %2111 = vmatpush1.bf16.msra.mxu0 %v4146_v51 }
 0x679   : > { %2112 = vmatprep.subr.bf16.mxu0 %v4151_v53 }
 0x67c   : > { %2113 = vmatpush1.bf16.msra.mxu0 %v4149_v52 }
 0x67d   : > { %2114 = vmatprep.subr.bf16.mxu0 %v4154_v54  ;;  %v1766_v54 = vld [vmem:[#allocation29 + $0x30] sm:$0xff] }
 0x680   : > { %2115 = vmatpush1.bf16.msra.mxu0 %v4152_v56 }
 0x723   : > { %v1727_v26 = vpop.f32.mrf.mxu0 }
 0x724   : > { %v5609_v29 = vadd.f32 %v3408_v24, %v1727_v26 }
 0x725   : > { %v3679_v30 = vpop.f32.mrf.mxu0 }
 0x726   : > { %v1733_v31 = vsel %vm1243_vm0, %v5609_v29, 0.0 }
 0x727   : > { %1734 = vadd.xlane.f32.xlu0 %v1733_v31  ;;  %v1925_v31 = vpop.xlane.xlu1 %1924 }
 0x728   : > { %v1934_v38 = vmul.f32 0.0078125, %v1925_v31 }
 0x72a   : > { %v1942_v47 = vadd.f32 1e-05, %v1934_v38 }
 0x72b   : > { %1914 = vadd.xlane.f32.xlu0 %v1905_v33 }
 0x72f   : > { %1918 = vadd.xlane.f32.xlu0 %v1907_v37  ;;  %v1771_v37 = vld [vmem:[#allocation29 + $0x58] sm:$0xff] }
 0x730   : > { %3689 = vmatpush3.msra.mxu1 %v1771_v37  ;;  %v3410_v37 = vld [vmem:[#allocation14] ss:$0 sm:$0xff] }
 0x731   : > { %3690 = vmatprep.subr.mxu1 %v5006_v5 }
 0x732   : > { %3691 = vmatpush3.msra.mxu1 %v1770_v41 }
 0x733   : > { %1922 = vadd.xlane.f32.xlu0 %v1909_v40  ;;  %v5639_v40 = vld [vmem:[#allocation10] ss:$0 sm:$0xff]  ;;  %3692 = vmatprep.subr.mxu1 %v5006_v5 }
 0x734   : > { %v1966_v44 = vmul.f32 %v5639_v40, %v1952_v35  ;;  %3693 = vmatpush3.msra.mxu1 %v1769_v45 }
 0x735   : > { %3694 = vmatprep.subr.mxu1 %v5006_v5 }
 0x736   : > { %3695 = vmatpush3.msra.mxu1 %v1768_v46  ;;  %v1980_v53 = vadd.f32 %v5644_v63, %v1966_v44 }
 0x737   : > { %1926 = vadd.xlane.f32.xlu0 %v1911_v43  ;;  %3696 = vmatprep.subr.mxu1 %v5006_v5 }
 0x738   : > { %3697 = vmatpush3.msra.mxu1 %v1767_v50 }
 0x739   : > { %3698 = vmatprep.subr.mxu1 %v5006_v5 }
 0x73a   : > { %3699 = vmatpush3.msra.mxu1 %v1766_v54 }
 0x73b   : > { %3700 = vmatprep.subr.mxu1 %v5006_v5 }
 0x73c   : > { %3701 = vmatpush3.msra.mxu1 %v1765_v58 }
 0x73d   : > { %3702 = vmatprep.subr.mxu1 %v5006_v5 }
 0x73e   : > { %3703 = vmatpush3.msra.mxu1 %v1764_v62 }
 0x73f   : > { %3704 = vmatprep.subr.mxu1 %v5006_v5 }
 0x7b0   : > { %v1735_v3 = vpop.xlane.xlu0 %1734 }
 0x7b1   : > { %v1736_v8 = vmul.f32 0.0078125, %v1735_v3 }
 0x7b3   : > { %v5633_v12 = vsub.f32 %v5609_v29, %v1736_v8  ;;  %v1940_v29 = vadd.f32 1e-05, %v1932_v23  ;;  %v1762_v8 = vld [vmem:[#allocation29 + $0x10] sm:$0xff] }
 0x7b4   : > { %v1915_v13 = vpop.xlane.xlu0 %1914 }
 0x7b5   : > { %v1929_v14 = vmul.f32 0.0078125, %v1915_v13  ;;  %v1738_v15 = vmul.f32 %v5633_v12, %v5633_v12 }
 0x7b7   : > { %v1937_v18 = vadd.f32 1e-05, %v1929_v14  ;;  %v1739_v19 = vsel %vm1243_vm0, %v1738_v15, 0.0  ;;  %v1761_v14 = vld [vmem:[#allocation29 + $0x8] sm:$0xff] }
 0x7b8   : > { %1740 = vadd.xlane.f32.xlu1 %v1739_v19  ;;  %v1919_v21 = vpop.xlane.xlu0 %1918 }
 0x7b9   : > { %4187 = vrsqrt.f32 %v1937_v18  ;;  %v1931_v22 = vmul.f32 0.0078125, %v1919_v21 }
 0x7ba   : > { %4189 = vrsqrt.f32 %v1938_v16 }
 0x7bb   : > { %v1939_v24 = vadd.f32 1e-05, %v1931_v22 }
 0x7bc   : > { %v1923_v25 = vpop.xlane.xlu0 %1922 }
 0x7bd   : > { %4191 = vrsqrt.f32 %v1939_v24  ;;  %v1933_v26 = vmul.f32 0.0078125, %v1923_v25 }
 0x7bf   : > { %v1941_v30 = vadd.f32 1e-05, %v1933_v26 }
 0x7c0   : > { %v1927_v33 = vpop.xlane.xlu0 %1926 }
 0x7c1   : > { %4193 = vrsqrt.f32 %v1941_v30  ;;  %v1935_v34 = vmul.f32 0.0078125, %v1927_v33 }
 0x7c2   : > { %4195 = vrsqrt.f32 %v1940_v29 }
 0x7c3   : > { %v1943_v42 = vadd.f32 1e-05, %v1935_v34 }
 0x7c5   : > { %4197 = vrsqrt.f32 %v1943_v42 }
 0x7c6   : > { %v4188_v43 = vpop.eup %4187  ;;  %4199 = vrsqrt.f32 %v1942_v47 }
 0x7c7   : > { %v1953_v48 = vmul.f32 %v4188_v43, %v5607_v27  ;;  %v4190_v49 = vpop.eup %4189 }
 0x7c8   : > { %v1954_v27 = vmul.f32 %v4190_v49, %v5593_v7  ;;  %v1763_v7 = vld [vmem:[#allocation29 + $0x18] sm:$0xff] }
 0x7c9   : > { %v1967_v51 = vmul.f32 %v5639_v40, %v1953_v48  ;;  %3705 = vmatpush3.msra.mxu1 %v1763_v7 }
 0x7ca   : > { %v4192_v52 = vpop.eup %4191  ;;  %v1968_v0 = vmul.f32 %v5639_v40, %v1954_v27  ;;  %3706 = vmatprep.subr.mxu1 %v5006_v5 }
 0x7cb   : > { %v1981_v56 = vadd.f32 %v5644_v63, %v1967_v51  ;;  %v1955_v57 = vmul.f32 %v4192_v52, %v5613_v32  ;;  %3707 = vmatpush3.msra.mxu1 %v1762_v8 }
 0x7cc   : > { %v1982_v10 = vadd.f32 %v5644_v63, %v1968_v0  ;;  %3708 = vmatprep.subr.mxu1 %v5006_v5 }
 0x7cd   : > { %v1988_v59 = vpack.c.bf16 %v1981_v56, %v1980_v53  ;;  %v1969_v60 = vmul.f32 %v5639_v40, %v1955_v57  ;;  %3709 = vmatpush3.msra.mxu1 %v1761_v14 }
 0x7ce   : > { %v4194_v61 = vpop.eup %4193  ;;  %3710 = vmatprep.subr.mxu1 %v5006_v5 }
 0x7cf   : > { %2133 = vmatmul.mubr.bf16.vlgmr.msra.gmra.mxu0 %v1988_v59  ;;  %v4196_v1 = vpop.eup %4195  ;;  %v1983_v32 = vadd.f32 %v5644_v63, %v1969_v60  ;;  %v1957_v3 = vmul.f32 %v4194_v61, %v5617_v36  ;;  %v1760_v36 = vld [vmem:[#allocation29] sm:$0xff]  ;;  %v2013_v61 = vrot.slane %v5530_v4, %v1324_v9 }
 0x7d0   : > { %2142 = vmatprep.mubr.bf16.mxu0 %v5008_v55  ;;  %v1956_v13 = vmul.f32 %v4196_v1, %v5599_v11  ;;  %3711 = vmatpush3.msra.mxu1 %v1760_v36  ;;  %v3411_v36 = vld [vmem:[#allocation31] ss:$0 sm:$0xff] }
 0x7d1   : > { %v1989_v15 = vpack.c.bf16 %v1983_v32, %v1982_v10  ;;  %v1971_v16 = vmul.f32 %v5639_v40, %v1957_v3  ;;  %3715 = vmatprep.subr.bf16.mxu1 %v5006_v5 }
 0x7d2   : > { %v4198_v18 = vpop.eup %4197  ;;  %v1970_v19 = vmul.f32 %v5639_v40, %v1956_v13 }
 0x7d3   : > { %v4200_v20 = vpop.eup %4199  ;;  %v1985_v11 = vadd.f32 %v5644_v63, %v1971_v16  ;;  %v1959_v21 = vmul.f32 %v4198_v18, %v5621_v39 }
 0x7d4   : > { %v1984_v22 = vadd.f32 %v5644_v63, %v1970_v19  ;;  %v1958_v23 = vmul.f32 %v4200_v20, %v5603_v17  ;;  %v3409_v17 = vld [vmem:[#allocation13] ss:$0 sm:$0xff] }
 0x7d5   : > { %v1973_v25 = vmul.f32 %v5639_v40, %v1959_v21 }
 0x7d6   : > { %v1990_v24 = vpack.c.bf16 %v1985_v11, %v1984_v22  ;;  %v1972_v26 = vmul.f32 %v5639_v40, %v1958_v23  ;;  %v5707_v23 = vld [vmem:[%s5903_s12] sm:$0xff] }
 0x7d7   : > { %2143 = vmatmul.mubr.bf16.gmra.mxu0 %v1989_v15  ;;  %v1987_v28 = vadd.f32 %v5644_v63, %v1973_v25 }
 0x7d8   : > { %2152 = vmatprep.mubr.bf16.mxu0 %v5008_v55  ;;  %v1986_v29 = vadd.f32 %v5644_v63, %v1972_v26  ;;  %v5715_v26 = vld [vmem:[%s5903_s12 + $0x8] sm:$0xff] }
 0x7da   : > { %v1991_v39 = vpack.c.bf16 %v1987_v28, %v1986_v29 }
 0x7df   : > { %2153 = vmatmul.mubr.bf16.gmra.mxu0 %v1990_v24 }
 0x7e0   : > { %2162 = vmatprep.mubr.bf16.mxu0 %v5008_v55 }
 0x7e7   : > { %2163 = vmatmul.mubr.bf16.gmra.mxu0 %v1991_v39  ;;  %v5722_v39 = vld [vmem:[%s5903_s12 + $0x10] sm:$0xff] }
 0x841   : > { %v1741_v30 = vpop.xlane.xlu1 %1740 }
 0x842   : > { %v1742_v31 = vmul.f32 0.0078125, %v1741_v30  ;;  %v2225_v30 = vld [vmem:[#allocation2] sm:$0xff] }
 0x844   : > { %v1743_v33 = vadd.f32 1e-05, %v1742_v31 }
 0x846   : > { %4201 = vrsqrt.f32 %v1743_v33 }
 0x853   : > { %v4202_v34 = vpop.eup %4201 }
 0x854   : > { %v1745_v35 = vmul.f32 %v4202_v34, %v5633_v12 }
 0x856   : > { %v1752_v38 = vmul.f32 %v3409_v17, %v1745_v35  ;;  %v2226_v17 = vld [vmem:[#allocation2 + $0x8] sm:$0xff] }
 0x858   : > { %v5682_v41 = vadd.f32 %v3410_v37, %v1752_v38 }
 0x85a   : > { %3713 = vmatmul.mubr.f32.vlgmr.msra.gmra.mxu1 %v5682_v41 }
 0x85b   : > { %3723 = vmatprep.mubr.msk.bf16.mxu1 %vm5007_vm1, %v5006_v5 }
 0x88f   : > { %v2134_v55 = vpop.f32.mrf.mxu0 }
 0x890   : > { %v2135_v18 = vadd.f32 %v2134_v55, %v2013_v61 }
 0x891   : > { %v2136_v40 = vpop.f32.mrf.mxu0 }
 0x892   : > { %v2137_v42 = vadd.f32 %v2136_v40, %v5533_v6  ;;  %v2227_v40 = vld [vmem:[#allocation2 + $0x10] sm:$0xff] }
 0x893   : > { %v2138_v43 = vpop.f32.mrf.mxu0 }
 0x894   : > { %v2139_v16 = vadd.f32 %v2138_v43, %v2013_v61 }
 0x895   : > { %v2140_v44 = vpop.f32.mrf.mxu0 }
 0x896   : > { %v2141_v45 = vadd.f32 %v2140_v44, %v5533_v6 }
 0x897   : > { %v2144_v46 = vpop.f32.mrf.mxu0 }
 0x898   : > { %v5689_v47 = vpack.c.bf16 %v2141_v45, %v2137_v42  ;;  %v2145_v4 = vadd.f32 %v2144_v46, %v2013_v61 }
 0x899   : > { %v2146_v12 = vpop.f32.mrf.mxu0 }
 0x89a   : > { %v2147_v63 = vadd.f32 %v2146_v12, %v5533_v6 }
 0x89b   : > { %v2148_v48 = vpop.f32.mrf.mxu0 }
 0x89c   : > { %v2149_v2 = vadd.f32 %v2148_v48, %v2013_v61 }
 0x89d   : > { %v2150_v49 = vpop.f32.mrf.mxu0 }
 0x89e   : > { %v2151_v50 = vadd.f32 %v2150_v49, %v5533_v6  ;;  %v2174_v9 = vpack.c.bf16 %v2149_v2, %v2145_v4 }
 0x89f   : > { %v2154_v51 = vpop.f32.mrf.mxu0 }
 0x8a0   : > { %v2178_v52 = vpack.c.bf16 %v2151_v50, %v2147_v63  ;;  %v2155_v14 = vadd.f32 %v2154_v51, %v2013_v61 }
 0x8a1   : > { %v2156_v53 = vpop.f32.mrf.mxu0 }
 0x8a2   : > { %v2157_v54 = vadd.f32 %v2156_v53, %v5533_v6 }
 0x8a3   : > { %v2158_v56 = vpop.f32.mrf.mxu0 }
 0x8a4   : > { %v2159_v13 = vadd.f32 %v2158_v56, %v2013_v61 }
 0x8a5   : > { %v2160_v27 = vpop.f32.mrf.mxu0 }
 0x8a6   : > { %v2161_v57 = vadd.f32 %v2160_v27, %v5533_v6  ;;  %v2175_v15 = vpack.c.bf16 %v2159_v13, %v2155_v14 }
 0x8a7   : > { %v2164_v58 = vpop.f32.mrf.mxu0 }
 0x8a8   : > { %v2179_v59 = vpack.c.bf16 %v2161_v57, %v2157_v54  ;;  %v2165_v1 = vadd.f32 %v2164_v58, %v2013_v61 }
 0x8a9   : > { %v2166_v60 = vpop.f32.mrf.mxu0 }
 0x8aa   : > { %v2167_v62 = vadd.f32 %v2166_v60, %v5533_v6  ;;  %v4155_v60 = vld [vmem:[%s5904_s28 + $0x38] sm:$0xff]  }
 0x8ab   : > { %v2168_v0 = vpop.f32.mrf.mxu0  ;;  %3750 = vmatprep.subr.bf16.mxu0 %v4155_v60 }
 0x8ac   : > { %v2169_v7 = vadd.f32 %v2168_v0, %v2013_v61  ;;  %v4156_v61 = vld [vmem:[%s5904_s28 + $0x30] sm:$0xff]   ;;  %3751 = vmatpush3.bf16.msra.mxu0 %v4155_v60  ;;  %v4158_v0 = vld [vmem:[%s5904_s28 + $0x20] sm:$0xff]  }
 0x8ad   : > { %v2170_v32 = vpop.f32.mrf.mxu0  ;;  %3752 = vmatprep.subr.bf16.mxu0 %v4156_v61  ;;  %v4173_v60 = vld [vmem:[#allocation37 + $0x28] sm:$0xff]  }
 0x8ae   : > { %v2176_v3 = vpack.c.bf16 %v2169_v7, %v2165_v1  ;;  %v2171_v8 = vadd.f32 %v2170_v32, %v5533_v6  ;;  %v2173_v6 = vpack.c.bf16 %v2139_v16, %v2135_v18  ;;  %v4159_v1 = vld [vmem:[%s5904_s28 + $0x18] sm:$0xff]   ;;  %v4160_v7 = vld [vmem:[%s5904_s28 + $0x10] sm:$0xff]   ;;  %v4161_v18 = vld [vmem:[%s5904_s28 + $0x8] sm:$0xff]  }
 0x8b0   : > { %v2180_v10 = vpack.c.bf16 %v2171_v8, %v2167_v62  ;;  %3716 = vmatpush3.bf16.xpose.msra.mxu1 %v2176_v3  ;;  %v4157_v62 = vld [vmem:[%s5904_s28 + $0x28] sm:$0xff]   ;;  %3753 = vmatpush3.bf16.msra.mxu0 %v4156_v61  ;;  %v4174_v61 = vld [vmem:[#allocation37 + $0x20] sm:$0xff]  }
 0x8b1   : > { %3717 = vmatprep.subr.bf16.mxu1 %v5006_v5  ;;  %3754 = vmatprep.subr.bf16.mxu0 %v4157_v62 }
 0x8b4   : > { %3755 = vmatpush3.bf16.msra.mxu0 %v4157_v62  ;;  %v4175_v62 = vld [vmem:[#allocation37 + $0x18] sm:$0xff]  }
 0x8b5   : > { %3756 = vmatprep.subr.bf16.mxu0 %v4158_v0 }
 0x8b8   : > { %3718 = vmatpush3.bf16.xpose.msra.mxu1 %v2175_v15  ;;  %3757 = vmatpush3.bf16.msra.mxu0 %v4158_v0 }
 0x8b9   : > { %3719 = vmatprep.subr.bf16.mxu1 %v5006_v5  ;;  %3758 = vmatprep.subr.bf16.mxu0 %v4159_v1 }
 0x8bc   : > { %3759 = vmatpush3.bf16.msra.mxu0 %v4159_v1 }
 0x8bd   : > { %3760 = vmatprep.subr.bf16.mxu0 %v4160_v7 }
 0x8c0   : > { %3720 = vmatpush3.bf16.xpose.msra.mxu1 %v2174_v9  ;;  %3761 = vmatpush3.bf16.msra.mxu0 %v4160_v7 }
 0x8c1   : > { %3721 = vmatprep.subr.bf16.mxu1 %v5006_v5  ;;  %3762 = vmatprep.subr.bf16.mxu0 %v4161_v18 }
 0x8c4   : > { %3763 = vmatpush3.bf16.msra.mxu0 %v4161_v18 }
 0x8c8   : > { %3722 = vmatpush3.bf16.xpose.msra.mxu1 %v2173_v6 }
 0x8c9   : > { %3727 = vmatprep.subr.mxu1 %v5006_v5 }
 0x91a   : > { %v1849_v19 = vpop.f32.mrf.mxu1 }
 0x91b   : > { %v1850_v20 = vadd.f32 %v3411_v36, %v1849_v19 }
 0x91c   : > { %v3714_v11 = vpop.f32.mrf.mxu1 }
 0x91d   : > { %v1853_v21 = vmul.f32 0.088388346, %v1850_v20 }
 0x91f   : > { %v2181_v22 = vpack.c.bf16 %v1853_v21, %v1853_v21 }
 0x921   : > { %3724 = vmatmul.mubr.bf16.vlgmr.msra.gmra.mxu1 %v2181_v22 }
 0x922   : > { %3729 = vmatprep.mubr.msk.f32.mxu1 %vm5007_vm1, %v5006_v5 }
 0x9e1   : > { %v2216_v24 = vpop.f32.mrf.mxu1 }
 0x9e2   : > { %3728 = vmatpush3.msk.msra.mxu1 %vm1243_vm0, %v2216_v24 }
 0x9e3   : > { %v3725_v25 = vpop.f32.mrf.mxu1  ;;  %3730 = vmatmul.mubr.msk.f32.vlgmr.msra.gmra.mxu1 %vm1561_vm3, %v5707_v23  ;;  %3738 = vmatprep.subr.bf16.mxu1 %v2180_v10 }
 0x9e4   : > { %3739 = vmatpush3.bf16.msra.mxu1 %v2180_v10  ;;  %3732 = vmatprep.mubr.msk.f32.mxu1 %vm5007_vm1, %v5006_v5 }
 0x9e5   : > { %v2219_v28 = vpop.f32.mrf.mxu1  ;;  %3740 = vmatprep.subr.bf16.mxu1 %v2179_v59 }
 0x9e7   : > { %v3726_v29 = vpop.f32.mrf.mxu1  ;;  %3733 = vmatmul.mubr.msk.f32.gmra.mxu1 %vm1561_vm3, %v5715_v26 }
 0x9e8   : > { %3741 = vmatpush3.bf16.msra.mxu1 %v2179_v59  ;;  %3735 = vmatprep.mubr.msk.f32.mxu1 %vm5007_vm1, %v5006_v5  ;;  %v3436_v29 = vld [vmem:[%s5905_s19] ss:$0 sm:$0xff]  ;;  %s4839_s19 = scalar_lea.vmem %s4838_s14, 768 }
 0x9e9   : > { %3742 = vmatprep.subr.bf16.mxu1 %v2178_v52  ;;  %p4841_p2 = scmp.lt.s32.totalorder %s4839_s19, %s4833_s26 }
 0x9eb   : > { %3736 = vmatmul.mubr.msk.f32.gmra.mxu1 %vm1561_vm3, %v5722_v39  ;;  %p4842_p4 = por %p4841_p2, %p4840_p0 }
 0x9ec   : > { %3743 = vmatpush3.bf16.msra.mxu1 %v2178_v52 }
 0x9ed   : > { %3744 = vmatprep.subr.bf16.mxu1 %v5689_v47  ;;  %p4843_p9 = pnand %p4842_p4, %p4836_p13 }
 0x9f0   : > { %3745 = vmatpush3.bf16.msra.mxu1 %v5689_v47 }
 0x9f1   : > { %3770 = vmatprep.subr.mxu1 %v5006_v5 }
 0xaa3   : > { %v2306_v31 = vpop.f32.mrf.mxu1 }
 0xaa4   : > { %v2307_v33 = vadd.f32 %v2306_v31, %v2225_v30 }
 0xaa5   : > { %v3731_v34 = vpop.f32.mrf.mxu1 }
 0xaa6   : > { %v2321_v35 = vsel %vm2320_vm4, %v2307_v33, -inf }
 0xaa7   : > { %2322 = vmax.xlane.f32.xlu0 %v2321_v35  ;;  %v2311_v37 = vpop.f32.mrf.mxu1 }
 0xaa8   : > { %v2312_v38 = vadd.f32 %v2311_v37, %v2226_v17 }
 0xaa9   : > { %v3734_v55 = vpop.f32.mrf.mxu1 }
 0xaaa   : > { %v2324_v42 = vsel %vm2320_vm4, %v2312_v38, -inf  ;;  %v4163_v55 = vld [vmem:[#allocation35 + $0x38] sm:$0xff]  }
 0xaab   : > { %2325 = vmax.xlane.f32.xlu1 %v2324_v42  ;;  %v2316_v43 = vpop.f32.mrf.mxu1 }
 0xaac   : > { %v2317_v44 = vadd.f32 %v2316_v43, %v2227_v40 }
 0xaad   : > { %v3737_v45 = vpop.f32.mrf.mxu1 }
 0xaae   : > { %v2327_v46 = vsel %vm2320_vm4, %v2317_v44, -inf }
 0xaaf   : > { %2328 = vmax.xlane.f32.xlu0 %v2327_v46 }
 0xb30   : > { %v2323_v47 = vpop.xlane.xlu0 %2322 }
 0xb31   : > { %v2330_v12 = vsub.f32 %v2307_v33, %v2323_v47 }
 0xb33   : > { %v2333_v63 = vmul.f32 1.442695, %v2330_v12 }
 0xb34   : > { %v2326_v48 = vpop.xlane.xlu1 %2325 }
 0xb35   : > { %4203 = vpow2.f32 %v2333_v63  ;;  %v2331_v49 = vsub.f32 %v2312_v38, %v2326_v48 }
 0xb37   : > { %v2335_v50 = vmul.f32 1.442695, %v2331_v49 }
 0xb38   : > { %v2329_v51 = vpop.xlane.xlu0 %2328 }
 0xb39   : > { %4205 = vpow2.f32 %v2335_v50  ;;  %v2332_v52 = vsub.f32 %v2317_v44, %v2329_v51  ;;  %v4164_v51 = vld [vmem:[#allocation35 + $0x30] sm:$0xff]  }
 0xb3b   : > { %v2337_v53 = vmul.f32 1.442695, %v2332_v52  ;;  %v4165_v52 = vld [vmem:[#allocation35 + $0x28] sm:$0xff]  }
 0xb3d   : > { %4207 = vpow2.f32 %v2337_v53  ;;  %v4166_v53 = vld [vmem:[#allocation35 + $0x20] sm:$0xff]  }
 0xb42   : > { %v4204_v54 = vpop.eup %4203 }
 0xb43   : > { %v2339_v56 = vsel %vm2320_vm4, %v4204_v54, 0.0 }
 0xb44   : > { %2340 = vadd.xlane.f32.xlu1 %v2339_v56  ;;  %v4168_v56 = vld [vmem:[#allocation35 + $0x10] sm:$0xff]  }
 0xb46   : > { %v4206_v27 = vpop.eup %4205 }
 0xb47   : > { %v2342_v57 = vsel %vm2320_vm4, %v4206_v27, 0.0 }
 0xb48   : > { %2343 = vadd.xlane.f32.xlu0 %v2342_v57  ;;  %v4170_v57 = vld [vmem:[#allocation35] sm:$0xff]  }
 0xb4a   : > { %v4208_v58 = vpop.eup %4207 }
 0xb4b   : > { %v2345_v59 = vsel %vm2320_vm4, %v4208_v58, 0.0 }
 0xb4c   : > { %2346 = vadd.xlane.f32.xlu1 %v2345_v59  ;;  %v4172_v59 = vld [vmem:[#allocation37 + $0x30] sm:$0xff]  }
 0xbcd   : > { %v2341_v32 = vpop.xlane.xlu1 %2340 }
 0xbce   : > { %4209 = vrcp.f32 %v2341_v32 }
 0xbd1   : > { %v2344_v3 = vpop.xlane.xlu0 %2343 }
 0xbd2   : > { %4211 = vrcp.f32 %v2344_v3 }
 0xbd5   : > { %v2347_v8 = vpop.xlane.xlu1 %2346 }
 0xbd6   : > { %4213 = vrcp.f32 %v2347_v8 }
 0xbdb   : > { %v4210_v10 = vpop.eup %4209 }
 0xbdc   : > { %v2351_v14 = vmul.f32 %v4210_v10, %v4204_v54  ;;  %v4167_v54 = vld [vmem:[#allocation35 + $0x18] sm:$0xff]  }
 0xbdf   : > { %v4212_v13 = vpop.eup %4211 }
 0xbe0   : > { %v2352_v15 = vmul.f32 %v4212_v13, %v4206_v27  ;;  %v4169_v27 = vld [vmem:[#allocation35 + $0x8] sm:$0xff]  }
 0xbe2   : > { %v2354_v2 = vpack.c.bf16 %v2352_v15, %v2351_v14 }
 0xbe3   : > { %v4214_v4 = vpop.eup %4213 }
 0xbe4   : > { %v2353_v9 = vmul.f32 %v4214_v4, %v4208_v58  ;;  %3746 = vmatprep.mubr.msk.bf16.mxu1 %vm2320_vm4, %v2354_v2  ;;  %v4171_v58 = vld [vmem:[#allocation37 + $0x38] sm:$0xff]   ;;  %v3449_v4 = vld [vmem:[#allocation16] ss:$0 sm:$0xff] }
 0xbe6   : > { %v2355_v16 = vpack.c.bf16 %v2353_v9, %v2353_v9 }
 0xbe8   : > { %3747 = vmatmul.mubr.msk.bf16.vlgmr.msra.gmra.mxu1 %vm2320_vm4, %v2355_v16 }
 0xbe9   : > { %3771 = vmatpush3.msk.msra.mxu1 %vm1243_vm0, %v5682_v41  ;;  %3772 = vmatprep.mubr.msk.f32.mxu1 %vm5007_vm1, %v5006_v5  ;;  %v4162_v41 = vld [vmem:[%s5904_s28] sm:$0xff]  }
 0xbea   : > { %3764 = vmatprep.subr.bf16.mxu0 %v4162_v41  ;;  %3801 = vmatprep.subr.bf16.mxu1 %v4171_v58 }
 0xbeb   : > { %3765 = vmatpush3.bf16.msra.mxu0 %v4162_v41 }
 0xbec   : > { %3781 = vmatprep.subr.bf16.mxu0 %v4163_v55 }
 0xbf0   : > { %3773 = vmatmul.mubr.msk.f32.vlgmr.msra.gmra.mxu1 %vm1561_vm3, %v5707_v23 }
 0xbf1   : > { %3775 = vmatprep.mubr.msk.f32.mxu1 %vm5007_vm1, %v5006_v5  ;;  %3802 = vmatpush3.bf16.msra.mxu1 %v4171_v58 }
 0xbf2   : > { %3803 = vmatprep.subr.bf16.mxu1 %v4172_v59 }
 0xbf4   : > { %3776 = vmatmul.mubr.msk.f32.gmra.mxu1 %vm1561_vm3, %v5715_v26 }
 0xbf5   : > { %3778 = vmatprep.mubr.msk.f32.mxu1 %vm5007_vm1, %v5006_v5  ;;  %3804 = vmatpush3.bf16.msra.mxu1 %v4172_v59 }
 0xbf6   : > { %3805 = vmatprep.subr.bf16.mxu1 %v4173_v60 }
 0xbf8   : > { %3779 = vmatmul.mubr.msk.f32.gmra.mxu1 %vm1561_vm3, %v5722_v39 }
 0xbf9   : > { %3806 = vmatpush3.bf16.msra.mxu1 %v4173_v60 }
 0xbfa   : > { %3807 = vmatprep.subr.bf16.mxu1 %v4174_v61 }
 0xbfd   : > { %3808 = vmatpush3.bf16.msra.mxu1 %v4174_v61 }
 0xbfe   : > { %3809 = vmatprep.subr.bf16.mxu1 %v4175_v62 }
 0xc01   : > { %3810 = vmatpush3.bf16.msra.mxu1 %v4175_v62 }
 0xca8   : > { %v3748_v6 = vpop.f32.mrf.mxu1 }
 0xca9   : > { %v2411_v21 = vpack.c.bf16 %v3748_v6, %v3748_v6 }
 0xcaa   : > { %v2396_v36 = vpop.f32.mrf.mxu1 }
 0xcac   : > { %v3749_v19 = vpop.f32.mrf.mxu1 }
 0xcae   : > { %v2399_v20 = vpop.f32.mrf.mxu1 }
 0xcaf   : > { %v2410_v11 = vpack.c.bf16 %v2399_v20, %v2396_v36  ;;  %v3450_v36 = vld [vmem:[#allocation17] ss:$0 sm:$0xff] }
 0xcb0   : > { %v2600_v22 = vpop.f32.mrf.mxu1 }
 0xcb1   : > { %3766 = vmatprep.mubr.bf16.mxu0 %v2410_v11 }
 0xcb2   : > { %3767 = vmatmul.mubr.bf16.vlgmr.msra.gmra.mxu0 %v2411_v21  ;;  %v3774_v5 = vpop.f32.mrf.mxu1 }
 0xcb3   : > { %3782 = vmatpush3.bf16.msra.mxu0 %v4163_v55 }
 0xcb4   : > { %v2605_v23 = vpop.f32.mrf.mxu1  ;;  %3783 = vmatprep.subr.bf16.mxu0 %v4164_v51 }
 0xcb6   : > { %v3777_v24 = vpop.f32.mrf.mxu1 }
 0xcb7   : > { %3784 = vmatpush3.bf16.msra.mxu0 %v4164_v51  ;;  %v4176_v24 = vld [vmem:[#allocation37 + $0x10] sm:$0xff]  }
 0xcb8   : > { %v2610_v25 = vpop.f32.mrf.mxu1  ;;  %3785 = vmatprep.subr.bf16.mxu0 %v4165_v52  ;;  %3811 = vmatprep.subr.bf16.mxu1 %v4176_v24 }
 0xcb9   : > { %3812 = vmatpush3.bf16.msra.mxu1 %v4176_v24 }
 0xcba   : > { %v3780_v26 = vpop.f32.mrf.mxu1 }
 0xcbb   : > { %3786 = vmatpush3.bf16.msra.mxu0 %v4165_v52  ;;  %v4178_v26 = vld [vmem:[#allocation37] sm:$0xff]  }
 0xcbc   : > { %3787 = vmatprep.subr.bf16.mxu0 %v4166_v53 }
 0xcbf   : > { %3788 = vmatpush3.bf16.msra.mxu0 %v4166_v53 }
 0xcc0   : > { %3789 = vmatprep.subr.bf16.mxu0 %v4167_v54 }
 0xcc3   : > { %3790 = vmatpush3.bf16.msra.mxu0 %v4167_v54 }
 0xcc4   : > { %3791 = vmatprep.subr.bf16.mxu0 %v4168_v56 }
 0xcc7   : > { %3792 = vmatpush3.bf16.msra.mxu0 %v4168_v56 }
 0xcc8   : > { %3793 = vmatprep.subr.bf16.mxu0 %v4169_v27 }
 0xccb   : > { %3794 = vmatpush3.bf16.msra.mxu0 %v4169_v27 }
 0xccc   : > { %3795 = vmatprep.subr.bf16.mxu0 %v4170_v57 }
 0xccf   : > { %3796 = vmatpush3.bf16.msra.mxu0 %v4170_v57 }
 0xd72   : > { %v3768_v28 = vpop.f32.mrf.mxu0 }
 0xd73   : > { %v2526_v33 = vadd.f32 %v3768_v28, %v3436_v29 }
 0xd74   : > { %v2517_v39 = vpop.f32.mrf.mxu0 }
 0xd75   : > { %v2518_v30 = vadd.f32 %v3436_v29, %v2517_v39  ;;  %v2611_v37 = vadd.f32 %v2610_v25, %v2526_v33  ;;  %v4177_v25 = vld [vmem:[#allocation37 + $0x8] sm:$0xff]  }
 0xd76   : > { %v3769_v31 = vpop.f32.mrf.mxu0  ;;  %3813 = vmatprep.subr.bf16.mxu1 %v4177_v25 }
 0xd77   : > { %v2601_v34 = vadd.f32 %v2600_v22, %v2518_v30  ;;  %3814 = vmatpush3.bf16.msra.mxu1 %v4177_v25 }
 0xd78   : > { %v2520_v17 = vpop.f32.mrf.mxu0  ;;  %3815 = vmatprep.subr.bf16.mxu1 %v4178_v26 }
 0xd79   : > { %v2521_v35 = vadd.f32 %v3436_v29, %v2520_v17  ;;  %2616 = vadd.xlane.f32.xlu0 %v2601_v34  ;;  %v3451_v29 = vld [vmem:[%s5906_s17] ss:$0 sm:$0xff] }
 0xd7b   : > { %v2606_v38 = vadd.f32 %v2605_v23, %v2521_v35  ;;  %3816 = vmatpush3.bf16.msra.mxu1 %v4178_v26 }
 0xd7d   : > { %2618 = vadd.xlane.f32.xlu1 %v2606_v38  ;;  %2620 = vadd.xlane.f32.xlu0 %v2611_v37 }
 0xe02   : > { %v2617_v40 = vpop.xlane.xlu0 %2616 }
 0xe03   : > { %v2622_v42 = vmul.f32 0.0078125, %v2617_v40 }
 0xe05   : > { %v2625_v43 = vsub.f32 %v2601_v34, %v2622_v42 }
 0xe06   : > { %v2619_v44 = vpop.xlane.xlu1 %2618  ;;  %v2621_v45 = vpop.xlane.xlu0 %2620 }
 0xe07   : > { %v2623_v46 = vmul.f32 0.0078125, %v2619_v44  ;;  %v2624_v47 = vmul.f32 0.0078125, %v2621_v45  ;;  %v2628_v12 = vmul.f32 %v2625_v43, %v2625_v43 }
 0xe09   : > { %v2626_v63 = vsub.f32 %v2606_v38, %v2623_v46  ;;  %v2627_v48 = vsub.f32 %v2611_v37, %v2624_v47  ;;  %2631 = vadd.xlane.f32.xlu1 %v2628_v12 }
 0xe0b   : > { %v2629_v49 = vmul.f32 %v2626_v63, %v2626_v63  ;;  %v2630_v50 = vmul.f32 %v2627_v48, %v2627_v48 }
 0xe0d   : > { %2633 = vadd.xlane.f32.xlu0 %v2629_v49  ;;  %2635 = vadd.xlane.f32.xlu1 %v2630_v50 }
 0xe92   : > { %v2632_v0 = vpop.xlane.xlu1 %2631 }
 0xe93   : > { %v2637_v1 = vmul.f32 0.0078125, %v2632_v0 }
 0xe95   : > { %v2640_v7 = vadd.f32 1e-05, %v2637_v1 }
 0xe96   : > { %v2636_v32 = vpop.xlane.xlu1 %2635  ;;  %v2634_v3 = vpop.xlane.xlu0 %2633 }
 0xe97   : > { %4215 = vrsqrt.f32 %v2640_v7  ;;  %v2639_v8 = vmul.f32 0.0078125, %v2636_v32  ;;  %v2638_v10 = vmul.f32 0.0078125, %v2634_v3 }
 0xe99   : > { %v2642_v13 = vadd.f32 1e-05, %v2639_v8  ;;  %v2641_v14 = vadd.f32 1e-05, %v2638_v10 }
 0xe9b   : > { %4217 = vrsqrt.f32 %v2642_v13 }
 0xe9c   : > { %4219 = vrsqrt.f32 %v2641_v14 }
 0xea4   : > { %v4216_v15 = vpop.eup %4215 }
 0xea5   : > { %v2646_v2 = vmul.f32 %v4216_v15, %v2625_v43  ;;  %v3460_v43 = vld [vmem:[%s5907_s23] ss:$0 sm:$0xff] }
 0xea7   : > { %v2655_v6 = vmul.f32 %v3449_v4, %v2646_v2  ;;  %v3469_v2 = vld [vmem:[#allocation19] ss:$0 sm:$0xff] }
 0xea8   : > { %v4218_v9 = vpop.eup %4217 }
 0xea9   : > { %v4220_v16 = vpop.eup %4219  ;;  %v2648_v18 = vmul.f32 %v4218_v9, %v2627_v48  ;;  %v2664_v21 = vadd.f32 %v3450_v36, %v2655_v6  ;;  %v3470_v9 = vld [vmem:[#allocation20] ss:$0 sm:$0xff] }
 0xeaa   : > { %v2647_v41 = vmul.f32 %v4220_v16, %v2626_v63 }
 0xeab   : > { %v2657_v19 = vmul.f32 %v3449_v4, %v2648_v18 }
 0xeac   : > { %v2656_v20 = vmul.f32 %v3449_v4, %v2647_v41 }
 0xead   : > { %v2666_v11 = vadd.f32 %v3450_v36, %v2657_v19 }
 0xeae   : > { %v2665_v22 = vadd.f32 %v3450_v36, %v2656_v20 }
 0xeaf   : > { %v2668_v5 = vpack.c.bf16 %v2666_v11, %v2666_v11 }
 0xeb0   : > { %v2667_v23 = vpack.c.bf16 %v2665_v22, %v2664_v21 }
 0xeb2   : > { %3797 = vmatprep.mubr.bf16.mxu0 %v2667_v23 }
 0xeb3   : > { %3798 = vmatmul.mubr.bf16.vlgmr.msra.gmra.mxu0 %v2668_v5 }
 0xf73   : > { %v3799_v28 = vpop.f32.mrf.mxu0 }
 0xf74   : > { %v2783_v30 = vadd.f32 %v3799_v28, %v3451_v29 }
 0xf75   : > { %v2774_v39 = vpop.f32.mrf.mxu0 }
 0xf76   : > { %v2775_v33 = vadd.f32 %v3451_v29, %v2774_v39  ;;  %v2790_v35 = vmax.f32 %v2783_v30, 0.0 }
 0xf77   : > { %v3800_v31 = vpop.f32.mrf.mxu0 }
 0xf78   : > { %v2788_v37 = vmax.f32 %v2775_v33, 0.0  ;;  %v2792_v40 = vpack.c.bf16 %v2790_v35, %v2790_v35 }
 0xf79   : > { %v2777_v34 = vpop.f32.mrf.mxu0 }
 0xf7a   : > { %v2778_v17 = vadd.f32 %v3451_v29, %v2777_v34 }
 0xf7c   : > { %v2789_v38 = vmax.f32 %v2778_v17, 0.0 }
 0xf7e   : > { %v2791_v55 = vpack.c.bf16 %v2789_v38, %v2788_v37 }
 0xf80   : > { %3817 = vmatprep.mubr.bf16.mxu1 %v2791_v55 }
 0xf81   : > { %3818 = vmatmul.mubr.bf16.vlgmr.msra.gmra.mxu1 %v2792_v40 }
0x1041   : > { %v3819_v42 = vpop.f32.mrf.mxu1 }
0x1042   : > { %v2907_v47 = vadd.f32 %v3819_v42, %v3460_v43 }
0x1043   : > { %v2898_v44 = vpop.f32.mrf.mxu1 }
0x1044   : > { %v2899_v45 = vadd.f32 %v3460_v43, %v2898_v44  ;;  %v2914_v50 = vadd.f32 %v2907_v47, %v2666_v11 }
0x1045   : > { %v3820_v46 = vpop.f32.mrf.mxu1 }
0x1046   : > { %v2912_v12 = vadd.f32 %v2899_v45, %v2664_v21  ;;  %v3471_v46 = vld [vmem:[#allocation22] ss:$0 sm:$0xff] }
0x1047   : > { %v2901_v63 = vpop.f32.mrf.mxu1 }
0x1048   : > { %v2902_v48 = vadd.f32 %v3460_v43, %v2901_v63  ;;  %2917 = vadd.xlane.f32.xlu0 %v2912_v12 }
0x104a   : > { %v2913_v49 = vadd.f32 %v2902_v48, %v2665_v22 }
0x104c   : > { %2919 = vadd.xlane.f32.xlu1 %v2913_v49  ;;  %2921 = vadd.xlane.f32.xlu0 %v2914_v50 }
0x10d1   : > { %v2918_v51 = vpop.xlane.xlu0 %2917 }
0x10d2   : > { %v2923_v52 = vmul.f32 0.0078125, %v2918_v51 }
0x10d4   : > { %v2926_v53 = vsub.f32 %v2912_v12, %v2923_v52  ;;  %v3472_v12 = vld [vmem:[#allocation23] ss:$0 sm:$0xff] }
0x10d5   : > { %v2920_v54 = vpop.xlane.xlu1 %2919  ;;  %v2922_v56 = vpop.xlane.xlu0 %2921 }
0x10d6   : > { %v2924_v27 = vmul.f32 0.0078125, %v2920_v54  ;;  %v2925_v57 = vmul.f32 0.0078125, %v2922_v56  ;;  %v2929_v58 = vmul.f32 %v2926_v53, %v2926_v53 }
0x10d8   : > { %v2927_v59 = vsub.f32 %v2913_v49, %v2924_v27  ;;  %v2928_v60 = vsub.f32 %v2914_v50, %v2925_v57  ;;  %2932 = vadd.xlane.f32.xlu1 %v2929_v58 }
0x10da   : > { %v2930_v61 = vmul.f32 %v2927_v59, %v2927_v59  ;;  %v2931_v62 = vmul.f32 %v2928_v60, %v2928_v60 }
0x10dc   : > { %2934 = vadd.xlane.f32.xlu0 %v2930_v61  ;;  %2936 = vadd.xlane.f32.xlu1 %v2931_v62 }
0x1161   : > { %v2933_v0 = vpop.xlane.xlu1 %2932 }
0x1162   : > { %v2938_v1 = vmul.f32 0.0078125, %v2933_v0 }
0x1164   : > { %v2941_v7 = vadd.f32 1e-05, %v2938_v1 }
0x1165   : > { %v2937_v32 = vpop.xlane.xlu1 %2936  ;;  %v2935_v3 = vpop.xlane.xlu0 %2934 }
0x1166   : > { %4221 = vrsqrt.f32 %v2941_v7  ;;  %v2940_v8 = vmul.f32 0.0078125, %v2937_v32  ;;  %v2939_v10 = vmul.f32 0.0078125, %v2935_v3 }
0x1168   : > { %v2943_v13 = vadd.f32 1e-05, %v2940_v8  ;;  %v2942_v14 = vadd.f32 1e-05, %v2939_v10 }
0x116a   : > { %4223 = vrsqrt.f32 %v2943_v13 }
0x116b   : > { %4225 = vrsqrt.f32 %v2942_v14 }
0x1173   : > { %v4222_v15 = vpop.eup %4221 }
0x1174   : > { %v2947_v4 = vmul.f32 %v4222_v15, %v2926_v53 }
0x1176   : > { %v2956_v16 = vmul.f32 %v3469_v2, %v2947_v4 }
0x1177   : > { %v4224_v18 = vpop.eup %4223 }
0x1178   : > { %v4226_v41 = vpop.eup %4225  ;;  %v2965_v6 = vadd.f32 %v3470_v9, %v2956_v16  ;;  %v2949_v36 = vmul.f32 %v4224_v18, %v2928_v60 }
0x1179   : > { %v2948_v19 = vmul.f32 %v4226_v41, %v2927_v59 }
0x117a   : > { %2970 = vadd.xlane.f32.xlu0 %v2965_v6  ;;  %v2958_v20 = vmul.f32 %v3469_v2, %v2949_v36 }
0x117b   : > { %v2957_v11 = vmul.f32 %v3469_v2, %v2948_v19 }
0x117c   : > { %v2967_v21 = vadd.f32 %v3470_v9, %v2958_v20 }
0x117d   : > { %v2966_v22 = vadd.f32 %v3470_v9, %v2957_v11 }
0x117e   : > { %2974 = vadd.xlane.f32.xlu0 %v2967_v21 }
0x117f   : > { %2972 = vadd.xlane.f32.xlu1 %v2966_v22 }
0x1203   : > { %v2971_v5 = vpop.xlane.xlu0 %2970 }
0x1204   : > { %v2976_v23 = vmul.f32 0.0078125, %v2971_v5 }
0x1206   : > { %v2979_v24 = vsub.f32 %v2965_v6, %v2976_v23 }
0x1207   : > { %v2975_v25 = vpop.xlane.xlu0 %2974 }
0x1208   : > { %v2973_v26 = vpop.xlane.xlu1 %2972  ;;  %v2978_v28 = vmul.f32 0.0078125, %v2975_v25  ;;  %v2982_v29 = vmul.f32 %v2979_v24, %v2979_v24 }
0x1209   : > { %v2977_v39 = vmul.f32 0.0078125, %v2973_v26 }
0x120a   : > { %v2981_v30 = vsub.f32 %v2967_v21, %v2978_v28  ;;  %2985 = vadd.xlane.f32.xlu1 %v2982_v29 }
0x120b   : > { %v2980_v31 = vsub.f32 %v2966_v22, %v2977_v39 }
0x120c   : > { %v2984_v33 = vmul.f32 %v2981_v30, %v2981_v30 }
0x120d   : > { %v2983_v34 = vmul.f32 %v2980_v31, %v2980_v31 }
0x120e   : > { %2989 = vadd.xlane.f32.xlu1 %v2984_v33 }
0x120f   : > { %2987 = vadd.xlane.f32.xlu0 %v2983_v34 }
0x1293   : > { %v2986_v17 = vpop.xlane.xlu1 %2985 }
0x1294   : > { %v2991_v35 = vmul.f32 0.0078125, %v2986_v17 }
0x1296   : > { %v2994_v37 = vadd.f32 1e-05, %v2991_v35 }
0x1297   : > { %v2990_v38 = vpop.xlane.xlu1 %2989 }
0x1298   : > { %4227 = vrsqrt.f32 %v2994_v37  ;;  %v2993_v55 = vmul.f32 0.0078125, %v2990_v38  ;;  %v2988_v40 = vpop.xlane.xlu0 %2987 }
0x1299   : > { %v2992_v42 = vmul.f32 0.0078125, %v2988_v40 }
0x129a   : > { %v2996_v43 = vadd.f32 1e-05, %v2993_v55 }
0x129b   : > { %v2995_v44 = vadd.f32 1e-05, %v2992_v42 }
0x129c   : > { %4229 = vrsqrt.f32 %v2996_v43 }
0x129d   : > { %4231 = vrsqrt.f32 %v2995_v44 }
0x12a5   : > { %v4228_v45 = vpop.eup %4227 }
0x12a6   : > { %v3000_v47 = vmul.f32 %v4228_v45, %v2979_v24 }
0x12a8   : > { %v3009_v63 = vmul.f32 %v3471_v46, %v3000_v47 }
0x12a9   : > { %v4230_v48 = vpop.eup %4229 }
0x12aa   : > { %v4232_v49 = vpop.eup %4231  ;;  %v3018_v50 = vadd.f32 %v3472_v12, %v3009_v63  ;;  %v3002_v51 = vmul.f32 %v4230_v48, %v2981_v30 }
0x12ab   : > { %v3001_v52 = vmul.f32 %v4232_v49, %v2980_v31 }
0x12ac   : > { %v3011_v53 = vmul.f32 %v3471_v46, %v3002_v51  ;;  %3021 = vst [vmem:[%s1237_s13] sm:$0xff] %v3018_v50 }
0x12ad   : > { %v3010_v54 = vmul.f32 %v3471_v46, %v3001_v52 }
0x12ae   : > { %v3020_v56 = vadd.f32 %v3472_v12, %v3011_v53 }
0x12af   : > { %v3019_v27 = vadd.f32 %v3472_v12, %v3010_v54 }
0x12b0   : > { %3023 = vst [vmem:[%s1237_s13 + $0x10] sm:$0xff] %v3020_v56 }
0x12b1   : > { %3022 = vst [vmem:[%s1237_s13 + $0x8] sm:$0xff] %v3019_v27 }
0x12b2   : > { %4846 = shalt.err (!%p4843_p9)
}
0x12b3   : > { %s4847_s17 = scalar_lea.hbm %s5765_s8, 384  ;;  %s4851_s23 = scalar_lea.hbm %s5908_s3, 768 }
0x12b4   : > { %p4848_p11 = scmp.ne.s32.totalorder %s5765_s8, %s4847_s17  ;;  %p4852_p1 = scmp.lt.s32.totalorder %s5765_s8, %s5908_s3 }
0x12b5   : > { %p4853_p5 = scmp.lt.s32.totalorder %s4851_s23, %s4847_s17 }
0x12b6   : > { %p4849_p6 = pnand %p4848_p11, %p5909_p12 }
0x12b7   : > { %p4854_p3 = por %p4853_p5, %p4852_p1 }
0x12b8   : > { %p4850_p8 = pneg %p4849_p6 }
0x12ba   : > { %p4855_p10 = pnand %p4854_p3, %p4850_p8 }
0x12bc   : > { %4858 = shalt.err (!%p4855_p10)
}
0x12bd   : > { %s5010_s7 = smov 128   ;;  %s5011_s5 = smov 8  }
0x12be   : > { %3913 = dma.vmem_to_hbm [thread:$0]  (%p5909_p12), %s5767_s4, 384, %s5765_s8, %s3025_s6, %s5010_s7, %s5010_s7, %s5011_s5  }
0x12bf PF: > { %s3053_s13 = sand.u32 1, %s4933_s15   ;;  %p5910_p7 = scmp.ne.s32.totalorder %s5874_s22, 0 }
0x12c0   : > { %p5911_p13 = scmp.ge.s32.totalorder %s4945_s18, 2  ;;  %s3054_s26 = scalar_lea.sflag [#allocation4], %s3053_s13 }
0x12c2   : > { %p3987_p0 = pnand %p5911_p13, %p5910_p7 }
0x12c4   : > { %p3988_p2 = pneg %p3987_p0 }
0x12c6   : > { %4928 = dma.done.wait (%p3988_p2), %s3054_s26, 384  }
0x12c7   : > { %4930 = vsyncadd (%p3988_p2), %s3054_s26, 4294966912  ;;  %p85_p4 = scmp.ge.s32.totalorder %s5366_s11, 4   ;;  %s5912_s15 = smov %s4937_s16 }
0x12c8   : > { %s5913_s16 = smov %s4941_s0  ;;  %s5914_s0 = smov %s5377_s2 }
0x12c9   : > { %s5915_s18 = smov %s5366_s11  ;;  %87 = sbr.rel (!%p85_p4) target bundleno = 75 (0x4b), region = 304 }
0x12ce   :  { %3059 = vsyncpa [#allocation3], 1 }
0x12cf   :  { %3061 = vsyncpa [#allocation3 + $0x1], 1 }
0x12d0   :  { %3062 = vsyncpa [#allocation6], 1 }
0x12d1   :  { %3064 = vsyncpa [#allocation6 + $0x1], 1 }
0x12d2   :  { %3065 = vsyncpa [#allocation9], 1 }
0x12d3   :  { %3066 = vsyncpa [#allocation12], 1 }
0x12d4   :  { %3067 = vsyncpa [#allocation15], 1 }
0x12d5   :  { %3068 = vsyncpa [#allocation18], 1 }
0x12d6   :  { %3069 = vsyncpa [#allocation21], 1 }
0x12d7   :  { %3070 = vsyncpa [#allocation24], 1 }
0x12d8   :  { %3071 = vsyncpa [#allocation27], 1 }
0x12d9   :  { %3072 = vsyncpa [#allocation30], 1 }
0x12da   :  { %3073 = vsyncpa [#allocation33], 1 }
0x12db   :  { %3074 = vsyncpa [#allocation36], 1 }
0x12dc   :  { %3075 = vsyncpa [#allocation4], 1 }
0x12dd   :  { %3077 = vsyncpa [#allocation4 + $0x1], 1 }

</bundles_post_ra>
